<compile_context>
chip_gen: v7x
topology: tpu7x:2x2x1
jax: 0.10.0
libtpu: 0.0.40
codegen_flags: <defaults>
</compile_context>

<pallas_src>
import jax
import jax.numpy as jnp
from jax.experimental import pallas as pl
from jax.experimental.pallas import tpu as pltpu

EPS = 1e-5
KP = 128          # padded contraction depth == padded conv output channels


def resblock_kernel(xpad_ref, w1_ref, g1_ref, b1_ref,
                    w2_ref, g2_ref, b2_ref, o_ref, col_scr, pad_scr):
    _, Hp, Wp, C = xpad_ref.shape
    H, W = Hp - 2, Wp - 2
    M = H * W
    K = 9 * C                      # true im2col contraction depth
    Kp = col_scr.shape[1]          # padded contraction depth (128)

    xpad = xpad_ref[0]             # (Hp, Wp, C) f32

    # The padded tail of the im2col slab must be zero (the matching weight
    # rows are zero too, but uninitialised VMEM may hold NaN and 0*NaN=NaN).
    # Re-done every step: scratch is per-core under megacore sharding.
    if K < Kp:
        col_scr[:, K:] = jnp.zeros((M, Kp - K), col_scr.dtype)

    def im2col(src):
        # src: (Hp, Wp, C) f32 with a 1-px zero border.
        for k in range(9):
            dh, dw = divmod(k, 3)
            patch = src[dh:dh + H, dw:dw + W, :].reshape(M, C)
            col_scr[:, k * C:(k + 1) * C] = patch
        # bf16 operands for the MXU; accumulation stays f32 at the dot.
        return col_scr[...].astype(jnp.bfloat16)          # (M, Kp)

    def inorm(y, g_ref, b_ref):
        # Training-mode InstanceNorm2d: per-channel stats over H*W, biased
        # variance via a centred second pass, all in f32.
        mean = jnp.mean(y, axis=0, keepdims=True)          # (1, Kp)
        d = y - mean
        var = jnp.mean(d * d, axis=0, keepdims=True)
        return d * jax.lax.rsqrt(var + EPS) * g_ref[...] + b_ref[...]

    # ---- conv1: single (M,128)x(128,128) bf16 MXU matmul, f32 accumulate ----
    y1 = jnp.dot(im2col(xpad), w1_ref[...],
                 preferred_element_type=jnp.float32)       # (M, Kp) f32
    r1 = jnp.maximum(inorm(y1, g1_ref, b1_ref), 0.0)       # ReLU

    # ---- zero-padded ReLU output for conv2 (border-only zeroing) ----
    # The interior is fully overwritten below, so only the 1-px frame is
    # zeroed (cheaper than a full re-zero; still done every step because the
    # scratch is per-core).
    pad_scr[0:1, :, :] = jnp.zeros((1, Wp, C), pad_scr.dtype)
    pad_scr[Hp - 1:Hp, :, :] = jnp.zeros((1, Wp, C), pad_scr.dtype)
    pad_scr[:, 0:1, :] = jnp.zeros((Hp, 1, C), pad_scr.dtype)
    pad_scr[:, Wp - 1:Wp, :] = jnp.zeros((Hp, 1, C), pad_scr.dtype)
    pad_scr[1:H + 1, 1:W + 1, :] = r1[:, :C].reshape(H, W, C)

    # ---- conv2 + instance norm 2 ----
    y2 = jnp.dot(im2col(pad_scr[...]), w2_ref[...],
                 preferred_element_type=jnp.float32)       # (M, Kp) f32
    o = inorm(y2, g2_ref, b2_ref)[:, :C]                   # (M, C)

    # ---- residual add: centre of the already-loaded padded input ----
    resid = xpad[1:H + 1, 1:W + 1, :].reshape(M, C)
    o_ref[0] = (resid + o).reshape(H, W, C).astype(o_ref.dtype)


def _pack_conv_weight(w_oihw, kp):
    """PyTorch OIHW (Cout, Cin, 3, 3) -> bf16 im2col matrix (kp, kp).

    Row index = (kh*3 + kw)*Cin + cin (matches the in-kernel im2col column
    order); column index = cout.  Unused rows/columns are zero.
    """
    cout, cin, kh, kw = w_oihw.shape
    w = jnp.transpose(w_oihw.astype(jnp.float32), (2, 3, 1, 0))
    w = w.reshape(kh * kw * cin, cout)
    wp = jnp.zeros((kp, kp), jnp.float32).at[:kh * kw * cin, :cout].set(w)
    return wp.astype(jnp.bfloat16)


def residual_block(x_nchw, w1_oihw, g1, b1, w2_oihw, g2, b2):
    """x_nchw: (N, C, H, W); conv weights in PyTorch OIHW layout (C, C, 3, 3)."""
    N, C, H, W = x_nchw.shape
    Cout = w1_oihw.shape[0]
    assert C == Cout, "residual add requires dim_in == dim_out"
    assert 9 * C <= KP, "small-C im2col path requires 9*C <= 128"

    # NHWC with a 1-pixel spatial zero border; channels stay at the true C
    # (no 32x HBM blow-up — lane padding lives only inside the kernel).
    x = jnp.transpose(x_nchw, (0, 2, 3, 1)).astype(jnp.float32)
    xpad = jnp.pad(x, ((0, 0), (1, 1), (1, 1), (0, 0)))

    w1p = _pack_conv_weight(w1_oihw, KP)
    w2p = _pack_conv_weight(w2_oihw, KP)

    def _pad_vec(v):
        return jnp.pad(v.astype(jnp.float32), (0, KP - Cout)).reshape(1, KP)

    g1p, b1p, g2p, b2p = _pad_vec(g1), _pad_vec(b1), _pad_vec(g2), _pad_vec(b2)

    Hp, Wp, M = H + 2, W + 2, H * W

    out = pl.pallas_call(
        resblock_kernel,
        out_shape=jax.ShapeDtypeStruct((N, H, W, C), jnp.float32),
        grid_spec=pltpu.PrefetchScalarGridSpec(
            num_scalar_prefetch=0,
            grid=(N,),
            in_specs=[
                pl.BlockSpec((1, Hp, Wp, C), lambda n: (n, 0, 0, 0)),
                pl.BlockSpec((KP, KP), lambda n: (0, 0)),
                pl.BlockSpec((1, KP), lambda n: (0, 0)),
                pl.BlockSpec((1, KP), lambda n: (0, 0)),
                pl.BlockSpec((KP, KP), lambda n: (0, 0)),
                pl.BlockSpec((1, KP), lambda n: (0, 0)),
                pl.BlockSpec((1, KP), lambda n: (0, 0)),
            ],
            out_specs=pl.BlockSpec((1, H, W, C), lambda n: (n, 0, 0, 0)),
            scratch_shapes=[
                pltpu.VMEM((M, KP), jnp.float32),       # im2col slab (reused)
                pltpu.VMEM((Hp, Wp, C), jnp.float32),   # conv2 zero-pad buffer
            ],
        ),
        compiler_params=pltpu.CompilerParams(
            dimension_semantics=("parallel",),
        ),
    )(xpad, w1p, g1p, b1p, w2p, g2p, b2p)

    return jnp.transpose(out, (0, 3, 1, 2))              # NHWC -> NCHW


def _reference(x, w1, g1, b1, w2, g2, b2):
    """Pure-JAX reference (training-mode InstanceNorm semantics)."""
    def conv(z, w):
        return jax.lax.conv_general_dilated(
            z, w, (1, 1), "SAME",
            dimension_numbers=("NCHW", "OIHW", "NCHW"),
            precision=jax.lax.Precision.HIGHEST)

    def inorm(z, g, b):
        m = jnp.mean(z, axis=(2, 3), keepdims=True)
        v = jnp.mean((z - m) ** 2, axis=(2, 3), keepdims=True)
        return ((z - m) * jax.lax.rsqrt(v + EPS)
                * g.reshape(1, -1, 1, 1) + b.reshape(1, -1, 1, 1))

    h = jax.nn.relu(inorm(conv(x, w1), g1, b1))
    return x + inorm(conv(h, w2), g2, b2)


if __name__ == "__main__":
    # Small shapes consistent with the module: dim_in = dim_out = 4.
    N, C, H, W = 2, 4, 16, 16

    key = jax.random.PRNGKey(0)
    kx, kw1, kw2, kg1, kb1, kg2, kb2 = jax.random.split(key, 7)

    x = jax.random.normal(kx, (N, C, H, W), dtype=jnp.float32)

    # Conv weights in PyTorch OIHW layout (Cout, Cin, 3, 3), no bias.
    w1 = 0.1 * jax.random.normal(kw1, (C, C, 3, 3), dtype=jnp.float32)
    w2 = 0.1 * jax.random.normal(kw2, (C, C, 3, 3), dtype=jnp.float32)
    # InstanceNorm affine params (module uses affine=True).
    g1 = 1.0 + 0.1 * jax.random.normal(kg1, (C,), dtype=jnp.float32)
    b1 = 0.1 * jax.random.normal(kb1, (C,), dtype=jnp.float32)
    g2 = 1.0 + 0.1 * jax.random.normal(kg2, (C,), dtype=jnp.float32)
    b2 = 0.1 * jax.random.normal(kb2, (C,), dtype=jnp.float32)

    y = residual_block(x, w1, g1, b1, w2, g2, b2)
    jax.block_until_ready(y)
    assert y.shape == (N, C, H, W), y.shape
    assert bool(jnp.all(jnp.isfinite(y)))

    # Loose-tolerance check against a pure-JAX f32 reference (the kernel uses
    # bf16 MXU operands with f32 accumulation, and MXU accumulation order
    # differs slightly from the XLA conv).
    y_ref = _reference(x, w1, g1, b1, w2, g2, b2)
    max_err = float(jnp.max(jnp.abs(y - y_ref)))
    assert max_err < 5e-2, f"mismatch vs reference: {max_err}"

    print("KERNEL_OK")
</pallas_src>

<mosaic_0001>
module attributes {stable_mosaic.version = 11 : i64} {
  func.func @resblock_kernel(%arg0: i32, %arg1: memref<1x18x18x4xf32, #tpu.memory_space<vmem>>, %arg2: memref<128x128xbf16, #tpu.memory_space<vmem>>, %arg3: memref<1x128xf32, #tpu.memory_space<vmem>>, %arg4: memref<1x128xf32, #tpu.memory_space<vmem>>, %arg5: memref<128x128xbf16, #tpu.memory_space<vmem>>, %arg6: memref<1x128xf32, #tpu.memory_space<vmem>>, %arg7: memref<1x128xf32, #tpu.memory_space<vmem>>, %arg8: memref<1x16x16x4xf32, #tpu.memory_space<vmem>>, %arg9: memref<256x128xf32, #tpu.memory_space<vmem>>, %arg10: memref<18x18x4xf32, #tpu.memory_space<vmem>>) attributes {dimension_semantics = [#tpu.dimension_semantics<parallel>], iteration_bounds = array<i64: 2>, scalar_prefetch = 0 : i64, scratch_operands = 2 : i64, tpu.core_type = #tpu.core_type<tc>, window_params = [{transform_indices = @transform_0, window_bounds = array<i64: 1, 18, 18, 4>}, {pipeline_mode = #tpu.pipeline_mode<synchronous>, transform_indices = @transform_1, window_bounds = array<i64: 128, 128>}, {pipeline_mode = #tpu.pipeline_mode<synchronous>, transform_indices = @transform_2, window_bounds = array<i64: 1, 128>}, {pipeline_mode = #tpu.pipeline_mode<synchronous>, transform_indices = @transform_3, window_bounds = array<i64: 1, 128>}, {pipeline_mode = #tpu.pipeline_mode<synchronous>, transform_indices = @transform_4, window_bounds = array<i64: 128, 128>}, {pipeline_mode = #tpu.pipeline_mode<synchronous>, transform_indices = @transform_5, window_bounds = array<i64: 1, 128>}, {pipeline_mode = #tpu.pipeline_mode<synchronous>, transform_indices = @transform_6, window_bounds = array<i64: 1, 128>}, {transform_indices = @transform_7, window_bounds = array<i64: 1, 16, 16, 4>}]} {
    %c0 = arith.constant 0 : index
    %c0_0 = arith.constant 0 : index
    %c0_1 = arith.constant 0 : index
    %c0_2 = arith.constant 0 : index
    %0 = vector.load %arg1[%c0, %c0_0, %c0_1, %c0_2] : memref<1x18x18x4xf32, #tpu.memory_space<vmem>>, vector<1x18x18x4xf32>
    %1 = vector.shape_cast %0 : vector<1x18x18x4xf32> to vector<18x18x4xf32>
    %cst = arith.constant 0.000000e+00 : f32
    %2 = vector.broadcast %cst : f32 to vector<256x92xf32>
    %c0_3 = arith.constant 0 : index
    %c36 = arith.constant 36 : index
    %3 = vector.load %arg9[%c0_3, %c36] : memref<256x128xf32, #tpu.memory_space<vmem>>, vector<256x92xf32>
    tpu.vector_store %arg9[%c0_3, %c36], %2 {strides = array<i32>} : memref<256x128xf32, #tpu.memory_space<vmem>>, vector<256x92xf32>,
    %4 = vector.extract_strided_slice %1 {offsets = [0, 0, 0], sizes = [16, 16, 4], strides = [1, 1, 1]} : vector<18x18x4xf32> to vector<16x16x4xf32>
    %5 = vector.shape_cast %4 : vector<16x16x4xf32> to vector<256x4xf32>
    %c0_4 = arith.constant 0 : index
    %c0_5 = arith.constant 0 : index
    %6 = vector.load %arg9[%c0_4, %c0_5] : memref<256x128xf32, #tpu.memory_space<vmem>>, vector<256x4xf32>
    tpu.vector_store %arg9[%c0_4, %c0_5], %5 {strides = array<i32>} : memref<256x128xf32, #tpu.memory_space<vmem>>, vector<256x4xf32>,
    %7 = vector.extract_strided_slice %1 {offsets = [0, 1, 0], sizes = [16, 16, 4], strides = [1, 1, 1]} : vector<18x18x4xf32> to vector<16x16x4xf32>
    %8 = vector.shape_cast %7 : vector<16x16x4xf32> to vector<256x4xf32>
    %c0_6 = arith.constant 0 : index
    %c4 = arith.constant 4 : index
    %9 = vector.load %arg9[%c0_6, %c4] : memref<256x128xf32, #tpu.memory_space<vmem>>, vector<256x4xf32>
    tpu.vector_store %arg9[%c0_6, %c4], %8 {strides = array<i32>} : memref<256x128xf32, #tpu.memory_space<vmem>>, vector<256x4xf32>,
    %10 = vector.extract_strided_slice %1 {offsets = [0, 2, 0], sizes = [16, 16, 4], strides = [1, 1, 1]} : vector<18x18x4xf32> to vector<16x16x4xf32>
    %11 = vector.shape_cast %10 : vector<16x16x4xf32> to vector<256x4xf32>
    %c0_7 = arith.constant 0 : index
    %c8 = arith.constant 8 : index
    %12 = vector.load %arg9[%c0_7, %c8] : memref<256x128xf32, #tpu.memory_space<vmem>>, vector<256x4xf32>
    tpu.vector_store %arg9[%c0_7, %c8], %11 {strides = array<i32>} : memref<256x128xf32, #tpu.memory_space<vmem>>, vector<256x4xf32>,
    %13 = vector.extract_strided_slice %1 {offsets = [1, 0, 0], sizes = [16, 16, 4], strides = [1, 1, 1]} : vector<18x18x4xf32> to vector<16x16x4xf32>
    %14 = vector.shape_cast %13 : vector<16x16x4xf32> to vector<256x4xf32>
    %c0_8 = arith.constant 0 : index
    %c12 = arith.constant 12 : index
    %15 = vector.load %arg9[%c0_8, %c12] : memref<256x128xf32, #tpu.memory_space<vmem>>, vector<256x4xf32>
    tpu.vector_store %arg9[%c0_8, %c12], %14 {strides = array<i32>} : memref<256x128xf32, #tpu.memory_space<vmem>>, vector<256x4xf32>,
    %16 = vector.extract_strided_slice %1 {offsets = [1, 1, 0], sizes = [16, 16, 4], strides = [1, 1, 1]} : vector<18x18x4xf32> to vector<16x16x4xf32>
    %17 = vector.shape_cast %16 : vector<16x16x4xf32> to vector<256x4xf32>
    %c0_9 = arith.constant 0 : index
    %c16 = arith.constant 16 : index
    %18 = vector.load %arg9[%c0_9, %c16] : memref<256x128xf32, #tpu.memory_space<vmem>>, vector<256x4xf32>
    tpu.vector_store %arg9[%c0_9, %c16], %17 {strides = array<i32>} : memref<256x128xf32, #tpu.memory_space<vmem>>, vector<256x4xf32>,
    %19 = vector.extract_strided_slice %1 {offsets = [1, 2, 0], sizes = [16, 16, 4], strides = [1, 1, 1]} : vector<18x18x4xf32> to vector<16x16x4xf32>
    %20 = vector.shape_cast %19 : vector<16x16x4xf32> to vector<256x4xf32>
    %c0_10 = arith.constant 0 : index
    %c20 = arith.constant 20 : index
    %21 = vector.load %arg9[%c0_10, %c20] : memref<256x128xf32, #tpu.memory_space<vmem>>, vector<256x4xf32>
    tpu.vector_store %arg9[%c0_10, %c20], %20 {strides = array<i32>} : memref<256x128xf32, #tpu.memory_space<vmem>>, vector<256x4xf32>,
    %22 = vector.extract_strided_slice %1 {offsets = [2, 0, 0], sizes = [16, 16, 4], strides = [1, 1, 1]} : vector<18x18x4xf32> to vector<16x16x4xf32>
    %23 = vector.shape_cast %22 : vector<16x16x4xf32> to vector<256x4xf32>
    %c0_11 = arith.constant 0 : index
    %c24 = arith.constant 24 : index
    %24 = vector.load %arg9[%c0_11, %c24] : memref<256x128xf32, #tpu.memory_space<vmem>>, vector<256x4xf32>
    tpu.vector_store %arg9[%c0_11, %c24], %23 {strides = array<i32>} : memref<256x128xf32, #tpu.memory_space<vmem>>, vector<256x4xf32>,
    %25 = vector.extract_strided_slice %1 {offsets = [2, 1, 0], sizes = [16, 16, 4], strides = [1, 1, 1]} : vector<18x18x4xf32> to vector<16x16x4xf32>
    %26 = vector.shape_cast %25 : vector<16x16x4xf32> to vector<256x4xf32>
    %c0_12 = arith.constant 0 : index
    %c28 = arith.constant 28 : index
    %27 = vector.load %arg9[%c0_12, %c28] : memref<256x128xf32, #tpu.memory_space<vmem>>, vector<256x4xf32>
    tpu.vector_store %arg9[%c0_12, %c28], %26 {strides = array<i32>} : memref<256x128xf32, #tpu.memory_space<vmem>>, vector<256x4xf32>,
    %28 = vector.extract_strided_slice %1 {offsets = [2, 2, 0], sizes = [16, 16, 4], strides = [1, 1, 1]} : vector<18x18x4xf32> to vector<16x16x4xf32>
    %29 = vector.shape_cast %28 : vector<16x16x4xf32> to vector<256x4xf32>
    %c0_13 = arith.constant 0 : index
    %c32 = arith.constant 32 : index
    %30 = vector.load %arg9[%c0_13, %c32] : memref<256x128xf32, #tpu.memory_space<vmem>>, vector<256x4xf32>
    tpu.vector_store %arg9[%c0_13, %c32], %29 {strides = array<i32>} : memref<256x128xf32, #tpu.memory_space<vmem>>, vector<256x4xf32>,
    %c0_14 = arith.constant 0 : index
    %c0_15 = arith.constant 0 : index
    %31 = vector.load %arg9[%c0_14, %c0_15] : memref<256x128xf32, #tpu.memory_space<vmem>>, vector<256x128xf32>
    %32 = arith.truncf %31 : vector<256x128xf32> to vector<256x128xbf16>
    %c0_16 = arith.constant 0 : index
    %c0_17 = arith.constant 0 : index
    %33 = vector.load %arg2[%c0_16, %c0_17] : memref<128x128xbf16, #tpu.memory_space<vmem>>, vector<128x128xbf16>
    %cst_18 = arith.constant dense<0.000000e+00> : vector<256x128xf32>
    %34 = tpu.matmul %32, %33, %cst_18 {dimension_numbers = #tpu.dot_dimension_numbers<[1], [0], [0], [1], [0, 0, 1, 1], [], []>} : vector<256x128xbf16>, vector<128x128xbf16>, vector<256x128xf32> -> vector<256x128xf32>
    %cst_19 = arith.constant dense<0.000000e+00> : vector<128xf32>
    %35 = vector.multi_reduction <add>, %34, %cst_19 [0] : vector<256x128xf32> to vector<128xf32>
    %36 = vector.shape_cast %35 : vector<128xf32> to vector<1x128xf32>
    %cst_20 = arith.constant 2.560000e+02 : f32
    %37 = vector.broadcast %cst_20 : f32 to vector<1x128xf32>
    %38 = arith.divf %36, %37 : vector<1x128xf32>
    %39 = vector.broadcast %38 : vector<1x128xf32> to vector<256x128xf32>
    %40 = arith.subf %34, %39 : vector<256x128xf32>
    %41 = arith.mulf %40, %40 : vector<256x128xf32>
    %cst_21 = arith.constant dense<0.000000e+00> : vector<128xf32>
    %42 = vector.multi_reduction <add>, %41, %cst_21 [0] : vector<256x128xf32> to vector<128xf32>
    %43 = vector.shape_cast %42 : vector<128xf32> to vector<1x128xf32>
    %cst_22 = arith.constant 2.560000e+02 : f32
    %44 = vector.broadcast %cst_22 : f32 to vector<1x128xf32>
    %45 = arith.divf %43, %44 : vector<1x128xf32>
    %cst_23 = arith.constant 9.99999974E-6 : f32
    %46 = vector.broadcast %cst_23 : f32 to vector<1x128xf32>
    %47 = arith.addf %45, %46 : vector<1x128xf32>
    %48 = math.rsqrt %47 : vector<1x128xf32>
    %49 = vector.broadcast %48 : vector<1x128xf32> to vector<256x128xf32>
    %50 = arith.mulf %40, %49 : vector<256x128xf32>
    %c0_24 = arith.constant 0 : index
    %c0_25 = arith.constant 0 : index
    %51 = vector.load %arg3[%c0_24, %c0_25] : memref<1x128xf32, #tpu.memory_space<vmem>>, vector<1x128xf32>
    %52 = vector.broadcast %51 : vector<1x128xf32> to vector<256x128xf32>
    %53 = arith.mulf %50, %52 : vector<256x128xf32>
    %c0_26 = arith.constant 0 : index
    %c0_27 = arith.constant 0 : index
    %54 = vector.load %arg4[%c0_26, %c0_27] : memref<1x128xf32, #tpu.memory_space<vmem>>, vector<1x128xf32>
    %55 = vector.broadcast %54 : vector<1x128xf32> to vector<256x128xf32>
    %56 = arith.addf %53, %55 : vector<256x128xf32>
    %cst_28 = arith.constant 0.000000e+00 : f32
    %57 = vector.broadcast %cst_28 : f32 to vector<256x128xf32>
    %58 = arith.maximumf %56, %57 : vector<256x128xf32>
    %cst_29 = arith.constant 0.000000e+00 : f32
    %59 = vector.broadcast %cst_29 : f32 to vector<1x18x4xf32>
    %c0_30 = arith.constant 0 : index
    %c0_31 = arith.constant 0 : index
    %c0_32 = arith.constant 0 : index
    %60 = vector.load %arg10[%c0_30, %c0_31, %c0_32] : memref<18x18x4xf32, #tpu.memory_space<vmem>>, vector<1x18x4xf32>
    tpu.vector_store %arg10[%c0_30, %c0_31, %c0_32], %59 {strides = array<i32>} : memref<18x18x4xf32, #tpu.memory_space<vmem>>, vector<1x18x4xf32>,
    %cst_33 = arith.constant 0.000000e+00 : f32
    %61 = vector.broadcast %cst_33 : f32 to vector<1x18x4xf32>
    %c17 = arith.constant 17 : index
    %c0_34 = arith.constant 0 : index
    %c0_35 = arith.constant 0 : index
    %62 = vector.load %arg10[%c17, %c0_34, %c0_35] : memref<18x18x4xf32, #tpu.memory_space<vmem>>, vector<1x18x4xf32>
    tpu.vector_store %arg10[%c17, %c0_34, %c0_35], %61 {strides = array<i32>} : memref<18x18x4xf32, #tpu.memory_space<vmem>>, vector<1x18x4xf32>,
    %cst_36 = arith.constant 0.000000e+00 : f32
    %63 = vector.broadcast %cst_36 : f32 to vector<18x1x4xf32>
    %c0_37 = arith.constant 0 : index
    %c0_38 = arith.constant 0 : index
    %c0_39 = arith.constant 0 : index
    %64 = vector.load %arg10[%c0_37, %c0_38, %c0_39] : memref<18x18x4xf32, #tpu.memory_space<vmem>>, vector<18x1x4xf32>
    tpu.vector_store %arg10[%c0_37, %c0_38, %c0_39], %63 {strides = array<i32>} : memref<18x18x4xf32, #tpu.memory_space<vmem>>, vector<18x1x4xf32>,
    %cst_40 = arith.constant 0.000000e+00 : f32
    %65 = vector.broadcast %cst_40 : f32 to vector<18x1x4xf32>
    %c0_41 = arith.constant 0 : index
    %c17_42 = arith.constant 17 : index
    %c0_43 = arith.constant 0 : index
    %66 = vector.load %arg10[%c0_41, %c17_42, %c0_43] : memref<18x18x4xf32, #tpu.memory_space<vmem>>, vector<18x1x4xf32>
    tpu.vector_store %arg10[%c0_41, %c17_42, %c0_43], %65 {strides = array<i32>} : memref<18x18x4xf32, #tpu.memory_space<vmem>>, vector<18x1x4xf32>,
    %67 = vector.extract_strided_slice %58 {offsets = [0, 0], sizes = [256, 4], strides = [1, 1]} : vector<256x128xf32> to vector<256x4xf32>
    %68 = vector.shape_cast %67 : vector<256x4xf32> to vector<16x16x4xf32>
    %c1 = arith.constant 1 : index
    %c1_44 = arith.constant 1 : index
    %c0_45 = arith.constant 0 : index
    %69 = vector.load %arg10[%c1, %c1_44, %c0_45] : memref<18x18x4xf32, #tpu.memory_space<vmem>>, vector<16x16x4xf32>
    tpu.vector_store %arg10[%c1, %c1_44, %c0_45], %68 {strides = array<i32>} : memref<18x18x4xf32, #tpu.memory_space<vmem>>, vector<16x16x4xf32>,
    %c0_46 = arith.constant 0 : index
    %c0_47 = arith.constant 0 : index
    %c0_48 = arith.constant 0 : index
    %70 = vector.load %arg10[%c0_46, %c0_47, %c0_48] : memref<18x18x4xf32, #tpu.memory_space<vmem>>, vector<18x18x4xf32>
    %71 = vector.extract_strided_slice %70 {offsets = [0, 0, 0], sizes = [16, 16, 4], strides = [1, 1, 1]} : vector<18x18x4xf32> to vector<16x16x4xf32>
    %72 = vector.shape_cast %71 : vector<16x16x4xf32> to vector<256x4xf32>
    %c0_49 = arith.constant 0 : index
    %c0_50 = arith.constant 0 : index
    %73 = vector.load %arg9[%c0_49, %c0_50] : memref<256x128xf32, #tpu.memory_space<vmem>>, vector<256x4xf32>
    tpu.vector_store %arg9[%c0_49, %c0_50], %72 {strides = array<i32>} : memref<256x128xf32, #tpu.memory_space<vmem>>, vector<256x4xf32>,
    %74 = vector.extract_strided_slice %70 {offsets = [0, 1, 0], sizes = [16, 16, 4], strides = [1, 1, 1]} : vector<18x18x4xf32> to vector<16x16x4xf32>
    %75 = vector.shape_cast %74 : vector<16x16x4xf32> to vector<256x4xf32>
    %c0_51 = arith.constant 0 : index
    %c4_52 = arith.constant 4 : index
    %76 = vector.load %arg9[%c0_51, %c4_52] : memref<256x128xf32, #tpu.memory_space<vmem>>, vector<256x4xf32>
    tpu.vector_store %arg9[%c0_51, %c4_52], %75 {strides = array<i32>} : memref<256x128xf32, #tpu.memory_space<vmem>>, vector<256x4xf32>,
    %77 = vector.extract_strided_slice %70 {offsets = [0, 2, 0], sizes = [16, 16, 4], strides = [1, 1, 1]} : vector<18x18x4xf32> to vector<16x16x4xf32>
    %78 = vector.shape_cast %77 : vector<16x16x4xf32> to vector<256x4xf32>
    %c0_53 = arith.constant 0 : index
    %c8_54 = arith.constant 8 : index
    %79 = vector.load %arg9[%c0_53, %c8_54] : memref<256x128xf32, #tpu.memory_space<vmem>>, vector<256x4xf32>
    tpu.vector_store %arg9[%c0_53, %c8_54], %78 {strides = array<i32>} : memref<256x128xf32, #tpu.memory_space<vmem>>, vector<256x4xf32>,
    %80 = vector.extract_strided_slice %70 {offsets = [1, 0, 0], sizes = [16, 16, 4], strides = [1, 1, 1]} : vector<18x18x4xf32> to vector<16x16x4xf32>
    %81 = vector.shape_cast %80 : vector<16x16x4xf32> to vector<256x4xf32>
    %c0_55 = arith.constant 0 : index
    %c12_56 = arith.constant 12 : index
    %82 = vector.load %arg9[%c0_55, %c12_56] : memref<256x128xf32, #tpu.memory_space<vmem>>, vector<256x4xf32>
    tpu.vector_store %arg9[%c0_55, %c12_56], %81 {strides = array<i32>} : memref<256x128xf32, #tpu.memory_space<vmem>>, vector<256x4xf32>,
    %83 = vector.extract_strided_slice %70 {offsets = [1, 1, 0], sizes = [16, 16, 4], strides = [1, 1, 1]} : vector<18x18x4xf32> to vector<16x16x4xf32>
    %84 = vector.shape_cast %83 : vector<16x16x4xf32> to vector<256x4xf32>
    %c0_57 = arith.constant 0 : index
    %c16_58 = arith.constant 16 : index
    %85 = vector.load %arg9[%c0_57, %c16_58] : memref<256x128xf32, #tpu.memory_space<vmem>>, vector<256x4xf32>
    tpu.vector_store %arg9[%c0_57, %c16_58], %84 {strides = array<i32>} : memref<256x128xf32, #tpu.memory_space<vmem>>, vector<256x4xf32>,
    %86 = vector.extract_strided_slice %70 {offsets = [1, 2, 0], sizes = [16, 16, 4], strides = [1, 1, 1]} : vector<18x18x4xf32> to vector<16x16x4xf32>
    %87 = vector.shape_cast %86 : vector<16x16x4xf32> to vector<256x4xf32>
    %c0_59 = arith.constant 0 : index
    %c20_60 = arith.constant 20 : index
    %88 = vector.load %arg9[%c0_59, %c20_60] : memref<256x128xf32, #tpu.memory_space<vmem>>, vector<256x4xf32>
    tpu.vector_store %arg9[%c0_59, %c20_60], %87 {strides = array<i32>} : memref<256x128xf32, #tpu.memory_space<vmem>>, vector<256x4xf32>,
    %89 = vector.extract_strided_slice %70 {offsets = [2, 0, 0], sizes = [16, 16, 4], strides = [1, 1, 1]} : vector<18x18x4xf32> to vector<16x16x4xf32>
    %90 = vector.shape_cast %89 : vector<16x16x4xf32> to vector<256x4xf32>
    %c0_61 = arith.constant 0 : index
    %c24_62 = arith.constant 24 : index
    %91 = vector.load %arg9[%c0_61, %c24_62] : memref<256x128xf32, #tpu.memory_space<vmem>>, vector<256x4xf32>
    tpu.vector_store %arg9[%c0_61, %c24_62], %90 {strides = array<i32>} : memref<256x128xf32, #tpu.memory_space<vmem>>, vector<256x4xf32>,
    %92 = vector.extract_strided_slice %70 {offsets = [2, 1, 0], sizes = [16, 16, 4], strides = [1, 1, 1]} : vector<18x18x4xf32> to vector<16x16x4xf32>
    %93 = vector.shape_cast %92 : vector<16x16x4xf32> to vector<256x4xf32>
    %c0_63 = arith.constant 0 : index
    %c28_64 = arith.constant 28 : index
    %94 = vector.load %arg9[%c0_63, %c28_64] : memref<256x128xf32, #tpu.memory_space<vmem>>, vector<256x4xf32>
    tpu.vector_store %arg9[%c0_63, %c28_64], %93 {strides = array<i32>} : memref<256x128xf32, #tpu.memory_space<vmem>>, vector<256x4xf32>,
    %95 = vector.extract_strided_slice %70 {offsets = [2, 2, 0], sizes = [16, 16, 4], strides = [1, 1, 1]} : vector<18x18x4xf32> to vector<16x16x4xf32>
    %96 = vector.shape_cast %95 : vector<16x16x4xf32> to vector<256x4xf32>
    %c0_65 = arith.constant 0 : index
    %c32_66 = arith.constant 32 : index
    %97 = vector.load %arg9[%c0_65, %c32_66] : memref<256x128xf32, #tpu.memory_space<vmem>>, vector<256x4xf32>
    tpu.vector_store %arg9[%c0_65, %c32_66], %96 {strides = array<i32>} : memref<256x128xf32, #tpu.memory_space<vmem>>, vector<256x4xf32>,
    %c0_67 = arith.constant 0 : index
    %c0_68 = arith.constant 0 : index
    %98 = vector.load %arg9[%c0_67, %c0_68] : memref<256x128xf32, #tpu.memory_space<vmem>>, vector<256x128xf32>
    %99 = arith.truncf %98 : vector<256x128xf32> to vector<256x128xbf16>
    %c0_69 = arith.constant 0 : index
    %c0_70 = arith.constant 0 : index
    %100 = vector.load %arg5[%c0_69, %c0_70] : memref<128x128xbf16, #tpu.memory_space<vmem>>, vector<128x128xbf16>
    %cst_71 = arith.constant dense<0.000000e+00> : vector<256x128xf32>
    %101 = tpu.matmul %99, %100, %cst_71 {dimension_numbers = #tpu.dot_dimension_numbers<[1], [0], [0], [1], [0, 0, 1, 1], [], []>} : vector<256x128xbf16>, vector<128x128xbf16>, vector<256x128xf32> -> vector<256x128xf32>
    %cst_72 = arith.constant dense<0.000000e+00> : vector<128xf32>
    %102 = vector.multi_reduction <add>, %101, %cst_72 [0] : vector<256x128xf32> to vector<128xf32>
    %103 = vector.shape_cast %102 : vector<128xf32> to vector<1x128xf32>
    %cst_73 = arith.constant 2.560000e+02 : f32
    %104 = vector.broadcast %cst_73 : f32 to vector<1x128xf32>
    %105 = arith.divf %103, %104 : vector<1x128xf32>
    %106 = vector.broadcast %105 : vector<1x128xf32> to vector<256x128xf32>
    %107 = arith.subf %101, %106 : vector<256x128xf32>
    %108 = arith.mulf %107, %107 : vector<256x128xf32>
    %cst_74 = arith.constant dense<0.000000e+00> : vector<128xf32>
    %109 = vector.multi_reduction <add>, %108, %cst_74 [0] : vector<256x128xf32> to vector<128xf32>
    %110 = vector.shape_cast %109 : vector<128xf32> to vector<1x128xf32>
    %cst_75 = arith.constant 2.560000e+02 : f32
    %111 = vector.broadcast %cst_75 : f32 to vector<1x128xf32>
    %112 = arith.divf %110, %111 : vector<1x128xf32>
    %cst_76 = arith.constant 9.99999974E-6 : f32
    %113 = vector.broadcast %cst_76 : f32 to vector<1x128xf32>
    %114 = arith.addf %112, %113 : vector<1x128xf32>
    %115 = math.rsqrt %114 : vector<1x128xf32>
    %116 = vector.broadcast %115 : vector<1x128xf32> to vector<256x128xf32>
    %117 = arith.mulf %107, %116 : vector<256x128xf32>
    %c0_77 = arith.constant 0 : index
    %c0_78 = arith.constant 0 : index
    %118 = vector.load %arg6[%c0_77, %c0_78] : memref<1x128xf32, #tpu.memory_space<vmem>>, vector<1x128xf32>
    %119 = vector.broadcast %118 : vector<1x128xf32> to vector<256x128xf32>
    %120 = arith.mulf %117, %119 : vector<256x128xf32>
    %c0_79 = arith.constant 0 : index
    %c0_80 = arith.constant 0 : index
    %121 = vector.load %arg7[%c0_79, %c0_80] : memref<1x128xf32, #tpu.memory_space<vmem>>, vector<1x128xf32>
    %122 = vector.broadcast %121 : vector<1x128xf32> to vector<256x128xf32>
    %123 = arith.addf %120, %122 : vector<256x128xf32>
    %124 = vector.extract_strided_slice %123 {offsets = [0, 0], sizes = [256, 4], strides = [1, 1]} : vector<256x128xf32> to vector<256x4xf32>
    %125 = vector.extract_strided_slice %1 {offsets = [1, 1, 0], sizes = [16, 16, 4], strides = [1, 1, 1]} : vector<18x18x4xf32> to vector<16x16x4xf32>
    %126 = vector.shape_cast %125 : vector<16x16x4xf32> to vector<256x4xf32>
    %127 = arith.addf %126, %124 : vector<256x4xf32>
    %128 = vector.shape_cast %127 : vector<256x4xf32> to vector<16x16x4xf32>
    %c0_81 = arith.constant 0 : index
    %c0_82 = arith.constant 0 : index
    %c0_83 = arith.constant 0 : index
    %c0_84 = arith.constant 0 : index
    %129 = vector.load %arg8[%c0_81, %c0_82, %c0_83, %c0_84] : memref<1x16x16x4xf32, #tpu.memory_space<vmem>>, vector<1x16x16x4xf32>
    %130 = vector.shape_cast %129 : vector<1x16x16x4xf32> to vector<16x16x4xf32>
    %131 = vector.shape_cast %128 : vector<16x16x4xf32> to vector<1x16x16x4xf32>
    tpu.vector_store %arg8[%c0_81, %c0_82, %c0_83, %c0_84], %131 {strides = array<i32>} : memref<1x16x16x4xf32, #tpu.memory_space<vmem>>, vector<1x16x16x4xf32>,
    return
  }
  func.func @transform_0(%arg0: i32) -> (i32, i32, i32, i32) {
    %c0_i32 = arith.constant 0 : i32
    %c0_i32_0 = arith.constant 0 : i32
    %c0_i32_1 = arith.constant 0 : i32
    %c0_i32_2 = arith.constant 0 : i32
    return %arg0, %c0_i32, %c0_i32_0, %c0_i32_1 : i32, i32, i32, i32
  }
  func.func @transform_1(%arg0: i32) -> (i32, i32) {
    %c0_i32 = arith.constant 0 : i32
    %c0_i32_0 = arith.constant 0 : i32
    %c0_i32_1 = arith.constant 0 : i32
    return %c0_i32, %c0_i32_0 : i32, i32
  }
  func.func @transform_2(%arg0: i32) -> (i32, i32) {
    %c0_i32 = arith.constant 0 : i32
    %c0_i32_0 = arith.constant 0 : i32
    %c0_i32_1 = arith.constant 0 : i32
    return %c0_i32, %c0_i32_0 : i32, i32
  }
  func.func @transform_3(%arg0: i32) -> (i32, i32) {
    %c0_i32 = arith.constant 0 : i32
    %c0_i32_0 = arith.constant 0 : i32
    %c0_i32_1 = arith.constant 0 : i32
    return %c0_i32, %c0_i32_0 : i32, i32
  }
  func.func @transform_4(%arg0: i32) -> (i32, i32) {
    %c0_i32 = arith.constant 0 : i32
    %c0_i32_0 = arith.constant 0 : i32
    %c0_i32_1 = arith.constant 0 : i32
    return %c0_i32, %c0_i32_0 : i32, i32
  }
  func.func @transform_5(%arg0: i32) -> (i32, i32) {
    %c0_i32 = arith.constant 0 : i32
    %c0_i32_0 = arith.constant 0 : i32
    %c0_i32_1 = arith.constant 0 : i32
    return %c0_i32, %c0_i32_0 : i32, i32
  }
  func.func @transform_6(%arg0: i32) -> (i32, i32) {
    %c0_i32 = arith.constant 0 : i32
    %c0_i32_0 = arith.constant 0 : i32
    %c0_i32_1 = arith.constant 0 : i32
    return %c0_i32, %c0_i32_0 : i32, i32
  }
  func.func @transform_7(%arg0: i32) -> (i32, i32, i32, i32) {
    %c0_i32 = arith.constant 0 : i32
    %c0_i32_0 = arith.constant 0 : i32
    %c0_i32_1 = arith.constant 0 : i32
    %c0_i32_2 = arith.constant 0 : i32
    return %arg0, %c0_i32, %c0_i32_0, %c0_i32_1 : i32, i32, i32, i32
  }
}

</mosaic_0001>

<bundles_post_ra>
// kernel: tpu_custom_call.1
= control target key start
LH: loop header
LB: loop body
LE: loop exit
PB: predicated region body
PF: predicated region fallthrough
CT: control target
= control target key end

     0   :  { %s4599_s24 = smov 0   ;;  %s7779_s0 = inlined_call_operand.vmem [shape: f32[2,18,18,4], index: 0, kind: input, shape index: {}]   ;;  %s7780_s1 = inlined_call_operand.vmem [shape: bf16[128,128], index: 1, kind: input, shape index: {}]   ;;  %s7781_s2 = inlined_call_operand.vmem [shape: f32[1,128], index: 2, kind: input, shape index: {}]   ;;  %s7782_s3 = inlined_call_operand.vmem [shape: f32[1,128], index: 3, kind: input, shape index: {}]   ;;  %s7783_s4 = inlined_call_operand.vmem [shape: bf16[128,128], index: 4, kind: input, shape index: {}]   ;;  %s7784_s5 = inlined_call_operand.vmem [shape: f32[1,128], index: 5, kind: input, shape index: {}]   ;;  %s7785_s6 = inlined_call_operand.vmem [shape: f32[1,128], index: 6, kind: input, shape index: {}]   ;;  %s7786_s7 = inlined_call_operand.vmem [shape: f32[2,16,16,4], index: 7, kind: output, shape index: {}]  }
   0x1 LB: > { %s4324_s25 = sadd.s32 4294967295, %s4548_s24   ;;  %p4328_p0 = scmp.ge.s32.totalorder %s4548_s24, 1  ;;  %s4548_s24 = sphi %s4599_s24, %s17_s24  }
   0x2   : > { %p237_p1 = scmp.lt.s32.totalorder %s4548_s24, 3 }
   0x4   : > { %p238_p2 = pnand %p4328_p0, %p237_p1 }
   0x6   : > { %241 = sbr.rel (%p238_p2) target bundleno = 2035 (0x7f3), region = 48 }
   0xd   : > { %p4609_p3 = scmp.lt.s32.totalorder %s4324_s25, 1  ;;  %vm334_vm0 = vcmask 1047840   ;;  %v7787_v0 = vmov 0.0   ;;  %vm367_vm1 = vcmask 31744   ;;  %vm448_vm2 = vcmask 1046528   ;;  %s4551_s8 = smov 4  }
   0xe   : > { %337 = vst.msk [vmem:[#allocation2 + $0x10] sm:$0xff] %vm334_vm0, %v7787_v0  ;;  %335 = vst.msk [vmem:[#allocation2] sm:$0xff] %vm334_vm0, %v7787_v0  ;;  %vm658_vm3 = vcmask 1045504   ;;  %s4552_s9 = smov 8   ;;  %s4553_s10 = smov 12   ;;  %vm625_vm4 = vcmask 64544  }
   0xf   : > { %336 = vst.msk [vmem:[#allocation2 + $0x8] sm:$0xff] %vm334_vm0, %v7787_v0  ;;  %338 = vst.msk [vmem:[#allocation2 + $0x18] sm:$0xff] %vm334_vm0, %v7787_v0  ;;  %s7973_s25 = smov (!%p4609_p3, %s4324_s25), 1  ;;  %s4554_s11 = smov 16   ;;  %vm835_vm5 = vcmask 97344   ;;  %vm966_vm6 = vcmask 130144  }
  0x10   : > { %339 = vst.msk [vmem:[#allocation2 + $0x20] sm:$0xff] %vm334_vm0, %v7787_v0  ;;  %340 = vst.msk [vmem:[#allocation2 + $0x28] sm:$0xff] %vm334_vm0, %v7787_v0  ;;  %s4499_s27 = smul.u32 432, %s7973_s25  ;;  %s4555_s16 = smov 20   ;;  %vm1133_vm7 = vcmask 162944   ;;  %vm1267_vm8 = vcmask 195744  }
  0x11   : > { %341 = vst.msk [vmem:[#allocation2 + $0x30] sm:$0xff] %vm334_vm0, %v7787_v0  ;;  %342 = vst.msk [vmem:[#allocation2 + $0x38] sm:$0xff] %vm334_vm0, %v7787_v0  ;;  %s4556_s21 = smov 24   ;;  %s4557_s28 = smov 28   ;;  %vm1398_vm9 = vcmask 228544   ;;  %vm1533_vm10 = vcmask 261344  }
  0x12   : > { %343 = vst.msk [vmem:[#allocation2 + $0x40] sm:$0xff] %vm334_vm0, %v7787_v0  ;;  %344 = vst.msk [vmem:[#allocation2 + $0x48] sm:$0xff] %vm334_vm0, %v7787_v0  ;;  %s4695_s30 = scalar_lea.vmem %s7779_s0, %s4499_s27  ;;  %s4558_s15 = smov 32   ;;  %vm1667_vm11 = vcmask 294144   ;;  %vm2260_vm12 = vcmask 25600   ;;  %vm2266_vm13 = vcmask 24576  }
  0x13   : > { %345 = vst.msk [vmem:[#allocation2 + $0x50] sm:$0xff] %vm334_vm0, %v7787_v0  ;;  %346 = vst.msk [vmem:[#allocation2 + $0x58] sm:$0xff] %vm334_vm0, %v7787_v0  ;;  %v4698_v1 = vld [vmem:[%s4695_s30 + $0x18] sm:$0xff]  ;;  %v4701_v2 = vld [vmem:[%s4695_s30 + $0x20] sm:$0xff] }
  0x14   : > { %347 = vst.msk [vmem:[#allocation2 + $0x60] sm:$0xff] %vm334_vm0, %v7787_v0  ;;  %348 = vst.msk [vmem:[#allocation2 + $0x68] sm:$0xff] %vm334_vm0, %v7787_v0  ;;  %v4704_v3 = vld [vmem:[%s4695_s30] sm:$0xff]  ;;  %v454_v4 = vrot.slane %v4698_v1, 1  ;;  %v455_v5 = vrot.slane %v4701_v2, 1  ;;  %v4709_v6 = vld [vmem:[%s4695_s30 + $0x8] sm:$0xff] }
  0x15   : > { %349 = vst.msk [vmem:[#allocation2 + $0x70] sm:$0xff] %vm334_vm0, %v7787_v0  ;;  %350 = vst.msk [vmem:[#allocation2 + $0x78] sm:$0xff] %vm334_vm0, %v7787_v0  ;;  %v449_v7 = vrot.slane %v4704_v3, 1  ;;  %v4713_v8 = vld [vmem:[%s4695_s30 + $0x28] sm:$0x3]  ;;  %v450_v9 = vrot.slane %v4709_v6, 1 }
  0x16   : > { %351 = vst.msk [vmem:[#allocation2 + $0x80] sm:$0xff] %vm334_vm0, %v7787_v0  ;;  %352 = vst.msk [vmem:[#allocation2 + $0x88] sm:$0xff] %vm334_vm0, %v7787_v0  ;;  %v457_v10 = vrot.slane %v4713_v8, 1  ;;  %v4724_v11 = vld [vmem:[%s4695_s30 + $0x10] sm:$0x3]  ;;  %v4727_v12 = vld [vmem:[%s4695_s30 + $0x38] sm:$0xff]  ;;  %v4735_v14 = vsel %vm448_vm2, %v454_v4, %v455_v5 }
  0x17   : > { %353 = vst.msk [vmem:[#allocation2 + $0x90] sm:$0xff] %vm334_vm0, %v7787_v0  ;;  %354 = vst.msk [vmem:[#allocation2 + $0x98] sm:$0xff] %vm334_vm0, %v7787_v0  ;;  %v4730_v13 = vld [vmem:[%s4695_s30 + $0x30] sm:$0xff]  ;;  %v452_v15 = vrot.slane %v4724_v11, 1  ;;  %v4739_v16 = vld [vmem:[%s4695_s30 + $0x40] sm:$0x3]  ;;  %533 = vrot.lane.b32.xlu1 %v4735_v14, %s4551_s8  ;;  %v451_v18 = vsel %vm448_vm2, %v449_v7, %v450_v9 }
  0x18   : > { %355 = vst.msk [vmem:[#allocation2 + $0xa0] sm:$0xff] %vm334_vm0, %v7787_v0  ;;  %356 = vst.msk [vmem:[#allocation2 + $0xa8] sm:$0xff] %vm334_vm0, %v7787_v0  ;;  %v4742_v17 = vld [vmem:[%s4695_s30 + $0x50] sm:$0xff]  ;;  %v4752_v19 = vld [vmem:[%s4695_s30 + $0x48] sm:$0xff]  ;;  %529 = vrot.lane.b32.xlu0 %v451_v18, %s4551_s8  ;;  %v4761_v21 = vsel %vm448_vm2, %v455_v5, %v457_v10  ;;  %v460_v22 = vrot.slane %v4727_v12, 1  ;;  %v462_v23 = vrot.slane %v4739_v16, 1 }
  0x19   : > { %357 = vst.msk [vmem:[#allocation2 + $0xb0] sm:$0xff] %vm334_vm0, %v7787_v0  ;;  %358 = vst.msk [vmem:[#allocation2 + $0xb8] sm:$0xff] %vm334_vm0, %v7787_v0  ;;  %v4755_v20 = vld [vmem:[%s4695_s30 + $0x68] sm:$0xff]  ;;  %v4766_v24 = vld [vmem:[%s4695_s30 + $0x60] sm:$0xff]  ;;  %v453_v26 = vsel %vm448_vm2, %v450_v9, %v452_v15  ;;  %v459_v27 = vrot.slane %v4730_v13, 1  ;;  %v465_v35 = vrot.slane %v4742_v17, 1 }
  0x1a   : > { %359 = vst.msk [vmem:[#allocation2 + $0xc0] sm:$0xff] %vm334_vm0, %v7787_v0  ;;  %360 = vst.msk [vmem:[#allocation2 + $0xc8] sm:$0xff] %vm334_vm0, %v7787_v0  ;;  %v4769_v25 = vld [vmem:[%s4695_s30 + $0x80] sm:$0xff]  ;;  %v4778_v28 = vld [vmem:[%s4695_s30 + $0x58] sm:$0x3]  ;;  %v4809_v34 = vsel %vm448_vm2, %v460_v22, %v462_v23  ;;  %v464_v40 = vrot.slane %v4752_v19, 1 }
  0x1b   : > { %361 = vst.msk [vmem:[#allocation2 + $0xd0] sm:$0xff] %vm334_vm0, %v7787_v0  ;;  %362 = vst.msk [vmem:[#allocation2 + $0xd8] sm:$0xff] %vm334_vm0, %v7787_v0  ;;  %v4781_v29 = vld [vmem:[%s4695_s30 + $0x78] sm:$0xff]  ;;  %v4791_v31 = vld [vmem:[%s4695_s30 + $0x90] sm:$0xff]  ;;  %535 = vrot.lane.b32.xlu1 %v4761_v21, %s4551_s8  ;;  %v467_v36 = vrot.slane %v4778_v28, 1  ;;  %v4824_v39 = vsel %vm448_vm2, %v459_v27, %v460_v22  ;;  %v470_v49 = vrot.slane %v4755_v20, 1 }
  0x1c   : > { %363 = vst.msk [vmem:[#allocation2 + $0xe0] sm:$0xff] %vm334_vm0, %v7787_v0  ;;  %364 = vst.msk [vmem:[#allocation2 + $0xe8] sm:$0xff] %vm334_vm0, %v7787_v0  ;;  %v4788_v30 = vld [vmem:[%s4695_s30 + $0x98] sm:$0xff]  ;;  %v4798_v32 = vld [vmem:[%s4695_s30 + $0xb0] sm:$0xff]  ;;  %531 = vrot.lane.b32.xlu0 %v453_v26, %s4551_s8  ;;  %v4880_v53 = vsel %vm448_vm2, %v464_v40, %v465_v35  ;;  %v469_v54 = vrot.slane %v4766_v24, 1  ;;  %v475_v61 = vrot.slane %v4769_v25, 1 }
  0x1d   : > { %365 = vst.msk [vmem:[#allocation2 + $0xf0] sm:$0xff] %vm334_vm0, %v7787_v0  ;;  %366 = vst.msk [vmem:[#allocation2 + $0xf8] sm:$0xff] %vm334_vm0, %v7787_v0  ;;  %v4801_v33 = vld [vmem:[%s4695_s30 + $0xa8] sm:$0xff]  ;;  %v4814_v37 = vld [vmem:[%s4695_s30 + $0x70] sm:$0x3]  ;;  %v4865_v48 = vsel %vm448_vm2, %v465_v35, %v467_v36  ;;  %v474_v9 = vrot.slane %v4781_v29, 1 }
  0x1e   : > { %2258 = vst.msk [vmem:[#allocation3] sm:$0xff] %vm367_vm1, %v7787_v0  ;;  %2259 = vst.msk [vmem:[#allocation3 + $0x8] sm:$0xff] %vm367_vm1, %v7787_v0  ;;  %v4817_v38 = vld [vmem:[%s4695_s30 + $0xc8] sm:$0xff]  ;;  %v4828_v41 = vld [vmem:[%s4695_s30 + $0xc0] sm:$0xff]  ;;  %v472_v50 = vrot.slane %v4814_v37, 1  ;;  %v4929_v7 = vsel %vm448_vm2, %v469_v54, %v470_v49  ;;  %v480_v18 = vrot.slane %v4788_v30, 1 }
  0x1f   : > { %2263 = vst.msk [vmem:[#allocation3 + $0x198] sm:$0xff] %vm367_vm1, %v7787_v0  ;;  %2264 = vst.msk [vmem:[#allocation3 + $0x1a0] sm:$0xff] %vm367_vm1, %v7787_v0  ;;  %v4831_v42 = vld [vmem:[%s4695_s30 + $0xe0] sm:$0xff]  ;;  %v4834_v43 = vld [vmem:[%s4695_s30 + $0xd8] sm:$0xff]  ;;  %539 = vrot.lane.b32.xlu1 %v4809_v34, %s4551_s8  ;;  %v4949_v23 = vsel %vm448_vm2, %v474_v9, %v475_v61  ;;  %v479_v26 = vrot.slane %v4791_v31, 1  ;;  %v485_v35 = vrot.slane %v4798_v32, 1 }
  0x20   : > { %370 = vst.msk [vmem:[#allocation2 + $0x10] sm:$0xff] %vm367_vm1, %v4698_v1  ;;  %368 = vst.msk [vmem:[#allocation2] sm:$0xff] %vm367_vm1, %v4704_v3  ;;  %v4839_v44 = vld [vmem:[%s4695_s30 + $0xf8] sm:$0xff]  ;;  %v4842_v45 = vld [vmem:[%s4695_s30 + $0xf0] sm:$0xff]  ;;  %537 = vrot.lane.b32.xlu0 %v4824_v39, %s4551_s8  ;;  %v4911_v60 = vsel %vm448_vm2, %v470_v49, %v472_v50  ;;  %v484_v50 = vrot.slane %v4801_v33, 1 }
  0x21   : > { %371 = vst.msk [vmem:[#allocation2 + $0x18] sm:$0xff] %vm367_vm1, %v4701_v2  ;;  %369 = vst.msk [vmem:[#allocation2 + $0x8] sm:$0xff] %vm367_vm1, %v4709_v6  ;;  %v4853_v46 = vld [vmem:[%s4695_s30 + $0x110] sm:$0xff]  ;;  %v4856_v47 = vld [vmem:[%s4695_s30 + $0x108] sm:$0xff]  ;;  %v4965_v49 = vsel %vm448_vm2, %v479_v26, %v480_v18 }
  0x22   : > { %7865 = vst [vmem:[#allocation4_spill] sm:$0xff] %v4735_v14  ;;  %372 = vst.msk [vmem:[#allocation2 + $0x20] sm:$0xff] %vm367_vm1, %v4730_v13  ;;  %v4870_v51 = vld [vmem:[%s4695_s30 + $0x128] sm:$0xff]  ;;  %v4873_v52 = vld [vmem:[%s4695_s30 + $0x120] sm:$0xff]  ;;  %v4978_v9 = vsel %vm448_vm2, %v484_v50, %v485_v35  ;;  %v494_v50 = vrot.slane %v4834_v43, 1 }
  0x23   : > { %373 = vst.msk [vmem:[#allocation2 + $0x28] sm:$0xff] %vm367_vm1, %v4727_v12  ;;  %375 = vst.msk [vmem:[#allocation2 + $0x38] sm:$0xff] %vm367_vm1, %v4742_v17  ;;  %v4884_v55 = vld [vmem:[%s4695_s30 + $0x88] sm:$0x3]  ;;  %v4887_v56 = vld [vmem:[%s4695_s30 + $0x140] sm:$0xff]  ;;  %543 = vrot.lane.b32.xlu1 %v4865_v48, %s4551_s8 }
  0x24   : > { %7866 = vst [vmem:[#allocation5_spill] sm:$0xff] %v4761_v21  ;;  %374 = vst.msk [vmem:[#allocation2 + $0x30] sm:$0xff] %vm367_vm1, %v4752_v19  ;;  %v4894_v57 = vld [vmem:[%s4695_s30 + $0x138] sm:$0xff]  ;;  %v4904_v59 = vld [vmem:[%s4695_s30 + $0x150] sm:$0xff]  ;;  %541 = vrot.lane.b32.xlu0 %v4880_v53, %s4551_s8  ;;  %v477_v62 = vrot.slane %v4884_v55, 1 }
  0x25   : > { %377 = vst.msk [vmem:[#allocation2 + $0x48] sm:$0xff] %vm367_vm1, %v4755_v20  ;;  %376 = vst.msk [vmem:[#allocation2 + $0x40] sm:$0xff] %vm367_vm1, %v4766_v24  ;;  %v4901_v58 = vld [vmem:[%s4695_s30 + $0x158] sm:$0xff]  ;;  %v4916_v63 = vld [vmem:[%s4695_s30 + $0xa0] sm:$0x3] }
  0x26   : > { %379 = vst.msk [vmem:[#allocation2 + $0x58] sm:$0xff] %vm367_vm1, %v4769_v25  ;;  %378 = vst.msk [vmem:[#allocation2 + $0x50] sm:$0xff] %vm367_vm1, %v4781_v29  ;;  %v4919_v4 = vld [vmem:[%s4695_s30 + $0x170] sm:$0xff]  ;;  %v4922_v5 = vld [vmem:[%s4695_s30 + $0x168] sm:$0xff]  ;;  %v4944_v15 = vsel %vm448_vm2, %v475_v61, %v477_v62  ;;  %v482_v22 = vrot.slane %v4916_v63, 1  ;;  %v490_v61 = vrot.slane %v4817_v38, 1 }
  0x27   : > { %380 = vst.msk [vmem:[#allocation2 + $0x60] sm:$0xff] %vm367_vm1, %v4791_v31  ;;  %381 = vst.msk [vmem:[#allocation2 + $0x68] sm:$0xff] %vm367_vm1, %v4788_v30  ;;  %547 = vrot.lane.b32.xlu1 %v4911_v60, %s4551_s8  ;;  %v4939_v10 = vld [vmem:[%s4695_s30 + $0xb8] sm:$0x3]  ;;  %v4962_v40 = vld [vmem:[%s4695_s30 + $0xd0] sm:$0x3] }
  0x28   : > { %7867 = vst [vmem:[#allocation6_spill] sm:$0xff] %v4809_v34  ;;  %382 = vst.msk [vmem:[#allocation2 + $0x70] sm:$0xff] %vm367_vm1, %v4801_v33  ;;  %545 = vrot.lane.b32.xlu0 %v4929_v7, %s4551_s8  ;;  %v4957_v27 = vsel %vm448_vm2, %v480_v18, %v482_v22  ;;  %v487_v36 = vrot.slane %v4939_v10, 1  ;;  %v492_v62 = vrot.slane %v4962_v40, 1  ;;  %v489_v18 = vrot.slane %v4828_v41, 1 }
  0x29   : > { %383 = vst.msk [vmem:[#allocation2 + $0x78] sm:$0xff] %vm367_vm1, %v4798_v32  ;;  %7868 = vst [vmem:[#allocation7_spill] sm:$0xff] %v4824_v39  ;;  %v4982_v22 = vld [vmem:[%s4695_s30 + $0xe8] sm:$0x3] }
  0x2a   : > { %7869 = vst [vmem:[#allocation8_spill] sm:$0xff] %v4831_v42  ;;  %7870 = vst [vmem:[#allocation9_spill] sm:$0xff] %v4834_v43  ;;  %v4973_v54 = vsel %vm448_vm2, %v485_v35, %v487_v36  ;;  %v4989_v26 = vsel %vm448_vm2, %v490_v61, %v492_v62  ;;  %v495_v36 = vrot.slane %v4831_v42, 1  ;;  %v497_v0 = vrot.slane %v4982_v22, 1 }
  0x2b   : > { %385 = vst.msk [vmem:[#allocation2 + $0x88] sm:$0xff] %vm367_vm1, %v4817_v38  ;;  %7871 = vst [vmem:[#allocation10_spill] sm:$0xff] %v4839_v44  ;;  %551 = vrot.lane.b32.xlu1 %v4944_v15, %s4551_s8  ;;  %v4994_v35 = vsel %vm448_vm2, %v489_v18, %v490_v61  ;;  %v499_v18 = vrot.slane %v4842_v45, 1 }
  0x2c   : > { %7872 = vst [vmem:[#allocation11_spill] sm:$0xff] %v4842_v45  ;;  %384 = vst.msk [vmem:[#allocation2 + $0x80] sm:$0xff] %vm367_vm1, %v4828_v41  ;;  %549 = vrot.lane.b32.xlu0 %v4949_v23, %s4551_s8  ;;  %v5005_v62 = vsel %vm448_vm2, %v495_v36, %v497_v0  ;;  %v5010_v61 = vsel %vm448_vm2, %v494_v50, %v495_v36  ;;  %v504_v36 = vrot.slane %v4856_v47, 1  ;;  %v318_v50 = vld [vmem:[%s4695_s30 + $0x130] sm:$0x3] }
  0x2d   : > { %386 = vst.msk [vmem:[#allocation2 + $0x90] sm:$0xff] %vm367_vm1, %v4834_v43  ;;  %387 = vst.msk [vmem:[#allocation2 + $0x98] sm:$0xff] %vm367_vm1, %v4831_v42  ;;  %v500_v42 = vrot.slane %v4839_v44, 1  ;;  %v315_v43 = vld [vmem:[%s4695_s30 + $0x118] sm:$0x3] }
  0x2e   : > { %7873 = vst [vmem:[#allocation12_spill] sm:$0xff] %v4853_v46  ;;  %7874 = vst [vmem:[#allocation13_spill] sm:$0xff] %v4856_v47 }
  0x2f   : > { %388 = vst.msk [vmem:[#allocation2 + $0xa0] sm:$0xff] %vm367_vm1, %v4842_v45  ;;  %389 = vst.msk [vmem:[#allocation2 + $0xa8] sm:$0xff] %vm367_vm1, %v4839_v44  ;;  %555 = vrot.lane.b32.xlu1 %v4957_v27, %s4551_s8  ;;  %v505_v44 = vrot.slane %v4853_v46, 1 }
  0x30   : > { %7875 = vst [vmem:[#allocation14_spill] sm:$0xff] %v4865_v48  ;;  %7876 = vst [vmem:[#allocation15_spill] sm:$0xff] %v4870_v51  ;;  %553 = vrot.lane.b32.xlu0 %v4965_v49, %s4551_s8 }
  0x31   : > { %7877 = vst [vmem:[#allocation16_spill] sm:$0xff] %v4873_v52  ;;  %390 = vst.msk [vmem:[#allocation2 + $0xb0] sm:$0xff] %vm367_vm1, %v4856_v47 }
  0x32   : > { %391 = vst.msk [vmem:[#allocation2 + $0xb8] sm:$0xff] %vm367_vm1, %v4853_v46  ;;  %7878 = vst [vmem:[#allocation17_spill] sm:$0xff] %v4880_v53  ;;  %v512_v46 = vrot.slane %v318_v50, 1 }
  0x33   : > { %7879 = vst [vmem:[#allocation18_spill] sm:$0xff] %v4887_v56  ;;  %392 = vst.msk [vmem:[#allocation2 + $0xc0] sm:$0xff] %vm367_vm1, %v4873_v52  ;;  %559 = vrot.lane.b32.xlu1 %v4973_v54, %s4551_s8 }
  0x34   : > { %393 = vst.msk [vmem:[#allocation2 + $0xc8] sm:$0xff] %vm367_vm1, %v4870_v51  ;;  %7880 = vst [vmem:[#allocation19_spill] sm:$0xff] %v4894_v57  ;;  %557 = vrot.lane.b32.xlu0 %v4978_v9, %s4551_s8 }
  0x35   : > { %395 = vst.msk [vmem:[#allocation2 + $0xd8] sm:$0xff] %vm367_vm1, %v4887_v56  ;;  %7881 = vst [vmem:[#allocation20_spill] sm:$0xff] %v4904_v59 }
  0x36   : > { %394 = vst.msk [vmem:[#allocation2 + $0xd0] sm:$0xff] %vm367_vm1, %v4894_v57  ;;  %7882 = vst [vmem:[#allocation21_spill] sm:$0xff] %v4911_v60 }
  0x37   : > { %396 = vst.msk [vmem:[#allocation2 + $0xe0] sm:$0xff] %vm367_vm1, %v4904_v59  ;;  %397 = vst.msk [vmem:[#allocation2 + $0xe8] sm:$0xff] %vm367_vm1, %v4901_v58  ;;  %563 = vrot.lane.b32.xlu1 %v4989_v26, %s4551_s8 }
  0x38   : > { %7883 = vst [vmem:[#allocation22_spill] sm:$0xff] %v4929_v7  ;;  %398 = vst.msk [vmem:[#allocation2 + $0xf0] sm:$0xff] %vm367_vm1, %v4922_v5  ;;  %561 = vrot.lane.b32.xlu0 %v4994_v35, %s4551_s8 }
  0x39   : > { %399 = vst.msk [vmem:[#allocation2 + $0xf8] sm:$0xff] %vm367_vm1, %v4919_v4  ;;  %7884 = vst [vmem:[#allocation23_spill] sm:$0xff] %v4944_v15 }
  0x3a   : > { %7885 = vst [vmem:[#allocation24_spill] sm:$0xff] %v4949_v23  ;;  %7886 = vst [vmem:[#allocation25_spill] sm:$0xff] %v4957_v27 }
  0x3b   : > { %7887 = vst [vmem:[#allocation26_spill] sm:$0xff] %v4962_v40  ;;  %7888 = vst [vmem:[#allocation27_spill] sm:$0xff] %v4965_v49  ;;  %v4998_v40 = vld [vmem:[%s4695_s30 + $0x100] sm:$0x3]  ;;  %567 = vrot.lane.b32.xlu1 %v5005_v62, %s4551_s8 }
  0x3c   : > { %7889 = vst [vmem:[#allocation28_spill] sm:$0xff] %v4973_v54  ;;  %7890 = vst [vmem:[#allocation29_spill] sm:$0xff] %v4978_v9  ;;  %565 = vrot.lane.b32.xlu0 %v5010_v61, %s4551_s8 }
  0x3d   : > { %7891 = vst [vmem:[#allocation30_spill] sm:$0xff] %v4982_v22  ;;  %7892 = vst [vmem:[#allocation31_spill] sm:$0xff] %v4989_v26  ;;  %v502_v22 = vrot.slane %v4998_v40, 1 }
  0x3e   : > { %7893 = vst [vmem:[#allocation32_spill] sm:$0xff] %v4994_v35  ;;  %7894 = vst [vmem:[#allocation33_spill] sm:$0xff] %v4998_v40  ;;  %v507_v35 = vrot.slane %v315_v43, 1  ;;  %v5023_v40 = vsel %vm448_vm2, %v499_v18, %v500_v42  ;;  %v5036_v43 = vsel %vm448_vm2, %v504_v36, %v505_v44  ;;  %v321_v18 = vld [vmem:[%s4695_s30 + $0x148] sm:$0x3] }
  0x3f   : > { %7895 = vst [vmem:[#allocation34_spill] sm:$0xff] %v5005_v62  ;;  %7896 = vst [vmem:[#allocation35_spill] sm:$0xff] %v5010_v61  ;;  %v5019_v0 = vsel %vm448_vm2, %v500_v42, %v502_v22  ;;  %v510_v22 = vrot.slane %v4870_v51, 1  ;;  %v509_v42 = vrot.slane %v4873_v52, 1  ;;  %v517_v51 = vrot.slane %v321_v18, 1 }
  0x40   : > { %7897 = vst [vmem:[#allocation36_spill] sm:$0xff] %v5019_v0  ;;  %7898 = vst [vmem:[#allocation37_spill] sm:$0xff] %v5023_v40  ;;  %571 = vrot.lane.b32.xlu1 %v5019_v0, %s4551_s8  ;;  %569 = vrot.lane.b32.xlu0 %v5023_v40, %s4551_s8  ;;  %v5032_v45 = vsel %vm448_vm2, %v505_v44, %v507_v35  ;;  %v515_v35 = vrot.slane %v4887_v56, 1  ;;  %v514_v44 = vrot.slane %v4894_v57, 1  ;;  %v324_v36 = vld [vmem:[%s4695_s30 + $0x160] sm:$0x3] }
  0x41   : > { %7899 = vst [vmem:[#allocation38_spill] sm:$0xff] %v5032_v45  ;;  %7900 = vst [vmem:[#allocation39_spill] sm:$0xff] %v5036_v43  ;;  %v5045_v47 = vsel %vm448_vm2, %v510_v22, %v512_v46  ;;  %v5049_v50 = vsel %vm448_vm2, %v509_v42, %v510_v22  ;;  %v520_v46 = vrot.slane %v4901_v58, 1  ;;  %v519_v22 = vrot.slane %v4904_v59, 1  ;;  %v327_v42 = vld [vmem:[%s4695_s30 + $0x178] sm:$0x3] }
  0x42   : > { %7901 = vst [vmem:[#allocation40_spill] sm:$0xff] %v5045_v47  ;;  %7902 = vst [vmem:[#allocation41_spill] sm:$0xff] %v5049_v50  ;;  %v5058_v52 = vsel %vm448_vm2, %v515_v35, %v517_v51  ;;  %v5062_v18 = vsel %vm448_vm2, %v514_v44, %v515_v35  ;;  %v525_v51 = vrot.slane %v4919_v4, 1  ;;  %v527_v56 = vrot.slane %v327_v42, 1 }
  0x43   : > { %7903 = vst [vmem:[#allocation42_spill] sm:$0xff] %v5058_v52  ;;  %7904 = vst [vmem:[#allocation43_spill] sm:$0xff] %v5062_v18  ;;  %v524_v35 = vrot.slane %v4922_v5, 1  ;;  %v662_v59 = vrot.slane %v4724_v11, 2 }
  0x44   : > { %575 = vrot.lane.b32.xlu1 %v5032_v45, %s4551_s8  ;;  %573 = vrot.lane.b32.xlu0 %v5036_v43, %s4551_s8  ;;  %v522_v43 = vrot.slane %v324_v36, 1  ;;  %v5075_v36 = vsel %vm448_vm2, %v519_v22, %v520_v46  ;;  %v5083_v44 = vsel %vm448_vm2, %v525_v51, %v527_v56  ;;  %v665_v56 = vrot.slane %v4701_v2, 2 }
  0x45   : > { %7906 = vst [vmem:[#allocation45_spill] sm:$0xff] %v5075_v36  ;;  %7907 = vst [vmem:[#allocation46_spill] sm:$0xff] %v5083_v44  ;;  %v5088_v42 = vsel %vm448_vm2, %v524_v35, %v525_v51  ;;  %v664_v51 = vrot.slane %v4698_v1, 2  ;;  %v670_v35 = vrot.slane %v4727_v12, 2 }
  0x46   : > { %v5071_v57 = vsel %vm448_vm2, %v520_v46, %v522_v43  ;;  %v660_v43 = vrot.slane %v4709_v6, 2  ;;  %7908 = vst [vmem:[#allocation47_spill] sm:$0xff] %v5088_v42  ;;  %v659_v46 = vrot.slane %v4704_v3, 2  ;;  %v667_v6 = vrot.slane %v4713_v8, 2 }
  0x47   : > { %7905 = vst [vmem:[#allocation44_spill] sm:$0xff] %v5071_v57 }
  0x48   : > { %579 = vrot.lane.b32.xlu1 %v5045_v47, %s4551_s8  ;;  %577 = vrot.lane.b32.xlu0 %v5049_v50, %s4551_s8  ;;  %v663_v22 = vsel %vm658_vm3, %v660_v43, %v662_v59  ;;  %v661_v11 = vsel %vm658_vm3, %v659_v46, %v660_v43  ;;  %v668_v3 = vsel %vm658_vm3, %v665_v56, %v667_v6  ;;  %v675_v43 = vrot.slane %v4742_v17, 2  ;;  %v4521_v6 = vld [vmem:[%s7780_s1 + $0x20] sm:$0xff]  }
  0x49   : > { %v666_v59 = vsel %vm658_vm3, %v664_v51, %v665_v56  ;;  %v677_v46 = vrot.slane %v4778_v28, 2  ;;  %v4517_v28 = vld [vmem:[%s7780_s1] sm:$0xff]  }
  0x4a   : > { %4403 = vmatprep.subr.bf16.mxu0 %v4517_v28 }
  0x4b   : > { %v5123_v56 = vsel %vm658_vm3, %v675_v43, %v677_v46  ;;  %4404 = vmatpush3.bf16.msra.mxu0 %v4517_v28 }
  0x4c   : > { %583 = vrot.lane.b32.xlu1 %v5058_v52, %s4551_s8  ;;  %581 = vrot.lane.b32.xlu0 %v5062_v18, %s4551_s8 }
  0x50   : > { %587 = vrot.lane.b32.xlu1 %v5071_v57, %s4551_s8  ;;  %585 = vrot.lane.b32.xlu0 %v5075_v36, %s4551_s8 }
  0x54   : > { %591 = vrot.lane.b32.xlu1 %v5083_v44, %s4551_s8  ;;  %589 = vrot.lane.b32.xlu0 %v5088_v42, %s4551_s8  ;;  %v672_v42 = vrot.slane %v4739_v16, 2  ;;  %v669_v44 = vrot.slane %v4730_v13, 2  ;;  %v674_v16 = vrot.slane %v4752_v19, 2 }
  0x56   : > { %v5110_v8 = vsel %vm658_vm3, %v670_v35, %v672_v42  ;;  %v5126_v42 = vsel %vm658_vm3, %v674_v16, %v675_v43 }
  0x58   : > { %741 = vrot.lane.b32.xlu1 %v663_v22, %s4552_s9  ;;  %739 = vrot.lane.b32.xlu0 %v661_v11, %s4552_s9  ;;  %v5115_v22 = vsel %vm658_vm3, %v669_v44, %v670_v35  ;;  %v4520_v44 = vld [vmem:[%s7780_s1 + $0x18] sm:$0xff]   ;;  %v4522_v11 = vld [vmem:[%s7780_s1 + $0x28] sm:$0xff]  }
  0x5c   : > { %745 = vrot.lane.b32.xlu1 %v668_v3, %s4552_s9  ;;  %743 = vrot.lane.b32.xlu0 %v666_v59, %s4552_s9 }
  0x60   : > { %749 = vrot.lane.b32.xlu1 %v5110_v8, %s4552_s9  ;;  %747 = vrot.lane.b32.xlu0 %v5115_v22, %s4552_s9 }
  0x64   : > { %753 = vrot.lane.b32.xlu1 %v5123_v56, %s4552_s9  ;;  %751 = vrot.lane.b32.xlu0 %v5126_v42, %s4552_s9 }
  0x68   : > { %872 = vrot.lane.b32.xlu1 %v4701_v2, %s4553_s10  ;;  %870 = vrot.lane.b32.xlu0 %v4698_v1, %s4553_s10  ;;  %v4518_v1 = vld [vmem:[%s7780_s1 + $0x8] sm:$0xff]   ;;  %v4519_v2 = vld [vmem:[%s7780_s1 + $0x10] sm:$0xff]  }
  0x69   : > { %4405 = vmatprep.subr.bf16.mxu0 %v4518_v1 }
  0x6a   : > { %4406 = vmatpush3.bf16.msra.mxu0 %v4518_v1 }
  0x6b   : > { %4407 = vmatprep.subr.bf16.mxu0 %v4519_v2 }
  0x6c   : > { %876 = vrot.lane.b32.xlu1 %v4727_v12, %s4553_s10  ;;  %874 = vrot.lane.b32.xlu0 %v4730_v13, %s4553_s10 }
  0x6e   : > { %4408 = vmatpush3.bf16.msra.mxu0 %v4519_v2 }
  0x6f   : > { %4409 = vmatprep.subr.bf16.mxu0 %v4520_v44 }
  0x70   : > { %1039 = vrot.lane.b32.xlu1 %v4761_v21, %s4554_s11  ;;  %1037 = vrot.lane.b32.xlu0 %v4735_v14, %s4554_s11 }
  0x72   : > { %4410 = vmatpush3.bf16.msra.mxu0 %v4520_v44  ;;  %v680_v44 = vrot.slane %v4755_v20, 2 }
  0x73   : > { %4411 = vmatprep.subr.bf16.mxu0 %v4521_v6 }
  0x74   : > { %1043 = vrot.lane.b32.xlu1 %v4809_v34, %s4554_s11  ;;  %1041 = vrot.lane.b32.xlu0 %v4824_v39, %s4554_s11 }
  0x76   : > { %4412 = vmatpush3.bf16.msra.mxu0 %v4521_v6  ;;  %v682_v6 = vrot.slane %v4814_v37, 2 }
  0x77   : > { %4413 = vmatprep.subr.bf16.mxu0 %v4522_v11 }
  0x78   : > { %1173 = vrot.lane.b32.xlu1 %v668_v3, %s4555_s16  ;;  %1171 = vrot.lane.b32.xlu0 %v666_v59, %s4555_s16  ;;  %v4524_v3 = vld [vmem:[%s7780_s1 + $0x38] sm:$0xff]  }
  0x7a   : > { %4414 = vmatpush3.bf16.msra.mxu0 %v4522_v11 }
  0x7c   : > { %1177 = vrot.lane.b32.xlu1 %v5110_v8, %s4555_s16  ;;  %1175 = vrot.lane.b32.xlu0 %v5115_v22, %s4555_s16 }
  0x80   : > { %1304 = vrot.lane.b32.xlu1 %v4727_v12, %s4556_s21  ;;  %1302 = vrot.lane.b32.xlu0 %v4730_v13, %s4556_s21  ;;  %v4523_v12 = vld [vmem:[%s7780_s1 + $0x30] sm:$0xff]  }
  0x81   : > { %4415 = vmatprep.subr.bf16.mxu0 %v4523_v12 }
  0x82   : > { %4416 = vmatpush3.bf16.msra.mxu0 %v4523_v12  ;;  %v679_v12 = vrot.slane %v4766_v24, 2 }
  0x83   : > { %4417 = vmatprep.subr.bf16.mxu0 %v4524_v3 }
  0x84   : > { %1308 = vrot.lane.b32.xlu1 %v4742_v17, %s4556_s21  ;;  %1306 = vrot.lane.b32.xlu0 %v4752_v19, %s4556_s21 }
  0x86   : > { %4418 = vmatpush3.bf16.msra.mxu0 %v4524_v3 }
  0x88   : > { %1439 = vrot.lane.b32.xlu1 %v4809_v34, %s4557_s28  ;;  %1437 = vrot.lane.b32.xlu0 %v4824_v39, %s4557_s28 }
  0x89   : > { %v534_v13 = vpop.permute.xlu1 %533 }
  0x8a   : > { %628 = vst.msk [vmem:[#allocation2 + $0x10] sm:$0xff] %vm625_vm4, %v534_v13  ;;  %v530_v51 = vpop.permute.xlu0 %529 }
  0x8b   : > { %626 = vst.msk [vmem:[#allocation2] sm:$0xff] %vm625_vm4, %v530_v51  ;;  %v683_v51 = vsel %vm658_vm3, %v680_v44, %v682_v6 }
  0x8c   : > { %1443 = vrot.lane.b32.xlu1 %v4865_v48, %s4557_s28  ;;  %1441 = vrot.lane.b32.xlu0 %v4880_v53, %s4557_s28 }
  0x8d   : > { %v536_v35 = vpop.permute.xlu1 %535 }
  0x8e   : > { %629 = vst.msk [vmem:[#allocation2 + $0x18] sm:$0xff] %vm625_vm4, %v536_v35  ;;  %v532_v59 = vpop.permute.xlu0 %531  ;;  %v681_v35 = vsel %vm658_vm3, %v679_v12, %v680_v44 }
  0x8f   : > { %627 = vst.msk [vmem:[#allocation2 + $0x8] sm:$0xff] %vm625_vm4, %v532_v59 }
  0x90   : > { %1573 = vrot.lane.b32.xlu1 %v5110_v8, %s4558_s15  ;;  %1571 = vrot.lane.b32.xlu0 %v5115_v22, %s4558_s15 }
  0x91   : > { %v540_v43 = vpop.permute.xlu1 %539 }
  0x92   : > { %631 = vst.msk [vmem:[#allocation2 + $0x28] sm:$0xff] %vm625_vm4, %v540_v43  ;;  %v538_v46 = vpop.permute.xlu0 %537 }
  0x93   : > { %630 = vst.msk [vmem:[#allocation2 + $0x20] sm:$0xff] %vm625_vm4, %v538_v46 }
  0x94   : > { %1577 = vrot.lane.b32.xlu1 %v5123_v56, %s4558_s15  ;;  %1575 = vrot.lane.b32.xlu0 %v5126_v42, %s4558_s15 }
  0x95   : > { %v544_v16 = vpop.permute.xlu1 %543 }
  0x96   : > { %633 = vst.msk [vmem:[#allocation2 + $0x38] sm:$0xff] %vm625_vm4, %v544_v16  ;;  %v542_v28 = vpop.permute.xlu0 %541 }
  0x97   : > { %632 = vst.msk [vmem:[#allocation2 + $0x30] sm:$0xff] %vm625_vm4, %v542_v28  ;;  %v685_v28 = vrot.slane %v4769_v25, 2 }
  0x98   : > { %880 = vrot.lane.b32.xlu1 %v4742_v17, %s4553_s10  ;;  %878 = vrot.lane.b32.xlu0 %v4752_v19, %s4553_s10 }
  0x99   : > { %v548_v8 = vpop.permute.xlu1 %547 }
  0x9a   : > { %635 = vst.msk [vmem:[#allocation2 + $0x48] sm:$0xff] %vm625_vm4, %v548_v8  ;;  %v546_v22 = vpop.permute.xlu0 %545  ;;  %v687_v8 = vrot.slane %v4884_v55, 2 }
  0x9b   : > { %634 = vst.msk [vmem:[#allocation2 + $0x40] sm:$0xff] %vm625_vm4, %v546_v22 }
  0x9c   : > { %884 = vrot.lane.b32.xlu1 %v4755_v20, %s4553_s10  ;;  %882 = vrot.lane.b32.xlu0 %v4766_v24, %s4553_s10 }
  0x9d   : > { %v552_v1 = vpop.permute.xlu1 %551 }
  0x9e   : > { %637 = vst.msk [vmem:[#allocation2 + $0x58] sm:$0xff] %vm625_vm4, %v552_v1  ;;  %v550_v2 = vpop.permute.xlu0 %549  ;;  %v684_v1 = vrot.slane %v4781_v29, 2 }
  0x9f   : > { %636 = vst.msk [vmem:[#allocation2 + $0x50] sm:$0xff] %vm625_vm4, %v550_v2 }
  0xa0   : > { %1047 = vrot.lane.b32.xlu1 %v4865_v48, %s4554_s11  ;;  %1045 = vrot.lane.b32.xlu0 %v4880_v53, %s4554_s11  ;;  %v686_v44 = vsel %vm658_vm3, %v684_v1, %v685_v28 }
  0xa1   : > { %v556_v17 = vpop.permute.xlu1 %555 }
  0xa2   : > { %639 = vst.msk [vmem:[#allocation2 + $0x68] sm:$0xff] %vm625_vm4, %v556_v17  ;;  %v554_v19 = vpop.permute.xlu0 %553  ;;  %v688_v17 = vsel %vm658_vm3, %v685_v28, %v687_v8 }
  0xa3   : > { %638 = vst.msk [vmem:[#allocation2 + $0x60] sm:$0xff] %vm625_vm4, %v554_v19 }
  0xa4   : > { %1051 = vrot.lane.b32.xlu1 %v4911_v60, %s4554_s11  ;;  %1049 = vrot.lane.b32.xlu0 %v4929_v7, %s4554_s11 }
  0xa5   : > { %v560_v11 = vpop.permute.xlu1 %559 }
  0xa6   : > { %641 = vst.msk [vmem:[#allocation2 + $0x78] sm:$0xff] %vm625_vm4, %v560_v11  ;;  %v558_v13 = vpop.permute.xlu0 %557 }
  0xa7   : > { %640 = vst.msk [vmem:[#allocation2 + $0x70] sm:$0xff] %vm625_vm4, %v558_v13 }
  0xa8   : > { %1181 = vrot.lane.b32.xlu1 %v5123_v56, %s4555_s16  ;;  %1179 = vrot.lane.b32.xlu0 %v5126_v42, %s4555_s16 }
  0xa9   : > { %v564_v3 = vpop.permute.xlu1 %563 }
  0xaa   : > { %643 = vst.msk [vmem:[#allocation2 + $0x88] sm:$0xff] %vm625_vm4, %v564_v3  ;;  %v562_v37 = vpop.permute.xlu0 %561 }
  0xab   : > { %642 = vst.msk [vmem:[#allocation2 + $0x80] sm:$0xff] %vm625_vm4, %v562_v37 }
  0xac   : > { %1185 = vrot.lane.b32.xlu1 %v683_v51, %s4555_s16  ;;  %1183 = vrot.lane.b32.xlu0 %v681_v35, %s4555_s16 }
  0xad   : > { %v568_v59 = vpop.permute.xlu1 %567 }
  0xae   : > { %645 = vst.msk [vmem:[#allocation2 + $0x98] sm:$0xff] %vm625_vm4, %v568_v59  ;;  %v566_v56 = vpop.permute.xlu0 %565 }
  0xaf   : > { %644 = vst.msk [vmem:[#allocation2 + $0x90] sm:$0xff] %vm625_vm4, %v566_v56 }
  0xb0   : > { %1312 = vrot.lane.b32.xlu1 %v4755_v20, %s4556_s21  ;;  %1310 = vrot.lane.b32.xlu0 %v4766_v24, %s4556_s21 }
  0xb2   : > { %v572_v42 = vpop.permute.xlu1 %571  ;;  %v570_v43 = vpop.permute.xlu0 %569 }
  0xb3   : > { %647 = vst.msk [vmem:[#allocation2 + $0xa8] sm:$0xff] %vm625_vm4, %v572_v42  ;;  %646 = vst.msk [vmem:[#allocation2 + $0xa0] sm:$0xff] %vm625_vm4, %v570_v43  ;;  %v690_v42 = vrot.slane %v4788_v30, 2  ;;  %v692_v43 = vrot.slane %v4916_v63, 2 }
  0xb4   : > { %1316 = vrot.lane.b32.xlu1 %v4769_v25, %s4556_s21  ;;  %1314 = vrot.lane.b32.xlu0 %v4781_v29, %s4556_s21 }
  0xb6   : > { %v576_v46 = vpop.permute.xlu1 %575  ;;  %v574_v16 = vpop.permute.xlu0 %573 }
  0xb7   : > { %649 = vst.msk [vmem:[#allocation2 + $0xb8] sm:$0xff] %vm625_vm4, %v576_v46  ;;  %648 = vst.msk [vmem:[#allocation2 + $0xb0] sm:$0xff] %vm625_vm4, %v574_v16  ;;  %v689_v16 = vrot.slane %v4791_v31, 2 }
  0xb8   : > { %1447 = vrot.lane.b32.xlu1 %v4911_v60, %s4557_s28  ;;  %1445 = vrot.lane.b32.xlu0 %v4929_v7, %s4557_s28 }
  0xb9   : > { %v691_v8 = vsel %vm658_vm3, %v689_v16, %v690_v42 }
  0xba   : > { %v580_v20 = vpop.permute.xlu1 %579  ;;  %v578_v24 = vpop.permute.xlu0 %577 }
  0xbb   : > { %651 = vst.msk [vmem:[#allocation2 + $0xc8] sm:$0xff] %vm625_vm4, %v580_v20  ;;  %650 = vst.msk [vmem:[#allocation2 + $0xc0] sm:$0xff] %vm625_vm4, %v578_v24  ;;  %v693_v24 = vsel %vm658_vm3, %v690_v42, %v692_v43 }
  0xbc   : > { %1451 = vrot.lane.b32.xlu1 %v4944_v15, %s4557_s28  ;;  %1449 = vrot.lane.b32.xlu0 %v4949_v23, %s4557_s28 }
  0xbe   : > { %v584_v22 = vpop.permute.xlu1 %583  ;;  %v582_v2 = vpop.permute.xlu0 %581 }
  0xbf   : > { %653 = vst.msk [vmem:[#allocation2 + $0xd8] sm:$0xff] %vm625_vm4, %v584_v22  ;;  %652 = vst.msk [vmem:[#allocation2 + $0xd0] sm:$0xff] %vm625_vm4, %v582_v2 }
  0xc0   : > { %1581 = vrot.lane.b32.xlu1 %v683_v51, %s4558_s15  ;;  %1579 = vrot.lane.b32.xlu0 %v681_v35, %s4558_s15 }
  0xc2   : > { %v588_v19 = vpop.permute.xlu1 %587  ;;  %v586_v55 = vpop.permute.xlu0 %585 }
  0xc3   : > { %655 = vst.msk [vmem:[#allocation2 + $0xe8] sm:$0xff] %vm625_vm4, %v588_v19  ;;  %654 = vst.msk [vmem:[#allocation2 + $0xe0] sm:$0xff] %vm625_vm4, %v586_v55  ;;  %v695_v55 = vrot.slane %v4798_v32, 2 }
  0xc4   : > { %1585 = vrot.lane.b32.xlu1 %v688_v17, %s4558_s15  ;;  %1583 = vrot.lane.b32.xlu0 %v686_v44, %s4558_s15 }
  0xc6   : > { %v592_v6 = vpop.permute.xlu1 %591  ;;  %v590_v11 = vpop.permute.xlu0 %589 }
  0xc7   : > { %657 = vst.msk [vmem:[#allocation2 + $0xf8] sm:$0xff] %vm625_vm4, %v592_v6  ;;  %656 = vst.msk [vmem:[#allocation2 + $0xf0] sm:$0xff] %vm625_vm4, %v590_v11  ;;  %v697_v6 = vrot.slane %v4939_v10, 2 }
  0xc8   : > { %757 = vrot.lane.b32.xlu1 %v683_v51, %s4552_s9  ;;  %755 = vrot.lane.b32.xlu0 %v681_v35, %s4552_s9 }
  0xca   : > { %v742_v12 = vpop.permute.xlu1 %741  ;;  %v740_v13 = vpop.permute.xlu0 %739 }
  0xcb   : > { %837 = vst.msk [vmem:[#allocation2 + $0x8] sm:$0xff] %vm835_vm5, %v742_v12  ;;  %836 = vst.msk [vmem:[#allocation2] sm:$0xff] %vm835_vm5, %v740_v13  ;;  %v694_v12 = vrot.slane %v4801_v33, 2 }
  0xcc   : > { %761 = vrot.lane.b32.xlu1 %v688_v17, %s4552_s9  ;;  %759 = vrot.lane.b32.xlu0 %v686_v44, %s4552_s9 }
  0xce   : > { %v746_v3 = vpop.permute.xlu1 %745  ;;  %v744_v37 = vpop.permute.xlu0 %743 }
  0xcf   : > { %839 = vst.msk [vmem:[#allocation2 + $0x18] sm:$0xff] %vm835_vm5, %v746_v3  ;;  %838 = vst.msk [vmem:[#allocation2 + $0x10] sm:$0xff] %vm835_vm5, %v744_v37  ;;  %v698_v3 = vsel %vm658_vm3, %v695_v55, %v697_v6 }
  0xd0   : > { %888 = vrot.lane.b32.xlu1 %v4769_v25, %s4553_s10  ;;  %886 = vrot.lane.b32.xlu0 %v4781_v29, %s4553_s10 }
  0xd2   : > { %v750_v51 = vpop.permute.xlu1 %749  ;;  %v748_v35 = vpop.permute.xlu0 %747 }
  0xd3   : > { %841 = vst.msk [vmem:[#allocation2 + $0x28] sm:$0xff] %vm835_vm5, %v750_v51  ;;  %840 = vst.msk [vmem:[#allocation2 + $0x20] sm:$0xff] %vm835_vm5, %v748_v35  ;;  %v696_v51 = vsel %vm658_vm3, %v694_v12, %v695_v55 }
  0xd4   : > { %892 = vrot.lane.b32.xlu1 %v4788_v30, %s4553_s10  ;;  %890 = vrot.lane.b32.xlu0 %v4791_v31, %s4553_s10 }
  0xd6   : > { %v754_v59 = vpop.permute.xlu1 %753  ;;  %v752_v56 = vpop.permute.xlu0 %751 }
  0xd7   : > { %843 = vst.msk [vmem:[#allocation2 + $0x38] sm:$0xff] %vm835_vm5, %v754_v59  ;;  %842 = vst.msk [vmem:[#allocation2 + $0x30] sm:$0xff] %vm835_vm5, %v752_v56 }
  0xd8   : > { %1055 = vrot.lane.b32.xlu1 %v4944_v15, %s4554_s11  ;;  %1053 = vrot.lane.b32.xlu0 %v4949_v23, %s4554_s11 }
  0xda   : > { %v873_v25 = vpop.permute.xlu1 %872  ;;  %v871_v29 = vpop.permute.xlu0 %870 }
  0xdb   : > { %968 = vst.msk [vmem:[#allocation2 + $0x8] sm:$0xff] %vm966_vm6, %v873_v25  ;;  %967 = vst.msk [vmem:[#allocation2] sm:$0xff] %vm966_vm6, %v871_v29 }
  0xdc   : > { %1059 = vrot.lane.b32.xlu1 %v4957_v27, %s4554_s11  ;;  %1057 = vrot.lane.b32.xlu0 %v4965_v49, %s4554_s11 }
  0xde   : > { %v877_v46 = vpop.permute.xlu1 %876  ;;  %v875_v20 = vpop.permute.xlu0 %874 }
  0xdf   : > { %970 = vst.msk [vmem:[#allocation2 + $0x18] sm:$0xff] %vm966_vm6, %v877_v46  ;;  %969 = vst.msk [vmem:[#allocation2 + $0x10] sm:$0xff] %vm966_vm6, %v875_v20 }
  0xe0   : > { %1189 = vrot.lane.b32.xlu1 %v688_v17, %s4555_s16  ;;  %1187 = vrot.lane.b32.xlu0 %v686_v44, %s4555_s16 }
  0xe2   : > { %v1040_v28 = vpop.permute.xlu1 %1039  ;;  %v1038_v63 = vpop.permute.xlu0 %1037 }
  0xe3   : > { %1135 = vst.msk [vmem:[#allocation2 + $0x8] sm:$0xff] %vm1133_vm7, %v1040_v28  ;;  %1134 = vst.msk [vmem:[#allocation2] sm:$0xff] %vm1133_vm7, %v1038_v63 }
  0xe4   : > { %1193 = vrot.lane.b32.xlu1 %v693_v24, %s4555_s16  ;;  %1191 = vrot.lane.b32.xlu0 %v691_v8, %s4555_s16 }
  0xe6   : > { %v1044_v22 = vpop.permute.xlu1 %1043  ;;  %v1042_v1 = vpop.permute.xlu0 %1041 }
  0xe7   : > { %1137 = vst.msk [vmem:[#allocation2 + $0x18] sm:$0xff] %vm1133_vm7, %v1044_v22  ;;  %1136 = vst.msk [vmem:[#allocation2 + $0x10] sm:$0xff] %vm1133_vm7, %v1042_v1 }
  0xe8   : > { %1320 = vrot.lane.b32.xlu1 %v4788_v30, %s4556_s21  ;;  %1318 = vrot.lane.b32.xlu0 %v4791_v31, %s4556_s21 }
  0xea   : > { %v1174_v2 = vpop.permute.xlu1 %1173  ;;  %v1172_v17 = vpop.permute.xlu0 %1171 }
  0xeb   : > { %1269 = vst.msk [vmem:[#allocation2 + $0x8] sm:$0xff] %vm1267_vm8, %v1174_v2  ;;  %1268 = vst.msk [vmem:[#allocation2] sm:$0xff] %vm1267_vm8, %v1172_v17  ;;  %v7909_v2 = vld [vmem:[#allocation32_spill] sm:$0xff]  ;;  %v700_v17 = vrot.slane %v4817_v38, 2 }
  0xec   : > { %1324 = vrot.lane.b32.xlu1 %v4798_v32, %s4556_s21  ;;  %1322 = vrot.lane.b32.xlu0 %v4801_v33, %s4556_s21 }
  0xee   : > { %v1178_v19 = vpop.permute.xlu1 %1177  ;;  %v1176_v30 = vpop.permute.xlu0 %1175 }
  0xef   : > { %1271 = vst.msk [vmem:[#allocation2 + $0x18] sm:$0xff] %vm1267_vm8, %v1178_v19  ;;  %1270 = vst.msk [vmem:[#allocation2 + $0x10] sm:$0xff] %vm1267_vm8, %v1176_v30  ;;  %v7910_v19 = vld [vmem:[#allocation26_spill] sm:$0xff] }
  0xf0   : > { %1455 = vrot.lane.b32.xlu1 %v4957_v27, %s4557_s28  ;;  %1453 = vrot.lane.b32.xlu0 %v4965_v49, %s4557_s28  ;;  %v702_v30 = vrot.slane %v7910_v19, 2 }
  0xf2   : > { %v1305_v31 = vpop.permute.xlu1 %1304  ;;  %v1303_v44 = vpop.permute.xlu0 %1302  ;;  %v703_v6 = vsel %vm658_vm3, %v700_v17, %v702_v30 }
  0xf3   : > { %1400 = vst.msk [vmem:[#allocation2 + $0x8] sm:$0xff] %vm1398_vm9, %v1305_v31  ;;  %1399 = vst.msk [vmem:[#allocation2] sm:$0xff] %vm1398_vm9, %v1303_v44  ;;  %v699_v44 = vrot.slane %v4828_v41, 2 }
  0xf4   : > { %1459 = vrot.lane.b32.xlu1 %v4973_v54, %s4557_s28  ;;  %1457 = vrot.lane.b32.xlu0 %v4978_v9, %s4557_s28 }
  0xf5   : > { %v701_v12 = vsel %vm658_vm3, %v699_v44, %v700_v17 }
  0xf6   : > { %v1309_v11 = vpop.permute.xlu1 %1308  ;;  %v1307_v13 = vpop.permute.xlu0 %1306 }
  0xf7   : > { %1402 = vst.msk [vmem:[#allocation2 + $0x18] sm:$0xff] %vm1398_vm9, %v1309_v11  ;;  %1401 = vst.msk [vmem:[#allocation2 + $0x10] sm:$0xff] %vm1398_vm9, %v1307_v13 }
  0xf8   : > { %1589 = vrot.lane.b32.xlu1 %v693_v24, %s4558_s15  ;;  %1587 = vrot.lane.b32.xlu0 %v691_v8, %s4558_s15 }
  0xfa   : > { %v1440_v37 = vpop.permute.xlu1 %1439  ;;  %v1438_v10 = vpop.permute.xlu0 %1437 }
  0xfb   : > { %1535 = vst.msk [vmem:[#allocation2 + $0x8] sm:$0xff] %vm1533_vm10, %v1440_v37  ;;  %1534 = vst.msk [vmem:[#allocation2] sm:$0xff] %vm1533_vm10, %v1438_v10 }
  0xfc   : > { %1593 = vrot.lane.b32.xlu1 %v698_v3, %s4558_s15  ;;  %1591 = vrot.lane.b32.xlu0 %v696_v51, %s4558_s15 }
  0xfe   : > { %v1444_v35 = vpop.permute.xlu1 %1443  ;;  %v1442_v59 = vpop.permute.xlu0 %1441 }
  0xff   : > { %1537 = vst.msk [vmem:[#allocation2 + $0x18] sm:$0xff] %vm1533_vm10, %v1444_v35  ;;  %1536 = vst.msk [vmem:[#allocation2 + $0x10] sm:$0xff] %vm1533_vm10, %v1442_v59  ;;  %v7911_v35 = vld [vmem:[#allocation8_spill] sm:$0xff]  ;;  %v7912_v59 = vld [vmem:[#allocation9_spill] sm:$0xff] }
 0x100   : > { %765 = vrot.lane.b32.xlu1 %v693_v24, %s4552_s9  ;;  %763 = vrot.lane.b32.xlu0 %v691_v8, %s4552_s9 }
 0x102   : > { %v1574_v56 = vpop.permute.xlu1 %1573  ;;  %v1572_v25 = vpop.permute.xlu0 %1571 }
 0x103   : > { %1669 = vst.msk [vmem:[#allocation2 + $0x8] sm:$0xff] %vm1667_vm11, %v1574_v56  ;;  %1668 = vst.msk [vmem:[#allocation2] sm:$0xff] %vm1667_vm11, %v1572_v25 }
 0x104   : > { %769 = vrot.lane.b32.xlu1 %v698_v3, %s4552_s9  ;;  %767 = vrot.lane.b32.xlu0 %v696_v51, %s4552_s9 }
 0x106   : > { %v1578_v29 = vpop.permute.xlu1 %1577  ;;  %v1576_v42 = vpop.permute.xlu0 %1575 }
 0x107   : > { %1671 = vst.msk [vmem:[#allocation2 + $0x18] sm:$0xff] %vm1667_vm11, %v1578_v29  ;;  %1670 = vst.msk [vmem:[#allocation2 + $0x10] sm:$0xff] %vm1667_vm11, %v1576_v42  ;;  %v705_v29 = vrot.slane %v7911_v35, 2  ;;  %v7913_v42 = vld [vmem:[#allocation30_spill] sm:$0xff] }
 0x108   : > { %896 = vrot.lane.b32.xlu1 %v4798_v32, %s4553_s10  ;;  %894 = vrot.lane.b32.xlu0 %v4801_v33, %s4553_s10 }
 0x10a   : > { %v881_v43 = vpop.permute.xlu1 %880  ;;  %v1701_v46 = vld [vmem:[#allocation2 + $0x8] sm:$0xff]  ;;  %v879_v16 = vpop.permute.xlu0 %878  ;;  %v1700_v20 = vld [vmem:[#allocation2] sm:$0xff] }
 0x10b   : > { %972 = vst.msk [vmem:[#allocation2 + $0x28] sm:$0xff] %vm966_vm6, %v881_v43  ;;  %971 = vst.msk [vmem:[#allocation2 + $0x20] sm:$0xff] %vm966_vm6, %v879_v16  ;;  %v1732_v24 = vpack.c.bf16 %v1701_v46, %v1700_v20  ;;  %v707_v43 = vrot.slane %v7913_v42, 2  ;;  %v704_v16 = vrot.slane %v7912_v59, 2 }
 0x10c   : > { %900 = vrot.lane.b32.xlu1 %v4817_v38, %s4553_s10  ;;  %898 = vrot.lane.b32.xlu0 %v4828_v41, %s4553_s10 }
 0x10d   : > { %4419 = vmatprep.mubr.bf16.mxu0 %v1732_v24  ;;  %v708_v24 = vsel %vm658_vm3, %v705_v29, %v707_v43 }
 0x10e   : > { %v885_v32 = vpop.permute.xlu1 %884  ;;  %v1703_v28 = vld [vmem:[#allocation2 + $0x18] sm:$0xff]  ;;  %v883_v33 = vpop.permute.xlu0 %882  ;;  %v1702_v8 = vld [vmem:[#allocation2 + $0x10] sm:$0xff] }
 0x10f   : > { %974 = vst.msk [vmem:[#allocation2 + $0x38] sm:$0xff] %vm966_vm6, %v885_v32  ;;  %973 = vst.msk [vmem:[#allocation2 + $0x30] sm:$0xff] %vm966_vm6, %v883_v33  ;;  %v1733_v63 = vpack.c.bf16 %v1703_v28, %v1702_v8  ;;  %v706_v28 = vsel %vm658_vm3, %v704_v16, %v705_v29 }
 0x110   : > { %1063 = vrot.lane.b32.xlu1 %v4973_v54, %s4554_s11  ;;  %1061 = vrot.lane.b32.xlu0 %v4978_v9, %s4554_s11 }
 0x111   : > { %4420 = vmatmul.mubr.bf16.vlgmr.msra.gmra.mrb[0].mxu0 %v1733_v63 }
 0x112   : > { %v1048_v22 = vpop.permute.xlu1 %1047  ;;  %v1046_v1 = vpop.permute.xlu0 %1045 }
 0x113   : > { %1139 = vst.msk [vmem:[#allocation2 + $0x28] sm:$0xff] %vm1133_vm7, %v1048_v22  ;;  %1138 = vst.msk [vmem:[#allocation2 + $0x20] sm:$0xff] %vm1133_vm7, %v1046_v1 }
 0x114   : > { %1067 = vrot.lane.b32.xlu1 %v4989_v26, %s4554_s11  ;;  %1065 = vrot.lane.b32.xlu0 %v7909_v2, %s4554_s11 }
 0x116   : > { %v1052_v31 = vpop.permute.xlu1 %1051  ;;  %v1050_v55 = vpop.permute.xlu0 %1049 }
 0x117   : > { %1141 = vst.msk [vmem:[#allocation2 + $0x38] sm:$0xff] %vm1133_vm7, %v1052_v31  ;;  %1140 = vst.msk [vmem:[#allocation2 + $0x30] sm:$0xff] %vm1133_vm7, %v1050_v55 }
 0x118   : > { %1197 = vrot.lane.b32.xlu1 %v698_v3, %s4555_s16  ;;  %1195 = vrot.lane.b32.xlu0 %v696_v51, %s4555_s16 }
 0x11a   : > { %v1182_v11 = vpop.permute.xlu1 %1181  ;;  %v1180_v13 = vpop.permute.xlu0 %1179 }
 0x11b   : > { %1273 = vst.msk [vmem:[#allocation2 + $0x28] sm:$0xff] %vm1267_vm8, %v1182_v11  ;;  %1272 = vst.msk [vmem:[#allocation2 + $0x20] sm:$0xff] %vm1267_vm8, %v1180_v13 }
 0x11c   : > { %1201 = vrot.lane.b32.xlu1 %v703_v6, %s4555_s16  ;;  %1199 = vrot.lane.b32.xlu0 %v701_v12, %s4555_s16 }
 0x11e   : > { %v1186_v37 = vpop.permute.xlu1 %1185  ;;  %v1184_v3 = vpop.permute.xlu0 %1183 }
 0x11f   : > { %1275 = vst.msk [vmem:[#allocation2 + $0x38] sm:$0xff] %vm1267_vm8, %v1186_v37  ;;  %1274 = vst.msk [vmem:[#allocation2 + $0x30] sm:$0xff] %vm1267_vm8, %v1184_v3  ;;  %v7914_v37 = vld [vmem:[#allocation10_spill] sm:$0xff]  ;;  %v7915_v3 = vld [vmem:[#allocation11_spill] sm:$0xff] }
 0x120   : > { %1328 = vrot.lane.b32.xlu1 %v4817_v38, %s4556_s21  ;;  %1326 = vrot.lane.b32.xlu0 %v4828_v41, %s4556_s21  ;;  %v709_v29 = vrot.slane %v7915_v3, 2 }
 0x122   : > { %v1313_v51 = vpop.permute.xlu1 %1312  ;;  %v1311_v10 = vpop.permute.xlu0 %1310 }
 0x123   : > { %1404 = vst.msk [vmem:[#allocation2 + $0x28] sm:$0xff] %vm1398_vm9, %v1313_v51  ;;  %1403 = vst.msk [vmem:[#allocation2 + $0x20] sm:$0xff] %vm1398_vm9, %v1311_v10 }
 0x124   : > { %1332 = vrot.lane.b32.xlu1 %v7911_v35, %s4556_s21  ;;  %1330 = vrot.lane.b32.xlu0 %v7912_v59, %s4556_s21 }
 0x126   : > { %v1317_v56 = vpop.permute.xlu1 %1316  ;;  %v1315_v25 = vpop.permute.xlu0 %1314 }
 0x127   : > { %1406 = vst.msk [vmem:[#allocation2 + $0x38] sm:$0xff] %vm1398_vm9, %v1317_v56  ;;  %1405 = vst.msk [vmem:[#allocation2 + $0x30] sm:$0xff] %vm1398_vm9, %v1315_v25  ;;  %v710_v56 = vrot.slane %v7914_v37, 2  ;;  %v7916_v25 = vld [vmem:[#allocation33_spill] sm:$0xff] }
 0x128   : > { %1463 = vrot.lane.b32.xlu1 %v4989_v26, %s4557_s28  ;;  %1461 = vrot.lane.b32.xlu0 %v7909_v2, %s4557_s28 }
 0x129   : > { %v711_v16 = vsel %vm658_vm3, %v709_v29, %v710_v56 }
 0x12a   : > { %v1448_v38 = vpop.permute.xlu1 %1447  ;;  %v1446_v41 = vpop.permute.xlu0 %1445 }
 0x12b   : > { %1539 = vst.msk [vmem:[#allocation2 + $0x28] sm:$0xff] %vm1533_vm10, %v1448_v38  ;;  %1538 = vst.msk [vmem:[#allocation2 + $0x20] sm:$0xff] %vm1533_vm10, %v1446_v41  ;;  %v712_v38 = vrot.slane %v7916_v25, 2 }
 0x12c   : > { %1467 = vrot.lane.b32.xlu1 %v5005_v62, %s4557_s28  ;;  %1465 = vrot.lane.b32.xlu0 %v5010_v61, %s4557_s28 }
 0x12d   : > { %v713_v43 = vsel %vm658_vm3, %v710_v56, %v712_v38 }
 0x12e   : > { %v1452_v46 = vpop.permute.xlu1 %1451  ;;  %v1450_v20 = vpop.permute.xlu0 %1449 }
 0x12f   : > { %1541 = vst.msk [vmem:[#allocation2 + $0x38] sm:$0xff] %vm1533_vm10, %v1452_v46  ;;  %1540 = vst.msk [vmem:[#allocation2 + $0x30] sm:$0xff] %vm1533_vm10, %v1450_v20 }
 0x130   : > { %1597 = vrot.lane.b32.xlu1 %v703_v6, %s4558_s15  ;;  %1595 = vrot.lane.b32.xlu0 %v701_v12, %s4558_s15 }
 0x132   : > { %v1582_v32 = vpop.permute.xlu1 %1581  ;;  %v1580_v33 = vpop.permute.xlu0 %1579 }
 0x133   : > { %1673 = vst.msk [vmem:[#allocation2 + $0x28] sm:$0xff] %vm1667_vm11, %v1582_v32  ;;  %1672 = vst.msk [vmem:[#allocation2 + $0x20] sm:$0xff] %vm1667_vm11, %v1580_v33 }
 0x134   : > { %1601 = vrot.lane.b32.xlu1 %v708_v24, %s4558_s15  ;;  %1599 = vrot.lane.b32.xlu0 %v706_v28, %s4558_s15 }
 0x136   : > { %v1586_v8 = vpop.permute.xlu1 %1585  ;;  %v1584_v63 = vpop.permute.xlu0 %1583 }
 0x137   : > { %1675 = vst.msk [vmem:[#allocation2 + $0x38] sm:$0xff] %vm1667_vm11, %v1586_v8  ;;  %1674 = vst.msk [vmem:[#allocation2 + $0x30] sm:$0xff] %vm1667_vm11, %v1584_v63  ;;  %v7917_v8 = vld [vmem:[#allocation12_spill] sm:$0xff]  ;;  %v7918_v63 = vld [vmem:[#allocation13_spill] sm:$0xff] }
 0x138   : > { %773 = vrot.lane.b32.xlu1 %v703_v6, %s4552_s9  ;;  %771 = vrot.lane.b32.xlu0 %v701_v12, %s4552_s9 }
 0x13a   : > { %v758_v22 = vpop.permute.xlu1 %757  ;;  %v1705_v1 = vld [vmem:[#allocation2 + $0x28] sm:$0xff]  ;;  %v756_v17 = vpop.permute.xlu0 %755  ;;  %v1704_v19 = vld [vmem:[#allocation2 + $0x20] sm:$0xff] }
 0x13b   : > { %845 = vst.msk [vmem:[#allocation2 + $0x48] sm:$0xff] %vm835_vm5, %v758_v22  ;;  %844 = vst.msk [vmem:[#allocation2 + $0x40] sm:$0xff] %vm835_vm5, %v756_v17  ;;  %v1734_v30 = vpack.c.bf16 %v1705_v1, %v1704_v19 }
 0x13c   : > { %777 = vrot.lane.b32.xlu1 %v708_v24, %s4552_s9  ;;  %775 = vrot.lane.b32.xlu0 %v706_v28, %s4552_s9 }
 0x13d   : > { %4423 = vmatprep.mubr.bf16.mxu0 %v1734_v30  ;;  %v7919_v30 = vld [vmem:[#allocation39_spill] sm:$0xff] }
 0x13e   : > { %v762_v31 = vpop.permute.xlu1 %761  ;;  %v1707_v44 = vld [vmem:[#allocation2 + $0x38] sm:$0xff]  ;;  %v760_v55 = vpop.permute.xlu0 %759  ;;  %v1706_v6 = vld [vmem:[#allocation2 + $0x30] sm:$0xff] }
 0x13f   : > { %847 = vst.msk [vmem:[#allocation2 + $0x58] sm:$0xff] %vm835_vm5, %v762_v31  ;;  %846 = vst.msk [vmem:[#allocation2 + $0x50] sm:$0xff] %vm835_vm5, %v760_v55  ;;  %v1735_v11 = vpack.c.bf16 %v1707_v44, %v1706_v6  ;;  %v715_v31 = vrot.slane %v7917_v8, 2  ;;  %v4537_v44 = vld [vmem:[%s4695_s30 + $0x118] sm:$0x3] }
 0x140   : > { %904 = vrot.lane.b32.xlu1 %v7911_v35, %s4553_s10  ;;  %902 = vrot.lane.b32.xlu0 %v7912_v59, %s4553_s10  ;;  %v717_v55 = vrot.slane %v4537_v44, 2 }
 0x141   : > { %4424 = vmatmul.mubr.bf16.gmra.mrb[4].mxu0 %v1735_v11  ;;  %v714_v11 = vrot.slane %v7918_v63, 2 }
 0x142   : > { %v889_v12 = vpop.permute.xlu1 %888  ;;  %v887_v13 = vpop.permute.xlu0 %886 }
 0x143   : > { %976 = vst.msk [vmem:[#allocation2 + $0x48] sm:$0xff] %vm966_vm6, %v889_v12  ;;  %975 = vst.msk [vmem:[#allocation2 + $0x40] sm:$0xff] %vm966_vm6, %v887_v13  ;;  %v718_v13 = vsel %vm658_vm3, %v715_v31, %v717_v55 }
 0x144   : > { %908 = vrot.lane.b32.xlu1 %v7914_v37, %s4553_s10  ;;  %906 = vrot.lane.b32.xlu0 %v7915_v3, %s4553_s10 }
 0x146   : > { %v893_v51 = vpop.permute.xlu1 %892  ;;  %v891_v10 = vpop.permute.xlu0 %890 }
 0x147   : > { %978 = vst.msk [vmem:[#allocation2 + $0x58] sm:$0xff] %vm966_vm6, %v893_v51  ;;  %977 = vst.msk [vmem:[#allocation2 + $0x50] sm:$0xff] %vm966_vm6, %v891_v10 }
 0x148   : > { %1071 = vrot.lane.b32.xlu1 %v5005_v62, %s4554_s11  ;;  %1069 = vrot.lane.b32.xlu0 %v5010_v61, %s4554_s11 }
 0x14a   : > { %v1056_v35 = vpop.permute.xlu1 %1055  ;;  %v1054_v59 = vpop.permute.xlu0 %1053 }
 0x14b   : > { %1143 = vst.msk [vmem:[#allocation2 + $0x48] sm:$0xff] %vm1133_vm7, %v1056_v35  ;;  %1142 = vst.msk [vmem:[#allocation2 + $0x40] sm:$0xff] %vm1133_vm7, %v1054_v59 }
 0x14c   : > { %1075 = vrot.lane.b32.xlu1 %v5019_v0, %s4554_s11  ;;  %1073 = vrot.lane.b32.xlu0 %v5023_v40, %s4554_s11 }
 0x14e   : > { %v1060_v41 = vpop.permute.xlu1 %1059  ;;  %v1058_v42 = vpop.permute.xlu0 %1057 }
 0x14f   : > { %1145 = vst.msk [vmem:[#allocation2 + $0x58] sm:$0xff] %vm1133_vm7, %v1060_v41  ;;  %1144 = vst.msk [vmem:[#allocation2 + $0x50] sm:$0xff] %vm1133_vm7, %v1058_v42 }
 0x150   : > { %1205 = vrot.lane.b32.xlu1 %v708_v24, %s4555_s16  ;;  %1203 = vrot.lane.b32.xlu0 %v706_v28, %s4555_s16 }
 0x152   : > { %v1190_v46 = vpop.permute.xlu1 %1189  ;;  %v1188_v20 = vpop.permute.xlu0 %1187 }
 0x153   : > { %1277 = vst.msk [vmem:[#allocation2 + $0x48] sm:$0xff] %vm1267_vm8, %v1190_v46  ;;  %1276 = vst.msk [vmem:[#allocation2 + $0x40] sm:$0xff] %vm1267_vm8, %v1188_v20 }
 0x154   : > { %1209 = vrot.lane.b32.xlu1 %v713_v43, %s4555_s16  ;;  %1207 = vrot.lane.b32.xlu0 %v711_v16, %s4555_s16 }
 0x156   : > { %v1194_v32 = vpop.permute.xlu1 %1193  ;;  %v1192_v24 = vpop.permute.xlu0 %1191 }
 0x157   : > { %1279 = vst.msk [vmem:[#allocation2 + $0x58] sm:$0xff] %vm1267_vm8, %v1194_v32  ;;  %1278 = vst.msk [vmem:[#allocation2 + $0x50] sm:$0xff] %vm1267_vm8, %v1192_v24  ;;  %v7920_v24 = vld [vmem:[#allocation15_spill] sm:$0xff] }
 0x158   : > { %1336 = vrot.lane.b32.xlu1 %v7914_v37, %s4556_s21  ;;  %1334 = vrot.lane.b32.xlu0 %v7915_v3, %s4556_s21  ;;  %v716_v3 = vsel %vm658_vm3, %v714_v11, %v715_v31 }
 0x15a   : > { %v1321_v28 = vpop.permute.xlu1 %1320  ;;  %v1319_v33 = vpop.permute.xlu0 %1318 }
 0x15b   : > { %1408 = vst.msk [vmem:[#allocation2 + $0x48] sm:$0xff] %vm1398_vm9, %v1321_v28  ;;  %1407 = vst.msk [vmem:[#allocation2 + $0x40] sm:$0xff] %vm1398_vm9, %v1319_v33  ;;  %v7921_v28 = vld [vmem:[#allocation16_spill] sm:$0xff] }
 0x15c   : > { %1340 = vrot.lane.b32.xlu1 %v7917_v8, %s4556_s21  ;;  %1338 = vrot.lane.b32.xlu0 %v7918_v63, %s4556_s21  ;;  %v719_v44 = vrot.slane %v7921_v28, 2 }
 0x15e   : > { %v1325_v22 = vpop.permute.xlu1 %1324  ;;  %v1323_v1 = vpop.permute.xlu0 %1322 }
 0x15f   : > { %1410 = vst.msk [vmem:[#allocation2 + $0x58] sm:$0xff] %vm1398_vm9, %v1325_v22  ;;  %1409 = vst.msk [vmem:[#allocation2 + $0x50] sm:$0xff] %vm1398_vm9, %v1323_v1  ;;  %v720_v1 = vrot.slane %v7920_v24, 2 }
 0x160   : > { %1471 = vrot.lane.b32.xlu1 %v5019_v0, %s4557_s28  ;;  %1469 = vrot.lane.b32.xlu0 %v5023_v40, %s4557_s28 }
 0x162   : > { %v1456_v17 = vpop.permute.xlu1 %1455  ;;  %v1454_v19 = vpop.permute.xlu0 %1453 }
 0x163   : > { %1543 = vst.msk [vmem:[#allocation2 + $0x48] sm:$0xff] %vm1533_vm10, %v1456_v17  ;;  %1542 = vst.msk [vmem:[#allocation2 + $0x40] sm:$0xff] %vm1533_vm10, %v1454_v19  ;;  %v4538_v17 = vld [vmem:[%s4695_s30 + $0x130] sm:$0x3] }
 0x164   : > { %1475 = vrot.lane.b32.xlu1 %v5032_v45, %s4557_s28  ;;  %1473 = vrot.lane.b32.xlu0 %v7919_v30, %s4557_s28  ;;  %v722_v19 = vrot.slane %v4538_v17, 2 }
 0x166   : > { %v1460_v6 = vpop.permute.xlu1 %1459  ;;  %v1458_v12 = vpop.permute.xlu0 %1457 }
 0x167   : > { %1545 = vst.msk [vmem:[#allocation2 + $0x58] sm:$0xff] %vm1533_vm10, %v1460_v6  ;;  %1544 = vst.msk [vmem:[#allocation2 + $0x50] sm:$0xff] %vm1533_vm10, %v1458_v12  ;;  %v723_v6 = vsel %vm658_vm3, %v720_v1, %v722_v19  ;;  %v721_v12 = vsel %vm658_vm3, %v719_v44, %v720_v1 }
 0x168   : > { %1605 = vrot.lane.b32.xlu1 %v713_v43, %s4558_s15  ;;  %1603 = vrot.lane.b32.xlu0 %v711_v16, %s4558_s15 }
 0x16a   : > { %v1590_v37 = vpop.permute.xlu1 %1589  ;;  %v1588_v51 = vpop.permute.xlu0 %1587 }
 0x16b   : > { %1677 = vst.msk [vmem:[#allocation2 + $0x48] sm:$0xff] %vm1667_vm11, %v1590_v37  ;;  %1676 = vst.msk [vmem:[#allocation2 + $0x40] sm:$0xff] %vm1667_vm11, %v1588_v51 }
 0x16c   : > { %1609 = vrot.lane.b32.xlu1 %v718_v13, %s4558_s15  ;;  %1607 = vrot.lane.b32.xlu0 %v716_v3, %s4558_s15 }
 0x16e   : > { %v1594_v10 = vpop.permute.xlu1 %1593  ;;  %v1592_v35 = vpop.permute.xlu0 %1591 }
 0x16f   : > { %1679 = vst.msk [vmem:[#allocation2 + $0x58] sm:$0xff] %vm1667_vm11, %v1594_v10  ;;  %1678 = vst.msk [vmem:[#allocation2 + $0x50] sm:$0xff] %vm1667_vm11, %v1592_v35  ;;  %v7922_v35 = vld [vmem:[#allocation18_spill] sm:$0xff] }
 0x170   : > { %781 = vrot.lane.b32.xlu1 %v713_v43, %s4552_s9  ;;  %779 = vrot.lane.b32.xlu0 %v711_v16, %s4552_s9 }
 0x172   : > { %v766_v59 = vpop.permute.xlu1 %765  ;;  %v1709_v56 = vld [vmem:[#allocation2 + $0x48] sm:$0xff]  ;;  %v764_v25 = vpop.permute.xlu0 %763  ;;  %v1708_v38 = vld [vmem:[#allocation2 + $0x40] sm:$0xff] }
 0x173   : > { %849 = vst.msk [vmem:[#allocation2 + $0x68] sm:$0xff] %vm835_vm5, %v766_v59  ;;  %848 = vst.msk [vmem:[#allocation2 + $0x60] sm:$0xff] %vm835_vm5, %v764_v25  ;;  %v1736_v41 = vpack.c.bf16 %v1709_v56, %v1708_v38  ;;  %v7923_v59 = vld [vmem:[#allocation19_spill] sm:$0xff] }
 0x174   : > { %785 = vrot.lane.b32.xlu1 %v718_v13, %s4552_s9  ;;  %783 = vrot.lane.b32.xlu0 %v716_v3, %s4552_s9 }
 0x175   : > { %4427 = vmatprep.mubr.bf16.mxu0 %v1736_v41 }
 0x176   : > { %v770_v29 = vpop.permute.xlu1 %769  ;;  %v1711_v42 = vld [vmem:[#allocation2 + $0x58] sm:$0xff]  ;;  %v768_v43 = vpop.permute.xlu0 %767  ;;  %v1710_v46 = vld [vmem:[#allocation2 + $0x50] sm:$0xff] }
 0x177   : > { %851 = vst.msk [vmem:[#allocation2 + $0x78] sm:$0xff] %vm835_vm5, %v770_v29  ;;  %850 = vst.msk [vmem:[#allocation2 + $0x70] sm:$0xff] %vm835_vm5, %v768_v43  ;;  %v1737_v16 = vpack.c.bf16 %v1711_v42, %v1710_v46  ;;  %v725_v29 = vrot.slane %v7922_v35, 2  ;;  %v4539_v42 = vld [vmem:[%s4695_s30 + $0x148] sm:$0x3] }
 0x178   : > { %912 = vrot.lane.b32.xlu1 %v7917_v8, %s4553_s10  ;;  %910 = vrot.lane.b32.xlu0 %v7918_v63, %s4553_s10  ;;  %v727_v43 = vrot.slane %v4539_v42, 2 }
 0x179   : > { %4428 = vmatmul.mubr.bf16.gmra.mrb[8].mxu0 %v1737_v16  ;;  %v724_v16 = vrot.slane %v7923_v59, 2 }
 0x17a   : > { %v897_v20 = vpop.permute.xlu1 %896  ;;  %v895_v32 = vpop.permute.xlu0 %894 }
 0x17b   : > { %980 = vst.msk [vmem:[#allocation2 + $0x68] sm:$0xff] %vm966_vm6, %v897_v20  ;;  %979 = vst.msk [vmem:[#allocation2 + $0x60] sm:$0xff] %vm966_vm6, %v895_v32  ;;  %v728_v32 = vsel %vm658_vm3, %v725_v29, %v727_v43 }
 0x17c   : > { %916 = vrot.lane.b32.xlu1 %v7920_v24, %s4553_s10  ;;  %914 = vrot.lane.b32.xlu0 %v7921_v28, %s4553_s10 }
 0x17e   : > { %v901_v33 = vpop.permute.xlu1 %900  ;;  %v899_v8 = vpop.permute.xlu0 %898 }
 0x17f   : > { %982 = vst.msk [vmem:[#allocation2 + $0x78] sm:$0xff] %vm966_vm6, %v901_v33  ;;  %981 = vst.msk [vmem:[#allocation2 + $0x70] sm:$0xff] %vm966_vm6, %v899_v8 }
 0x180   : > { %1079 = vrot.lane.b32.xlu1 %v5032_v45, %s4554_s11  ;;  %1077 = vrot.lane.b32.xlu0 %v7919_v30, %s4554_s11 }
 0x182   : > { %v1064_v63 = vpop.permute.xlu1 %1063  ;;  %v1062_v22 = vpop.permute.xlu0 %1061 }
 0x183   : > { %1147 = vst.msk [vmem:[#allocation2 + $0x68] sm:$0xff] %vm1133_vm7, %v1064_v63  ;;  %1146 = vst.msk [vmem:[#allocation2 + $0x60] sm:$0xff] %vm1133_vm7, %v1062_v22 }
 0x184   : > { %1083 = vrot.lane.b32.xlu1 %v5045_v47, %s4554_s11  ;;  %1081 = vrot.lane.b32.xlu0 %v5049_v50, %s4554_s11 }
 0x186   : > { %v1068_v31 = vpop.permute.xlu1 %1067  ;;  %v1066_v55 = vpop.permute.xlu0 %1065 }
 0x187   : > { %1149 = vst.msk [vmem:[#allocation2 + $0x78] sm:$0xff] %vm1133_vm7, %v1068_v31  ;;  %1148 = vst.msk [vmem:[#allocation2 + $0x70] sm:$0xff] %vm1133_vm7, %v1066_v55 }
 0x188   : > { %1213 = vrot.lane.b32.xlu1 %v718_v13, %s4555_s16  ;;  %1211 = vrot.lane.b32.xlu0 %v716_v3, %s4555_s16 }
 0x18a   : > { %v1198_v11 = vpop.permute.xlu1 %1197  ;;  %v1196_v37 = vpop.permute.xlu0 %1195 }
 0x18b   : > { %1281 = vst.msk [vmem:[#allocation2 + $0x68] sm:$0xff] %vm1267_vm8, %v1198_v11  ;;  %1280 = vst.msk [vmem:[#allocation2 + $0x60] sm:$0xff] %vm1267_vm8, %v1196_v37 }
 0x18c   : > { %1217 = vrot.lane.b32.xlu1 %v723_v6, %s4555_s16  ;;  %1215 = vrot.lane.b32.xlu0 %v721_v12, %s4555_s16 }
 0x18e   : > { %v1202_v51 = vpop.permute.xlu1 %1201  ;;  %v1200_v13 = vpop.permute.xlu0 %1199 }
 0x18f   : > { %1283 = vst.msk [vmem:[#allocation2 + $0x78] sm:$0xff] %vm1267_vm8, %v1202_v51  ;;  %1282 = vst.msk [vmem:[#allocation2 + $0x70] sm:$0xff] %vm1267_vm8, %v1200_v13  ;;  %v7924_v13 = vld [vmem:[#allocation20_spill] sm:$0xff] }
 0x190   : > { %1344 = vrot.lane.b32.xlu1 %v7920_v24, %s4556_s21  ;;  %1342 = vrot.lane.b32.xlu0 %v7921_v28, %s4556_s21  ;;  %v726_v28 = vsel %vm658_vm3, %v724_v16, %v725_v29  ;;  %v729_v29 = vrot.slane %v7924_v13, 2 }
 0x192   : > { %v1329_v3 = vpop.permute.xlu1 %1328  ;;  %v1327_v10 = vpop.permute.xlu0 %1326 }
 0x193   : > { %1412 = vst.msk [vmem:[#allocation2 + $0x68] sm:$0xff] %vm1398_vm9, %v1329_v3  ;;  %1411 = vst.msk [vmem:[#allocation2 + $0x60] sm:$0xff] %vm1398_vm9, %v1327_v10 }
 0x194   : > { %1348 = vrot.lane.b32.xlu1 %v7922_v35, %s4556_s21  ;;  %1346 = vrot.lane.b32.xlu0 %v7923_v59, %s4556_s21 }
 0x196   : > { %v1333_v56 = vpop.permute.xlu1 %1332  ;;  %v1331_v25 = vpop.permute.xlu0 %1330 }
 0x197   : > { %1414 = vst.msk [vmem:[#allocation2 + $0x78] sm:$0xff] %vm1398_vm9, %v1333_v56  ;;  %1413 = vst.msk [vmem:[#allocation2 + $0x70] sm:$0xff] %vm1398_vm9, %v1331_v25  ;;  %v730_v56 = vrot.slane %v4901_v58, 2  ;;  %v4540_v25 = vld [vmem:[%s4695_s30 + $0x160] sm:$0x3] }
 0x198   : > { %1479 = vrot.lane.b32.xlu1 %v5045_v47, %s4557_s28  ;;  %1477 = vrot.lane.b32.xlu0 %v5049_v50, %s4557_s28 }
 0x199   : > { %v731_v16 = vsel %vm658_vm3, %v729_v29, %v730_v56 }
 0x19a   : > { %v1464_v38 = vpop.permute.xlu1 %1463  ;;  %v1462_v41 = vpop.permute.xlu0 %1461 }
 0x19b   : > { %1547 = vst.msk [vmem:[#allocation2 + $0x68] sm:$0xff] %vm1533_vm10, %v1464_v38  ;;  %1546 = vst.msk [vmem:[#allocation2 + $0x60] sm:$0xff] %vm1533_vm10, %v1462_v41  ;;  %v732_v38 = vrot.slane %v4540_v25, 2 }
 0x19c   : > { %1483 = vrot.lane.b32.xlu1 %v5058_v52, %s4557_s28  ;;  %1481 = vrot.lane.b32.xlu0 %v5062_v18, %s4557_s28 }
 0x19d   : > { %v733_v43 = vsel %vm658_vm3, %v730_v56, %v732_v38 }
 0x19e   : > { %v1468_v46 = vpop.permute.xlu1 %1467  ;;  %v1466_v20 = vpop.permute.xlu0 %1465 }
 0x19f   : > { %1549 = vst.msk [vmem:[#allocation2 + $0x78] sm:$0xff] %vm1533_vm10, %v1468_v46  ;;  %1548 = vst.msk [vmem:[#allocation2 + $0x70] sm:$0xff] %vm1533_vm10, %v1466_v20 }
 0x1a0   : > { %1613 = vrot.lane.b32.xlu1 %v723_v6, %s4558_s15  ;;  %1611 = vrot.lane.b32.xlu0 %v721_v12, %s4558_s15 }
 0x1a2   : > { %v1598_v24 = vpop.permute.xlu1 %1597  ;;  %v1596_v33 = vpop.permute.xlu0 %1595 }
 0x1a3   : > { %1681 = vst.msk [vmem:[#allocation2 + $0x68] sm:$0xff] %vm1667_vm11, %v1598_v24  ;;  %1680 = vst.msk [vmem:[#allocation2 + $0x60] sm:$0xff] %vm1667_vm11, %v1596_v33 }
 0x1a4   : > { %1617 = vrot.lane.b32.xlu1 %v728_v32, %s4558_s15  ;;  %1615 = vrot.lane.b32.xlu0 %v726_v28, %s4558_s15 }
 0x1a6   : > { %v1602_v8 = vpop.permute.xlu1 %1601  ;;  %v1600_v63 = vpop.permute.xlu0 %1599 }
 0x1a7   : > { %1683 = vst.msk [vmem:[#allocation2 + $0x78] sm:$0xff] %vm1667_vm11, %v1602_v8  ;;  %1682 = vst.msk [vmem:[#allocation2 + $0x70] sm:$0xff] %vm1667_vm11, %v1600_v63 }
 0x1a8   : > { %789 = vrot.lane.b32.xlu1 %v723_v6, %s4552_s9  ;;  %787 = vrot.lane.b32.xlu0 %v721_v12, %s4552_s9 }
 0x1aa   : > { %v774_v22 = vpop.permute.xlu1 %773  ;;  %v1713_v1 = vld [vmem:[#allocation2 + $0x68] sm:$0xff]  ;;  %v772_v17 = vpop.permute.xlu0 %771  ;;  %v1712_v19 = vld [vmem:[#allocation2 + $0x60] sm:$0xff] }
 0x1ab   : > { %853 = vst.msk [vmem:[#allocation2 + $0x88] sm:$0xff] %vm835_vm5, %v774_v22  ;;  %852 = vst.msk [vmem:[#allocation2 + $0x80] sm:$0xff] %vm835_vm5, %v772_v17  ;;  %v1738_v31 = vpack.c.bf16 %v1713_v1, %v1712_v19  ;;  %v7925_v1 = vld [vmem:[#allocation46_spill] sm:$0xff]  ;;  %v7926_v17 = vld [vmem:[#allocation47_spill] sm:$0xff]  ;;  %v735_v19 = vrot.slane %v4919_v4, 2 }
 0x1ac   : > { %793 = vrot.lane.b32.xlu1 %v728_v32, %s4552_s9  ;;  %791 = vrot.lane.b32.xlu0 %v726_v28, %s4552_s9 }
 0x1ad   : > { %4431 = vmatprep.mubr.bf16.mxu0 %v1738_v31  ;;  %v4541_v31 = vld [vmem:[%s4695_s30 + $0x178] sm:$0x3] }
 0x1ae   : > { %v778_v44 = vpop.permute.xlu1 %777  ;;  %v1715_v55 = vld [vmem:[#allocation2 + $0x78] sm:$0xff]  ;;  %v776_v6 = vpop.permute.xlu0 %775  ;;  %v1714_v11 = vld [vmem:[#allocation2 + $0x70] sm:$0xff] }
 0x1af   : > { %855 = vst.msk [vmem:[#allocation2 + $0x98] sm:$0xff] %vm835_vm5, %v778_v44  ;;  %854 = vst.msk [vmem:[#allocation2 + $0x90] sm:$0xff] %vm835_vm5, %v776_v6  ;;  %v1739_v12 = vpack.c.bf16 %v1715_v55, %v1714_v11  ;;  %v737_v44 = vrot.slane %v4541_v31, 2  ;;  %v734_v6 = vrot.slane %v4922_v5, 2 }
 0x1b0   : > { %920 = vrot.lane.b32.xlu1 %v7922_v35, %s4553_s10  ;;  %918 = vrot.lane.b32.xlu0 %v7923_v59, %s4553_s10 }
 0x1b1   : > { %4432 = vmatmul.mubr.bf16.gmra.mrb[12].mxu0 %v1739_v12  ;;  %v5689_v12 = vsel %vm658_vm3, %v735_v19, %v737_v44 }
 0x1b2   : > { %v905_v37 = vpop.permute.xlu1 %904  ;;  %v903_v51 = vpop.permute.xlu0 %902 }
 0x1b3   : > { %984 = vst.msk [vmem:[#allocation2 + $0x88] sm:$0xff] %vm966_vm6, %v905_v37  ;;  %983 = vst.msk [vmem:[#allocation2 + $0x80] sm:$0xff] %vm966_vm6, %v903_v51  ;;  %v5692_v51 = vsel %vm658_vm3, %v734_v6, %v735_v19 }
 0x1b4   : > { %924 = vrot.lane.b32.xlu1 %v4901_v58, %s4553_s10  ;;  %922 = vrot.lane.b32.xlu0 %v7924_v13, %s4553_s10 }
 0x1b6   : > { %v909_v3 = vpop.permute.xlu1 %908  ;;  %v907_v10 = vpop.permute.xlu0 %906 }
 0x1b7   : > { %986 = vst.msk [vmem:[#allocation2 + $0x98] sm:$0xff] %vm966_vm6, %v909_v3  ;;  %985 = vst.msk [vmem:[#allocation2 + $0x90] sm:$0xff] %vm966_vm6, %v907_v10 }
 0x1b8   : > { %1087 = vrot.lane.b32.xlu1 %v5058_v52, %s4554_s11  ;;  %1085 = vrot.lane.b32.xlu0 %v5062_v18, %s4554_s11  ;;  %v7929_v18 = vmov 0.0  }
 0x1b9   : > { %2261 = vst.msk [vmem:[#allocation3 + $0x10] sm:$0x3] %vm2260_vm12, %v7929_v18  ;;  %2265 = vst.msk [vmem:[#allocation3 + $0x1a8] sm:$0x3] %vm2260_vm12, %v7929_v18 }
 0x1ba   : > { %v1072_v35 = vpop.permute.xlu1 %1071  ;;  %v1070_v59 = vpop.permute.xlu0 %1069  ;;  %2267 = vst.msk [vmem:[#allocation3] sm:$0x1] %vm2266_vm13, %v7929_v18  ;;  %2268 = vst.msk [vmem:[#allocation3 + $0x18] sm:$0x1] %vm2266_vm13, %v7929_v18 }
 0x1bb   : > { %1151 = vst.msk [vmem:[#allocation2 + $0x88] sm:$0xff] %vm1133_vm7, %v1072_v35  ;;  %1150 = vst.msk [vmem:[#allocation2 + $0x80] sm:$0xff] %vm1133_vm7, %v1070_v59 }
 0x1bc   : > { %1091 = vrot.lane.b32.xlu1 %v5071_v57, %s4554_s11  ;;  %1089 = vrot.lane.b32.xlu0 %v5075_v36, %s4554_s11  ;;  %2269 = vst.msk [vmem:[#allocation3 + $0x30] sm:$0x1] %vm2266_vm13, %v7929_v18  ;;  %2270 = vst.msk [vmem:[#allocation3 + $0x48] sm:$0x1] %vm2266_vm13, %v7929_v18 }
 0x1bd   : > { %2271 = vst.msk [vmem:[#allocation3 + $0x60] sm:$0x1] %vm2266_vm13, %v7929_v18  ;;  %2272 = vst.msk [vmem:[#allocation3 + $0x78] sm:$0x1] %vm2266_vm13, %v7929_v18 }
 0x1be   : > { %v1076_v41 = vpop.permute.xlu1 %1075  ;;  %v1074_v42 = vpop.permute.xlu0 %1073  ;;  %2273 = vst.msk [vmem:[#allocation3 + $0x90] sm:$0x1] %vm2266_vm13, %v7929_v18  ;;  %2274 = vst.msk [vmem:[#allocation3 + $0xa8] sm:$0x1] %vm2266_vm13, %v7929_v18 }
 0x1bf   : > { %1153 = vst.msk [vmem:[#allocation2 + $0x98] sm:$0xff] %vm1133_vm7, %v1076_v41  ;;  %1152 = vst.msk [vmem:[#allocation2 + $0x90] sm:$0xff] %vm1133_vm7, %v1074_v42 }
 0x1c0   : > { %1221 = vrot.lane.b32.xlu1 %v728_v32, %s4555_s16  ;;  %1219 = vrot.lane.b32.xlu0 %v726_v28, %s4555_s16  ;;  %2275 = vst.msk [vmem:[#allocation3 + $0xc0] sm:$0x1] %vm2266_vm13, %v7929_v18  ;;  %2276 = vst.msk [vmem:[#allocation3 + $0xd8] sm:$0x1] %vm2266_vm13, %v7929_v18 }
 0x1c1   : > { %2277 = vst.msk [vmem:[#allocation3 + $0xf0] sm:$0x1] %vm2266_vm13, %v7929_v18  ;;  %2278 = vst.msk [vmem:[#allocation3 + $0x108] sm:$0x1] %vm2266_vm13, %v7929_v18  ;;  %v6022_v47 = vld [vmem:[#allocation3] sm:$0xff] }
 0x1c2   : > { %v1206_v46 = vpop.permute.xlu1 %1205  ;;  %v1204_v20 = vpop.permute.xlu0 %1203  ;;  %2279 = vst.msk [vmem:[#allocation3 + $0x120] sm:$0x1] %vm2266_vm13, %v7929_v18  ;;  %2280 = vst.msk [vmem:[#allocation3 + $0x138] sm:$0x1] %vm2266_vm13, %v7929_v18  ;;  %v2470_v30 = vrot.slane %v6022_v47, 1 }
 0x1c3   : > { %1285 = vst.msk [vmem:[#allocation2 + $0x88] sm:$0xff] %vm1267_vm8, %v1206_v46  ;;  %1284 = vst.msk [vmem:[#allocation2 + $0x80] sm:$0xff] %vm1267_vm8, %v1204_v20 }
 0x1c4   : > { %1225 = vrot.lane.b32.xlu1 %v733_v43, %s4555_s16  ;;  %1223 = vrot.lane.b32.xlu0 %v731_v16, %s4555_s16  ;;  %2281 = vst.msk [vmem:[#allocation3 + $0x150] sm:$0x1] %vm2266_vm13, %v7929_v18  ;;  %2282 = vst.msk [vmem:[#allocation3 + $0x168] sm:$0x1] %vm2266_vm13, %v7929_v18 }
 0x1c5   : > { %2283 = vst.msk [vmem:[#allocation3 + $0x180] sm:$0x1] %vm2266_vm13, %v7929_v18  ;;  %2284 = vst.msk [vmem:[#allocation3 + $0x198] sm:$0x1] %vm2266_vm13, %v7929_v18 }
 0x1c6   : > { %v1210_v24 = vpop.permute.xlu1 %1209  ;;  %v1208_v32 = vpop.permute.xlu0 %1207  ;;  %2286 = vst.msk [vmem:[#allocation3 + $0x29] sm:$0x1] %vm2266_vm13, %v7929_v18  ;;  %2287 = vst.msk [vmem:[#allocation3 + $0x41] sm:$0x1] %vm2266_vm13, %v7929_v18 }
 0x1c7   : > { %1287 = vst.msk [vmem:[#allocation2 + $0x98] sm:$0xff] %vm1267_vm8, %v1210_v24  ;;  %1286 = vst.msk [vmem:[#allocation2 + $0x90] sm:$0xff] %vm1267_vm8, %v1208_v32 }
 0x1c8   : > { %1352 = vrot.lane.b32.xlu1 %v4901_v58, %s4556_s21  ;;  %1350 = vrot.lane.b32.xlu0 %v7924_v13, %s4556_s21  ;;  %2288 = vst.msk [vmem:[#allocation3 + $0x59] sm:$0x1] %vm2266_vm13, %v7929_v18  ;;  %2289 = vst.msk [vmem:[#allocation3 + $0x71] sm:$0x1] %vm2266_vm13, %v7929_v18 }
 0x1c9   : > { %2290 = vst.msk [vmem:[#allocation3 + $0x89] sm:$0x1] %vm2266_vm13, %v7929_v18  ;;  %2291 = vst.msk [vmem:[#allocation3 + $0xa1] sm:$0x1] %vm2266_vm13, %v7929_v18 }
 0x1ca   : > { %v1337_v28 = vpop.permute.xlu1 %1336  ;;  %v1335_v33 = vpop.permute.xlu0 %1334  ;;  %2292 = vst.msk [vmem:[#allocation3 + $0xb9] sm:$0x1] %vm2266_vm13, %v7929_v18  ;;  %2293 = vst.msk [vmem:[#allocation3 + $0xd1] sm:$0x1] %vm2266_vm13, %v7929_v18 }
 0x1cb   : > { %1416 = vst.msk [vmem:[#allocation2 + $0x88] sm:$0xff] %vm1398_vm9, %v1337_v28  ;;  %1415 = vst.msk [vmem:[#allocation2 + $0x80] sm:$0xff] %vm1398_vm9, %v1335_v33  ;;  %v329_v33 = vld [vmem:[%s4695_s30 + $0x188] sm:$0xff] }
 0x1cc   : > { %1356 = vrot.lane.b32.xlu1 %v4919_v4, %s4556_s21  ;;  %1354 = vrot.lane.b32.xlu0 %v4922_v5, %s4556_s21  ;;  %2294 = vst.msk [vmem:[#allocation3 + $0xe9] sm:$0x1] %vm2266_vm13, %v7929_v18  ;;  %2295 = vst.msk [vmem:[#allocation3 + $0x101] sm:$0x1] %vm2266_vm13, %v7929_v18 }
 0x1cd   : > { %2296 = vst.msk [vmem:[#allocation3 + $0x119] sm:$0x1] %vm2266_vm13, %v7929_v18  ;;  %2297 = vst.msk [vmem:[#allocation3 + $0x131] sm:$0x1] %vm2266_vm13, %v7929_v18 }
 0x1ce   : > { %v1341_v8 = vpop.permute.xlu1 %1340  ;;  %v1339_v58 = vpop.permute.xlu0 %1338  ;;  %2298 = vst.msk [vmem:[#allocation3 + $0x149] sm:$0x1] %vm2266_vm13, %v7929_v18  ;;  %2299 = vst.msk [vmem:[#allocation3 + $0x161] sm:$0x1] %vm2266_vm13, %v7929_v18 }
 0x1cf   : > { %1418 = vst.msk [vmem:[#allocation2 + $0x98] sm:$0xff] %vm1398_vm9, %v1341_v8  ;;  %1417 = vst.msk [vmem:[#allocation2 + $0x90] sm:$0xff] %vm1398_vm9, %v1339_v58  ;;  %v328_v58 = vld [vmem:[%s4695_s30 + $0x180] sm:$0xff] }
 0x1d0   : > { %1487 = vrot.lane.b32.xlu1 %v5071_v57, %s4557_s28  ;;  %1485 = vrot.lane.b32.xlu0 %v5075_v36, %s4557_s28  ;;  %v1000_v44 = vrot.slane %v328_v58, 1  ;;  %2300 = vst.msk [vmem:[#allocation3 + $0x179] sm:$0x1] %vm2266_vm13, %v7929_v18  ;;  %2301 = vst.msk [vmem:[#allocation3 + $0x191] sm:$0x1] %vm2266_vm13, %v7929_v18 }
 0x1d1   : > { %2285 = vst.msk [vmem:[#allocation3 + $0x11] sm:$0x1] %vm2266_vm13, %v7929_v18  ;;  %2302 = vst.msk [vmem:[#allocation3 + $0x1a9] sm:$0x1] %vm2266_vm13, %v7929_v18 }
 0x1d2   : > { %v1472_v63 = vpop.permute.xlu1 %1471  ;;  %v1470_v22 = vpop.permute.xlu0 %1469  ;;  %2390 = vst.msk [vmem:[#allocation2] sm:$0xff] %vm367_vm1, %v6022_v47 }
 0x1d3   : > { %1551 = vst.msk [vmem:[#allocation2 + $0x88] sm:$0xff] %vm1533_vm10, %v1472_v63  ;;  %1550 = vst.msk [vmem:[#allocation2 + $0x80] sm:$0xff] %vm1533_vm10, %v1470_v22  ;;  %v330_v63 = vld [vmem:[%s4695_s30 + $0x190] sm:$0x3] }
 0x1d4   : > { %1491 = vrot.lane.b32.xlu1 %v7925_v1, %s4557_s28  ;;  %1489 = vrot.lane.b32.xlu0 %v7926_v17, %s4557_s28  ;;  %v1003_v31 = vrot.slane %v330_v63, 1 }
 0x1d6   : > { %v1476_v55 = vpop.permute.xlu1 %1475  ;;  %v1474_v11 = vpop.permute.xlu0 %1473 }
 0x1d7   : > { %1553 = vst.msk [vmem:[#allocation2 + $0x98] sm:$0xff] %vm1533_vm10, %v1476_v55  ;;  %1552 = vst.msk [vmem:[#allocation2 + $0x90] sm:$0xff] %vm1533_vm10, %v1474_v11 }
 0x1d8   : > { %1621 = vrot.lane.b32.xlu1 %v733_v43, %s4558_s15  ;;  %1619 = vrot.lane.b32.xlu0 %v731_v16, %s4558_s15  ;;  %v6024_v45 = vld [vmem:[#allocation3 + $0x10] sm:$0x3] }
 0x1d9   : > { %v2473_v0 = vrot.slane %v6024_v45, 1 }
 0x1da   : > { %v1606_v37 = vpop.permute.xlu1 %1605  ;;  %v1604_v13 = vpop.permute.xlu0 %1603 }
 0x1db   : > { %1685 = vst.msk [vmem:[#allocation2 + $0x88] sm:$0xff] %vm1667_vm11, %v1606_v37  ;;  %1684 = vst.msk [vmem:[#allocation2 + $0x80] sm:$0xff] %vm1667_vm11, %v1604_v13 }
 0x1dc   : > { %1625 = vrot.lane.b32.xlu1 %v5689_v12, %s4558_s15  ;;  %1623 = vrot.lane.b32.xlu0 %v5692_v51, %s4558_s15 }
 0x1de   : > { %v1610_v3 = vpop.permute.xlu1 %1609  ;;  %v1608_v10 = vpop.permute.xlu0 %1607 }
 0x1df   : > { %1687 = vst.msk [vmem:[#allocation2 + $0x98] sm:$0xff] %vm1667_vm11, %v1610_v3  ;;  %1686 = vst.msk [vmem:[#allocation2 + $0x90] sm:$0xff] %vm1667_vm11, %v1608_v10  ;;  %v1167_v10 = vrot.slane %v329_v33, 2 }
 0x1e0   : > { %797 = vrot.lane.b32.xlu1 %v733_v43, %s4552_s9  ;;  %795 = vrot.lane.b32.xlu0 %v731_v16, %s4552_s9 }
 0x1e2   : > { %v782_v35 = vpop.permute.xlu1 %781  ;;  %v1717_v59 = vld [vmem:[#allocation2 + $0x88] sm:$0xff]  ;;  %v780_v56 = vpop.permute.xlu0 %779  ;;  %v1716_v25 = vld [vmem:[#allocation2 + $0x80] sm:$0xff] }
 0x1e3   : > { %857 = vst.msk [vmem:[#allocation2 + $0xa8] sm:$0xff] %vm835_vm5, %v782_v35  ;;  %856 = vst.msk [vmem:[#allocation2 + $0xa0] sm:$0xff] %vm835_vm5, %v780_v56  ;;  %v1740_v38 = vpack.c.bf16 %v1717_v59, %v1716_v25  ;;  %v1169_v35 = vrot.slane %v330_v63, 2  ;;  %v1166_v59 = vrot.slane %v328_v58, 2 }
 0x1e4   : > { %801 = vrot.lane.b32.xlu1 %v5689_v12, %s4552_s9  ;;  %799 = vrot.lane.b32.xlu0 %v5692_v51, %s4552_s9  ;;  %v5710_v41 = vpop.f32.mrb[0].mxu0 }
 0x1e5   : > { %v5712_v29 = vpop.f32.mrb[1].mxu0  ;;  %4435 = vmatprep.mubr.bf16.mxu0 %v1740_v38  ;;  %v1170_v38 = vsel %vm658_vm3, %v1167_v10, %v1169_v35 }
 0x1e6   : > { %v786_v42 = vpop.permute.xlu1 %785  ;;  %v1719_v43 = vld [vmem:[#allocation2 + $0x98] sm:$0xff]  ;;  %v784_v46 = vpop.permute.xlu0 %783  ;;  %v1718_v20 = vld [vmem:[#allocation2 + $0x90] sm:$0xff] }
 0x1e7   : > { %859 = vst.msk [vmem:[#allocation2 + $0xb8] sm:$0xff] %vm835_vm5, %v786_v42  ;;  %v5715_v16 = vpop.f32.mrb[2].mxu0  ;;  %858 = vst.msk [vmem:[#allocation2 + $0xb0] sm:$0xff] %vm835_vm5, %v784_v46  ;;  %v1741_v32 = vpack.c.bf16 %v1719_v43, %v1718_v20  ;;  %v1168_v43 = vsel %vm658_vm3, %v1166_v59, %v1167_v10  ;;  %v332_v20 = vld [vmem:[%s4695_s30 + $0x1a0] sm:$0xff] }
 0x1e8   : > { %v5718_v24 = vpop.f32.mrb[3].mxu0  ;;  %928 = vrot.lane.b32.xlu1 %v4919_v4, %s4553_s10  ;;  %926 = vrot.lane.b32.xlu0 %v4922_v5, %s4553_s10  ;;  %v1001_v4 = vrot.slane %v329_v33, 1 }
 0x1e9   : > { %v1973_v28 = vadd.f32 %v5718_v24, %v5712_v29  ;;  %4436 = vmatmul.mubr.bf16.gmra.mrb[16].mxu0 %v1741_v32 }
 0x1ea   : > { %v913_v8 = vpop.permute.xlu1 %912  ;;  %v911_v19 = vpop.permute.xlu0 %910  ;;  %v5744_v11 = vsel %vm448_vm2, %v1001_v4, %v1003_v31  ;;  %v5747_v13 = vsel %vm448_vm2, %v1000_v44, %v1001_v4 }
 0x1eb   : > { %v1974_v22 = vadd.f32 %v5710_v41, %v1973_v28  ;;  %988 = vst.msk [vmem:[#allocation2 + $0xa8] sm:$0xff] %vm966_vm6, %v913_v8  ;;  %987 = vst.msk [vmem:[#allocation2 + $0xa0] sm:$0xff] %vm966_vm6, %v911_v19  ;;  %v331_v28 = vld [vmem:[%s4695_s30 + $0x198] sm:$0xff]  ;;  %v333_v8 = vld [vmem:[%s4695_s30 + $0x1a8] sm:$0x3] }
 0x1ec   : > { %932 = vrot.lane.b32.xlu1 %v329_v33, %s4553_s10  ;;  %930 = vrot.lane.b32.xlu0 %v328_v58, %s4553_s10  ;;  %7927 = vst [vmem:[#allocation26_spill] sm:$0xff] %v5744_v11  ;;  %7928 = vst [vmem:[#allocation8_spill] sm:$0xff] %v5747_v13  ;;  %v1435_v19 = vrot.slane %v333_v8, 1  ;;  %v1432_v4 = vrot.slane %v331_v28, 1  ;;  %v1566_v10 = vrot.slane %v331_v28, 2 }
 0x1ed   : > { %v5735_v5 = vadd.f32 %v5715_v16, %v1974_v22  ;;  %v1433_v22 = vrot.slane %v332_v20, 1 }
 0x1ee   : > { %v917_v55 = vpop.permute.xlu1 %916  ;;  %v915_v6 = vpop.permute.xlu0 %914 }
 0x1ef   : > { %990 = vst.msk [vmem:[#allocation2 + $0xb8] sm:$0xff] %vm966_vm6, %v917_v55  ;;  %989 = vst.msk [vmem:[#allocation2 + $0xb0] sm:$0xff] %vm966_vm6, %v915_v6  ;;  %v1434_v55 = vsel %vm448_vm2, %v1432_v4, %v1433_v22 }
 0x1f0   : > { %1095 = vrot.lane.b32.xlu1 %v7925_v1, %s4554_s11  ;;  %1093 = vrot.lane.b32.xlu0 %v7926_v17, %s4554_s11 }
 0x1f2   : > { %v1080_v37 = vpop.permute.xlu1 %1079  ;;  %v1078_v3 = vpop.permute.xlu0 %1077 }
 0x1f3   : > { %1155 = vst.msk [vmem:[#allocation2 + $0xa8] sm:$0xff] %vm1133_vm7, %v1080_v37  ;;  %1154 = vst.msk [vmem:[#allocation2 + $0xa0] sm:$0xff] %vm1133_vm7, %v1078_v3  ;;  %v1567_v37 = vrot.slane %v332_v20, 2  ;;  %v1569_v3 = vrot.slane %v333_v8, 2 }
 0x1f4   : > { %1099 = vrot.lane.b32.xlu1 %v5744_v11, %s4554_s11  ;;  %1097 = vrot.lane.b32.xlu0 %v5747_v13, %s4554_s11 }
 0x1f6   : > { %v1084_v56 = vpop.permute.xlu1 %1083  ;;  %v1082_v25 = vpop.permute.xlu0 %1081 }
 0x1f7   : > { %1157 = vst.msk [vmem:[#allocation2 + $0xb8] sm:$0xff] %vm1133_vm7, %v1084_v56  ;;  %1156 = vst.msk [vmem:[#allocation2 + $0xb0] sm:$0xff] %vm1133_vm7, %v1082_v25  ;;  %v1570_v56 = vsel %vm658_vm3, %v1567_v37, %v1569_v3 }
 0x1f8   : > { %1229 = vrot.lane.b32.xlu1 %v5689_v12, %s4555_s16  ;;  %1227 = vrot.lane.b32.xlu0 %v5692_v51, %s4555_s16 }
 0x1fa   : > { %v1214_v42 = vpop.permute.xlu1 %1213  ;;  %v1212_v46 = vpop.permute.xlu0 %1211 }
 0x1fb   : > { %1289 = vst.msk [vmem:[#allocation2 + $0xa8] sm:$0xff] %vm1267_vm8, %v1214_v42  ;;  %1288 = vst.msk [vmem:[#allocation2 + $0xa0] sm:$0xff] %vm1267_vm8, %v1212_v46  ;;  %v1568_v42 = vsel %vm658_vm3, %v1566_v10, %v1567_v37 }
 0x1fc   : > { %1233 = vrot.lane.b32.xlu1 %v1170_v38, %s4555_s16  ;;  %1231 = vrot.lane.b32.xlu0 %v1168_v43, %s4555_s16 }
 0x1fe   : > { %v1218_v12 = vpop.permute.xlu1 %1217  ;;  %v1216_v51 = vpop.permute.xlu0 %1215 }
 0x1ff   : > { %1291 = vst.msk [vmem:[#allocation2 + $0xb8] sm:$0xff] %vm1267_vm8, %v1218_v12  ;;  %1290 = vst.msk [vmem:[#allocation2 + $0xb0] sm:$0xff] %vm1267_vm8, %v1216_v51 }
 0x200   : > { %1360 = vrot.lane.b32.xlu1 %v329_v33, %s4556_s21  ;;  %1358 = vrot.lane.b32.xlu0 %v328_v58, %s4556_s21  ;;  %v1436_v58 = vsel %vm448_vm2, %v1433_v22, %v1435_v19 }
 0x202   : > { %v1345_v32 = vpop.permute.xlu1 %1344  ;;  %v1343_v63 = vpop.permute.xlu0 %1342 }
 0x203   : > { %1420 = vst.msk [vmem:[#allocation2 + $0xa8] sm:$0xff] %vm1398_vm9, %v1345_v32  ;;  %1419 = vst.msk [vmem:[#allocation2 + $0xa0] sm:$0xff] %vm1398_vm9, %v1343_v63 }
 0x204   : > { %1364 = vrot.lane.b32.xlu1 %v332_v20, %s4556_s21  ;;  %1362 = vrot.lane.b32.xlu0 %v331_v28, %s4556_s21 }
 0x206   : > { %v1349_v31 = vpop.permute.xlu1 %1348  ;;  %v1347_v33 = vpop.permute.xlu0 %1346 }
 0x207   : > { %1422 = vst.msk [vmem:[#allocation2 + $0xb8] sm:$0xff] %vm1398_vm9, %v1349_v31  ;;  %1421 = vst.msk [vmem:[#allocation2 + $0xb0] sm:$0xff] %vm1398_vm9, %v1347_v33 }
 0x208   : > { %1495 = vrot.lane.b32.xlu1 %v5744_v11, %s4557_s28  ;;  %1493 = vrot.lane.b32.xlu0 %v5747_v13, %s4557_s28 }
 0x20a   : > { %v1480_v44 = vpop.permute.xlu1 %1479  ;;  %v1478_v6 = vpop.permute.xlu0 %1477 }
 0x20b   : > { %1555 = vst.msk [vmem:[#allocation2 + $0xa8] sm:$0xff] %vm1533_vm10, %v1480_v44  ;;  %1554 = vst.msk [vmem:[#allocation2 + $0xa0] sm:$0xff] %vm1533_vm10, %v1478_v6 }
 0x20c   : > { %1499 = vrot.lane.b32.xlu1 %v1436_v58, %s4557_s28  ;;  %1497 = vrot.lane.b32.xlu0 %v1434_v55, %s4557_s28 }
 0x20e   : > { %v1484_v35 = vpop.permute.xlu1 %1483  ;;  %v1482_v59 = vpop.permute.xlu0 %1481 }
 0x20f   : > { %1557 = vst.msk [vmem:[#allocation2 + $0xb8] sm:$0xff] %vm1533_vm10, %v1484_v35  ;;  %1556 = vst.msk [vmem:[#allocation2 + $0xb0] sm:$0xff] %vm1533_vm10, %v1482_v59 }
 0x210   : > { %1629 = vrot.lane.b32.xlu1 %v1170_v38, %s4558_s15  ;;  %1627 = vrot.lane.b32.xlu0 %v1168_v43, %s4558_s15 }
 0x212   : > { %v1614_v25 = vpop.permute.xlu1 %1613  ;;  %v1612_v46 = vpop.permute.xlu0 %1611 }
 0x213   : > { %1689 = vst.msk [vmem:[#allocation2 + $0xa8] sm:$0xff] %vm1667_vm11, %v1614_v25  ;;  %1688 = vst.msk [vmem:[#allocation2 + $0xa0] sm:$0xff] %vm1667_vm11, %v1612_v46 }
 0x214   : > { %1633 = vrot.lane.b32.xlu1 %v1570_v56, %s4558_s15  ;;  %1631 = vrot.lane.b32.xlu0 %v1568_v42, %s4558_s15  ;;  %v5800_v12 = vpop.f32.mrb[4].mxu0 }
 0x215   : > { %v5802_v51 = vpop.f32.mrb[5].mxu0 }
 0x216   : > { %v1618_v38 = vpop.permute.xlu1 %1617  ;;  %v1976_v43 = vadd.f32 %v5735_v5, %v5802_v51  ;;  %v1616_v20 = vpop.permute.xlu0 %1615 }
 0x217   : > { %1691 = vst.msk [vmem:[#allocation2 + $0xb8] sm:$0xff] %vm1667_vm11, %v1618_v38  ;;  %v5807_v32 = vpop.f32.mrb[6].mxu0  ;;  %1690 = vst.msk [vmem:[#allocation2 + $0xb0] sm:$0xff] %vm1667_vm11, %v1616_v20 }
 0x218   : > { %v5810_v28 = vpop.f32.mrb[7].mxu0 }
 0x219   : > { %v1977_v8 = vadd.f32 %v1976_v43, %v5810_v28 }
 0x21a   : > { %v790_v63 = vpop.permute.xlu1 %789  ;;  %v1721_v22 = vld [vmem:[#allocation2 + $0xa8] sm:$0xff]  ;;  %v788_v4 = vpop.permute.xlu0 %787  ;;  %v1720_v31 = vld [vmem:[#allocation2 + $0xa0] sm:$0xff] }
 0x21b   : > { %v1978_v19 = vadd.f32 %v5800_v12, %v1977_v8  ;;  %861 = vst.msk [vmem:[#allocation2 + $0xc8] sm:$0xff] %vm835_vm5, %v790_v63  ;;  %860 = vst.msk [vmem:[#allocation2 + $0xc0] sm:$0xff] %vm835_vm5, %v788_v4  ;;  %v1742_v5 = vpack.c.bf16 %v1721_v22, %v1720_v31 }
 0x21d   : > { %v1979_v33 = vadd.f32 %v5807_v32, %v1978_v19  ;;  %4439 = vmatprep.mubr.bf16.mxu0 %v1742_v5 }
 0x21e   : > { %v794_v58 = vpop.permute.xlu1 %793  ;;  %v1723_v44 = vld [vmem:[#allocation2 + $0xb8] sm:$0xff]  ;;  %v792_v55 = vpop.permute.xlu0 %791  ;;  %v1722_v6 = vld [vmem:[#allocation2 + $0xb0] sm:$0xff] }
 0x21f   : > { %863 = vst.msk [vmem:[#allocation2 + $0xd8] sm:$0xff] %vm835_vm5, %v794_v58  ;;  %862 = vst.msk [vmem:[#allocation2 + $0xd0] sm:$0xff] %vm835_vm5, %v792_v55  ;;  %v1743_v37 = vpack.c.bf16 %v1723_v44, %v1722_v6 }
 0x221   : > { %4440 = vmatmul.mubr.bf16.gmra.mrb[20].mxu0 %v1743_v37 }
 0x222   : > { %v921_v3 = vpop.permute.xlu1 %920  ;;  %v919_v10 = vpop.permute.xlu0 %918 }
 0x223   : > { %992 = vst.msk [vmem:[#allocation2 + $0xc8] sm:$0xff] %vm966_vm6, %v921_v3  ;;  %991 = vst.msk [vmem:[#allocation2 + $0xc0] sm:$0xff] %vm966_vm6, %v919_v10 }
 0x226   : > { %v925_v35 = vpop.permute.xlu1 %924  ;;  %v923_v59 = vpop.permute.xlu0 %922 }
 0x227   : > { %994 = vst.msk [vmem:[#allocation2 + $0xd8] sm:$0xff] %vm966_vm6, %v925_v35  ;;  %993 = vst.msk [vmem:[#allocation2 + $0xd0] sm:$0xff] %vm966_vm6, %v923_v59 }
 0x22a   : > { %v1088_v56 = vpop.permute.xlu1 %1087  ;;  %v1086_v25 = vpop.permute.xlu0 %1085 }
 0x22b   : > { %1159 = vst.msk [vmem:[#allocation2 + $0xc8] sm:$0xff] %vm1133_vm7, %v1088_v56  ;;  %1158 = vst.msk [vmem:[#allocation2 + $0xc0] sm:$0xff] %vm1133_vm7, %v1086_v25 }
 0x22e   : > { %v1092_v42 = vpop.permute.xlu1 %1091  ;;  %v1090_v46 = vpop.permute.xlu0 %1089 }
 0x22f   : > { %1161 = vst.msk [vmem:[#allocation2 + $0xd8] sm:$0xff] %vm1133_vm7, %v1092_v42  ;;  %1160 = vst.msk [vmem:[#allocation2 + $0xd0] sm:$0xff] %vm1133_vm7, %v1090_v46 }
 0x232   : > { %v1222_v38 = vpop.permute.xlu1 %1221  ;;  %v1220_v43 = vpop.permute.xlu0 %1219 }
 0x233   : > { %1293 = vst.msk [vmem:[#allocation2 + $0xc8] sm:$0xff] %vm1267_vm8, %v1222_v38  ;;  %1292 = vst.msk [vmem:[#allocation2 + $0xc0] sm:$0xff] %vm1267_vm8, %v1220_v43 }
 0x236   : > { %v1226_v20 = vpop.permute.xlu1 %1225  ;;  %v1224_v8 = vpop.permute.xlu0 %1223 }
 0x237   : > { %1295 = vst.msk [vmem:[#allocation2 + $0xd8] sm:$0xff] %vm1267_vm8, %v1226_v20  ;;  %1294 = vst.msk [vmem:[#allocation2 + $0xd0] sm:$0xff] %vm1267_vm8, %v1224_v8 }
 0x23a   : > { %v1353_v63 = vpop.permute.xlu1 %1352  ;;  %v1351_v22 = vpop.permute.xlu0 %1350 }
 0x23b   : > { %1424 = vst.msk [vmem:[#allocation2 + $0xc8] sm:$0xff] %vm1398_vm9, %v1353_v63  ;;  %1423 = vst.msk [vmem:[#allocation2 + $0xc0] sm:$0xff] %vm1398_vm9, %v1351_v22 }
 0x23e   : > { %v1357_v19 = vpop.permute.xlu1 %1356  ;;  %v1355_v4 = vpop.permute.xlu0 %1354 }
 0x23f   : > { %1426 = vst.msk [vmem:[#allocation2 + $0xd8] sm:$0xff] %vm1398_vm9, %v1357_v19  ;;  %1425 = vst.msk [vmem:[#allocation2 + $0xd0] sm:$0xff] %vm1398_vm9, %v1355_v4 }
 0x242   : > { %v1488_v31 = vpop.permute.xlu1 %1487  ;;  %v1486_v5 = vpop.permute.xlu0 %1485 }
 0x243   : > { %1559 = vst.msk [vmem:[#allocation2 + $0xc8] sm:$0xff] %vm1533_vm10, %v1488_v31  ;;  %1558 = vst.msk [vmem:[#allocation2 + $0xc0] sm:$0xff] %vm1533_vm10, %v1486_v5 }
 0x246   : > { %v1492_v58 = vpop.permute.xlu1 %1491  ;;  %v1490_v44 = vpop.permute.xlu0 %1489 }
 0x247   : > { %1561 = vst.msk [vmem:[#allocation2 + $0xd8] sm:$0xff] %vm1533_vm10, %v1492_v58  ;;  %1560 = vst.msk [vmem:[#allocation2 + $0xd0] sm:$0xff] %vm1533_vm10, %v1490_v44 }
 0x24a   : > { %v1622_v55 = vpop.permute.xlu1 %1621  ;;  %v1620_v6 = vpop.permute.xlu0 %1619 }
 0x24b   : > { %1693 = vst.msk [vmem:[#allocation2 + $0xc8] sm:$0xff] %vm1667_vm11, %v1622_v55  ;;  %1692 = vst.msk [vmem:[#allocation2 + $0xc0] sm:$0xff] %vm1667_vm11, %v1620_v6 }
 0x24c   : > { %v5841_v37 = vpop.f32.mrb[8].mxu0 }
 0x24d   : > { %v5843_v3 = vpop.f32.mrb[9].mxu0 }
 0x24e   : > { %v1626_v10 = vpop.permute.xlu1 %1625  ;;  %v1980_v35 = vadd.f32 %v1979_v33, %v5843_v3  ;;  %v1624_v59 = vpop.permute.xlu0 %1623 }
 0x24f   : > { %1695 = vst.msk [vmem:[#allocation2 + $0xd8] sm:$0xff] %vm1667_vm11, %v1626_v10  ;;  %v5847_v56 = vpop.f32.mrb[10].mxu0  ;;  %1694 = vst.msk [vmem:[#allocation2 + $0xd0] sm:$0xff] %vm1667_vm11, %v1624_v59 }
 0x250   : > { %v5850_v25 = vpop.f32.mrb[11].mxu0 }
 0x251   : > { %v1981_v42 = vadd.f32 %v1980_v35, %v5850_v25 }
 0x252   : > { %v798_v46 = vpop.permute.xlu1 %797  ;;  %v1725_v38 = vld [vmem:[#allocation2 + $0xc8] sm:$0xff]  ;;  %v796_v20 = vpop.permute.xlu0 %795  ;;  %v1724_v8 = vld [vmem:[#allocation2 + $0xc0] sm:$0xff] }
 0x253   : > { %v1982_v43 = vadd.f32 %v5841_v37, %v1981_v42  ;;  %865 = vst.msk [vmem:[#allocation2 + $0xe8] sm:$0xff] %vm835_vm5, %v798_v46  ;;  %864 = vst.msk [vmem:[#allocation2 + $0xe0] sm:$0xff] %vm835_vm5, %v796_v20  ;;  %v1744_v33 = vpack.c.bf16 %v1725_v38, %v1724_v8 }
 0x255   : > { %v1983_v63 = vadd.f32 %v5847_v56, %v1982_v43  ;;  %4443 = vmatprep.mubr.bf16.mxu0 %v1744_v33 }
 0x256   : > { %v802_v22 = vpop.permute.xlu1 %801  ;;  %v1727_v19 = vld [vmem:[#allocation2 + $0xd8] sm:$0xff]  ;;  %v800_v4 = vpop.permute.xlu0 %799  ;;  %v1726_v31 = vld [vmem:[#allocation2 + $0xd0] sm:$0xff] }
 0x257   : > { %867 = vst.msk [vmem:[#allocation2 + $0xf8] sm:$0xff] %vm835_vm5, %v802_v22  ;;  %866 = vst.msk [vmem:[#allocation2 + $0xf0] sm:$0xff] %vm835_vm5, %v800_v4  ;;  %v1745_v5 = vpack.c.bf16 %v1727_v19, %v1726_v31 }
 0x259   : > { %4444 = vmatmul.mubr.bf16.gmra.mrb[24].mxu0 %v1745_v5 }
 0x25a   : > { %v929_v58 = vpop.permute.xlu1 %928  ;;  %v927_v44 = vpop.permute.xlu0 %926 }
 0x25b   : > { %996 = vst.msk [vmem:[#allocation2 + $0xe8] sm:$0xff] %vm966_vm6, %v929_v58  ;;  %995 = vst.msk [vmem:[#allocation2 + $0xe0] sm:$0xff] %vm966_vm6, %v927_v44 }
 0x25e   : > { %v933_v55 = vpop.permute.xlu1 %932  ;;  %v931_v6 = vpop.permute.xlu0 %930 }
 0x25f   : > { %998 = vst.msk [vmem:[#allocation2 + $0xf8] sm:$0xff] %vm966_vm6, %v933_v55  ;;  %997 = vst.msk [vmem:[#allocation2 + $0xf0] sm:$0xff] %vm966_vm6, %v931_v6 }
 0x262   : > { %v1096_v10 = vpop.permute.xlu1 %1095  ;;  %v1094_v35 = vpop.permute.xlu0 %1093 }
 0x263   : > { %1163 = vst.msk [vmem:[#allocation2 + $0xe8] sm:$0xff] %vm1133_vm7, %v1096_v10  ;;  %1162 = vst.msk [vmem:[#allocation2 + $0xe0] sm:$0xff] %vm1133_vm7, %v1094_v35 }
 0x266   : > { %v1100_v59 = vpop.permute.xlu1 %1099  ;;  %v1098_v42 = vpop.permute.xlu0 %1097 }
 0x267   : > { %1165 = vst.msk [vmem:[#allocation2 + $0xf8] sm:$0xff] %vm1133_vm7, %v1100_v59  ;;  %1164 = vst.msk [vmem:[#allocation2 + $0xf0] sm:$0xff] %vm1133_vm7, %v1098_v42 }
 0x26a   : > { %v1230_v46 = vpop.permute.xlu1 %1229  ;;  %v1228_v38 = vpop.permute.xlu0 %1227 }
 0x26b   : > { %1297 = vst.msk [vmem:[#allocation2 + $0xe8] sm:$0xff] %vm1267_vm8, %v1230_v46  ;;  %1296 = vst.msk [vmem:[#allocation2 + $0xe0] sm:$0xff] %vm1267_vm8, %v1228_v38 }
 0x26e   : > { %v1234_v43 = vpop.permute.xlu1 %1233  ;;  %v1232_v20 = vpop.permute.xlu0 %1231 }
 0x26f   : > { %1299 = vst.msk [vmem:[#allocation2 + $0xf8] sm:$0xff] %vm1267_vm8, %v1234_v43  ;;  %1298 = vst.msk [vmem:[#allocation2 + $0xf0] sm:$0xff] %vm1267_vm8, %v1232_v20 }
 0x272   : > { %v1361_v8 = vpop.permute.xlu1 %1360  ;;  %v1359_v33 = vpop.permute.xlu0 %1358 }
 0x273   : > { %1428 = vst.msk [vmem:[#allocation2 + $0xe8] sm:$0xff] %vm1398_vm9, %v1361_v8  ;;  %1427 = vst.msk [vmem:[#allocation2 + $0xe0] sm:$0xff] %vm1398_vm9, %v1359_v33 }
 0x276   : > { %v1365_v22 = vpop.permute.xlu1 %1364  ;;  %v1363_v19 = vpop.permute.xlu0 %1362 }
 0x277   : > { %1430 = vst.msk [vmem:[#allocation2 + $0xf8] sm:$0xff] %vm1398_vm9, %v1365_v22  ;;  %1429 = vst.msk [vmem:[#allocation2 + $0xf0] sm:$0xff] %vm1398_vm9, %v1363_v19 }
 0x27a   : > { %v1496_v4 = vpop.permute.xlu1 %1495  ;;  %v1494_v31 = vpop.permute.xlu0 %1493 }
 0x27b   : > { %1563 = vst.msk [vmem:[#allocation2 + $0xe8] sm:$0xff] %vm1533_vm10, %v1496_v4  ;;  %1562 = vst.msk [vmem:[#allocation2 + $0xe0] sm:$0xff] %vm1533_vm10, %v1494_v31 }
 0x27e   : > { %v1500_v5 = vpop.permute.xlu1 %1499  ;;  %v1498_v58 = vpop.permute.xlu0 %1497 }
 0x27f   : > { %1565 = vst.msk [vmem:[#allocation2 + $0xf8] sm:$0xff] %vm1533_vm10, %v1500_v5  ;;  %1564 = vst.msk [vmem:[#allocation2 + $0xf0] sm:$0xff] %vm1533_vm10, %v1498_v58 }
 0x282   : > { %v1630_v44 = vpop.permute.xlu1 %1629  ;;  %v1628_v55 = vpop.permute.xlu0 %1627 }
 0x283   : > { %1697 = vst.msk [vmem:[#allocation2 + $0xe8] sm:$0xff] %vm1667_vm11, %v1630_v44  ;;  %1696 = vst.msk [vmem:[#allocation2 + $0xe0] sm:$0xff] %vm1667_vm11, %v1628_v55 }
 0x284   : > { %v5881_v6 = vpop.f32.mrb[12].mxu0 }
 0x285   : > { %v5883_v10 = vpop.f32.mrb[13].mxu0 }
 0x286   : > { %v1634_v35 = vpop.permute.xlu1 %1633  ;;  %v1984_v59 = vadd.f32 %v1983_v63, %v5883_v10  ;;  %v1632_v42 = vpop.permute.xlu0 %1631 }
 0x287   : > { %1699 = vst.msk [vmem:[#allocation2 + $0xf8] sm:$0xff] %vm1667_vm11, %v1634_v35  ;;  %v5887_v46 = vpop.f32.mrb[14].mxu0  ;;  %1698 = vst.msk [vmem:[#allocation2 + $0xf0] sm:$0xff] %vm1667_vm11, %v1632_v42 }
 0x288   : > { %v5890_v38 = vpop.f32.mrb[15].mxu0 }
 0x289   : > { %v1985_v43 = vadd.f32 %v1984_v59, %v5890_v38 }
 0x28a   : > { %v1729_v20 = vld [vmem:[#allocation2 + $0xe8] sm:$0xff]  ;;  %v1728_v33 = vld [vmem:[#allocation2 + $0xe0] sm:$0xff] }
 0x28b   : > { %v1986_v8 = vadd.f32 %v5881_v6, %v1985_v43  ;;  %v1746_v22 = vpack.c.bf16 %v1729_v20, %v1728_v33 }
 0x28d   : > { %v1987_v19 = vadd.f32 %v5887_v46, %v1986_v8  ;;  %4447 = vmatprep.mubr.bf16.mxu0 %v1746_v22 }
 0x28e   : > { %v1731_v63 = vld [vmem:[#allocation2 + $0xf8] sm:$0xff]  ;;  %v1730_v4 = vld [vmem:[#allocation2 + $0xf0] sm:$0xff] }
 0x28f   : > { %v1747_v31 = vpack.c.bf16 %v1731_v63, %v1730_v4 }
 0x291   : > { %4448 = vmatmul.mubr.bf16.gmra.mrb[28].mxu0 %v1747_v31 }
 0x2bc   : > { %v5895_v5 = vpop.f32.mrb[16].mxu0 }
 0x2bd   : > { %v5897_v58 = vpop.f32.mrb[17].mxu0 }
 0x2be   : > { %v1988_v44 = vadd.f32 %v1987_v19, %v5897_v58  ;;  %v5900_v55 = vpop.f32.mrb[18].mxu0 }
 0x2bf   : > { %v5902_v35 = vpop.f32.mrb[19].mxu0 }
 0x2c0   : > { %v1989_v59 = vadd.f32 %v1988_v44, %v5902_v35 }
 0x2c2   : > { %v1990_v42 = vadd.f32 %v5895_v5, %v1989_v59 }
 0x2c4   : > { %v1991_v43 = vadd.f32 %v5900_v55, %v1990_v42 }
 0x2f4   : > { %v5907_v20 = vpop.f32.mrb[20].mxu0 }
 0x2f5   : > { %v5909_v8 = vpop.f32.mrb[21].mxu0 }
 0x2f6   : > { %v1992_v33 = vadd.f32 %v1991_v43, %v5909_v8  ;;  %v5912_v22 = vpop.f32.mrb[22].mxu0 }
 0x2f7   : > { %v5914_v63 = vpop.f32.mrb[23].mxu0 }
 0x2f8   : > { %v1993_v19 = vadd.f32 %v1992_v33, %v5914_v63 }
 0x2fa   : > { %v1994_v4 = vadd.f32 %v5907_v20, %v1993_v19 }
 0x2fc   : > { %v1995_v31 = vadd.f32 %v5912_v22, %v1994_v4 }
 0x32c   : > { %v5919_v44 = vpop.f32.mrb[24].mxu0 }
 0x32d   : > { %v5921_v59 = vpop.f32.mrb[25].mxu0 }
 0x32e   : > { %v1996_v42 = vadd.f32 %v1995_v31, %v5921_v59  ;;  %v5924_v11 = vpop.f32.mrb[26].mxu0 }
 0x32f   : > { %v5926_v13 = vpop.f32.mrb[27].mxu0 }
 0x330   : > { %v1997_v43 = vadd.f32 %v1996_v42, %v5926_v13 }
 0x332   : > { %v1998_v1 = vadd.f32 %v5919_v44, %v1997_v43  ;;  %v5943_v43 = vld [vmem:[#allocation3 + $0x8] sm:$0xff] }
 0x333   : > { %2391 = vst.msk [vmem:[#allocation2 + $0x8] sm:$0xff] %vm367_vm1, %v5943_v43 }
 0x334   : > { %v1999_v33 = vadd.f32 %v5924_v11, %v1998_v1 }
 0x364   : > { %v5931_v17 = vpop.f32.mrb[28].mxu0 }
 0x365   : > { %v5933_v19 = vpop.f32.mrb[29].mxu0 }
 0x366   : > { %v2000_v4 = vadd.f32 %v1999_v33, %v5933_v19  ;;  %v5936_v57 = vpop.f32.mrb[30].mxu0 }
 0x367   : > { %v5938_v36 = vpop.f32.mrb[31].mxu0 }
 0x368   : > { %v2001_v31 = vadd.f32 %v2000_v4, %v5938_v36 }
 0x36a   : > { %v2002_v52 = vadd.f32 %v5931_v17, %v2001_v31  ;;  %v2471_v31 = vrot.slane %v5943_v43, 1 }
 0x36c   : > { %v2003_v42 = vadd.f32 %v5936_v57, %v2002_v52  ;;  %v2472_v18 = vsel %vm448_vm2, %v2470_v30, %v2471_v31 }
 0x36d   : > { %2550 = vrot.lane.b32.xlu0 %v2472_v18, %s4551_s8 }
 0x36e   : > { %v2004_v1 = vrot.slane %v2003_v42, 4 }
 0x370   : > { %v2005_v52 = vadd.f32 %v2004_v1, %v2003_v42  ;;  %v2474_v42 = vsel %vm448_vm2, %v2471_v31, %v2473_v0 }
 0x371   : > { %2552 = vrot.lane.b32.xlu1 %v2474_v42, %s4551_s8 }
 0x372   : > { %v2006_v33 = vrot.slane %v2005_v52, 2 }
 0x374   : > { %v2007_v4 = vadd.f32 %v2006_v33, %v2005_v52 }
 0x376   : > { %v2008_v50 = vrot.slane %v2007_v4, 1 }
 0x378   : > { %v2009_v40 = vadd.f32 %v2008_v50, %v2007_v4 }
 0x37a   : > { %v2011_v1 = vmul.f32 0.00390625, %v2009_v40 }
 0x37c   : > { %v6035_v52 = vsub.f32 %v5712_v29, %v2011_v1  ;;  %v6038_v33 = vsub.f32 %v5718_v24, %v2011_v1  ;;  %v6041_v62 = vsub.f32 %v5710_v41, %v2011_v1  ;;  %v6044_v50 = vsub.f32 %v5715_v16, %v2011_v1 }
 0x37d   : > { %v6047_v30 = vsub.f32 %v5802_v51, %v2011_v1  ;;  %v6050_v0 = vsub.f32 %v5810_v28, %v2011_v1  ;;  %v6053_v40 = vsub.f32 %v5800_v12, %v2011_v1  ;;  %v6056_v29 = vsub.f32 %v5807_v32, %v2011_v1 }
 0x37e   : > { %v6059_v24 = vsub.f32 %v5843_v3, %v2011_v1  ;;  %v6062_v41 = vsub.f32 %v5850_v25, %v2011_v1  ;;  %v6065_v16 = vsub.f32 %v5841_v37, %v2011_v1  ;;  %v6068_v51 = vsub.f32 %v5847_v56, %v2011_v1 }
 0x37f   : > { %v6071_v28 = vsub.f32 %v5883_v10, %v2011_v1  ;;  %v6074_v12 = vsub.f32 %v5890_v38, %v2011_v1  ;;  %v6077_v32 = vsub.f32 %v5881_v6, %v2011_v1  ;;  %v6080_v3 = vsub.f32 %v5887_v46, %v2011_v1 }
 0x380   : > { %v6083_v25 = vsub.f32 %v5897_v58, %v2011_v1  ;;  %v6086_v37 = vsub.f32 %v5902_v35, %v2011_v1  ;;  %v6089_v56 = vsub.f32 %v5895_v5, %v2011_v1  ;;  %v6092_v10 = vsub.f32 %v5900_v55, %v2011_v1 }
 0x381   : > { %v6095_v38 = vsub.f32 %v5909_v8, %v2011_v1  ;;  %v6098_v6 = vsub.f32 %v5914_v63, %v2011_v1  ;;  %v6101_v46 = vsub.f32 %v5907_v20, %v2011_v1  ;;  %v6104_v58 = vsub.f32 %v5912_v22, %v2011_v1 }
 0x382   : > { %v6107_v35 = vsub.f32 %v5921_v59, %v2011_v1  ;;  %v6110_v5 = vsub.f32 %v5926_v13, %v2011_v1  ;;  %v6113_v55 = vsub.f32 %v5919_v44, %v2011_v1  ;;  %v6116_v8 = vsub.f32 %v5924_v11, %v2011_v1 }
 0x383   : > { %v6119_v63 = vsub.f32 %v5933_v19, %v2011_v1  ;;  %v6122_v20 = vsub.f32 %v5938_v36, %v2011_v1  ;;  %v6125_v22 = vsub.f32 %v5931_v17, %v2011_v1  ;;  %v6128_v59 = vsub.f32 %v5936_v57, %v2011_v1 }
 0x384   : > { %v2044_v13 = vmul.f32 %v6035_v52, %v6035_v52  ;;  %v2045_v44 = vmul.f32 %v6038_v33, %v6038_v33  ;;  %v2046_v11 = vmul.f32 %v6041_v62, %v6041_v62  ;;  %v2047_v36 = vmul.f32 %v6044_v50, %v6044_v50 }
 0x385   : > { %v2048_v17 = vmul.f32 %v6047_v30, %v6047_v30  ;;  %v2049_v57 = vmul.f32 %v6050_v0, %v6050_v0  ;;  %v2050_v42 = vmul.f32 %v6053_v40, %v6053_v40  ;;  %v2051_v61 = vmul.f32 %v6056_v29, %v6056_v29 }
 0x386   : > { %v2076_v19 = vadd.f32 %v2045_v44, %v2044_v13  ;;  %v2052_v44 = vmul.f32 %v6059_v24, %v6059_v24 }
 0x388   : > { %v2077_v4 = vadd.f32 %v2076_v19, %v2046_v11  ;;  %v2053_v19 = vmul.f32 %v6062_v41, %v6062_v41 }
 0x38a   : > { %v2078_v31 = vadd.f32 %v2077_v4, %v2047_v36  ;;  %v2054_v4 = vmul.f32 %v6065_v16, %v6065_v16 }
 0x38c   : > { %v2079_v18 = vadd.f32 %v2078_v31, %v2048_v17  ;;  %v2055_v31 = vmul.f32 %v6068_v51, %v6068_v51 }
 0x38e   : > { %v2080_v1 = vadd.f32 %v2079_v18, %v2049_v57  ;;  %v2056_v18 = vmul.f32 %v6071_v28, %v6071_v28 }
 0x390   : > { %v2081_v13 = vadd.f32 %v2080_v1, %v2050_v42  ;;  %v2057_v1 = vmul.f32 %v6074_v12, %v6074_v12 }
 0x392   : > { %v2082_v11 = vadd.f32 %v2081_v13, %v2051_v61  ;;  %v2058_v13 = vmul.f32 %v6077_v32, %v6077_v32 }
 0x394   : > { %v2083_v36 = vadd.f32 %v2082_v11, %v2052_v44  ;;  %v2059_v11 = vmul.f32 %v6080_v3, %v6080_v3 }
 0x396   : > { %v2084_v17 = vadd.f32 %v2083_v36, %v2053_v19  ;;  %v2060_v36 = vmul.f32 %v6083_v25, %v6083_v25 }
 0x398   : > { %v2085_v57 = vadd.f32 %v2084_v17, %v2054_v4  ;;  %v2061_v17 = vmul.f32 %v6086_v37, %v6086_v37 }
 0x39a   : > { %v2086_v42 = vadd.f32 %v2085_v57, %v2055_v31  ;;  %v2062_v57 = vmul.f32 %v6089_v56, %v6089_v56 }
 0x39c   : > { %v2087_v61 = vadd.f32 %v2086_v42, %v2056_v18  ;;  %v2063_v42 = vmul.f32 %v6092_v10, %v6092_v10 }
 0x39e   : > { %v2088_v44 = vadd.f32 %v2087_v61, %v2057_v1  ;;  %v2678_v61 = vrot.slane %v6022_v47, 2  ;;  %v2067_v47 = vmul.f32 %v6104_v58, %v6104_v58 }
 0x3a0   : > { %v2089_v19 = vadd.f32 %v2088_v44, %v2058_v13  ;;  %v2679_v13 = vrot.slane %v5943_v43, 2  ;;  %v2064_v44 = vmul.f32 %v6095_v38, %v6095_v38  ;;  %v2681_v43 = vrot.slane %v6024_v45, 2 }
 0x3a1   : > { %v2072_v45 = vmul.f32 %v6119_v63, %v6119_v63 }
 0x3a2   : > { %v2090_v4 = vadd.f32 %v2089_v19, %v2059_v11  ;;  %v6175_v19 = vsel %vm658_vm3, %v2678_v61, %v2679_v13  ;;  %v2069_v61 = vmul.f32 %v6110_v5, %v6110_v5 }
 0x3a4   : > { %v2091_v31 = vadd.f32 %v2090_v4, %v2060_v36  ;;  %v2065_v36 = vmul.f32 %v6098_v6, %v6098_v6 }
 0x3a6   : > { %v2092_v18 = vadd.f32 %v2091_v31, %v2061_v17  ;;  %v2066_v17 = vmul.f32 %v6101_v46, %v6101_v46 }
 0x3a8   : > { %v2093_v1 = vadd.f32 %v2092_v18, %v2062_v57  ;;  %v2068_v18 = vmul.f32 %v6107_v35, %v6107_v35 }
 0x3aa   : > { %v2094_v11 = vadd.f32 %v2093_v1, %v2063_v42  ;;  %v6187_v1 = vsel %vm658_vm3, %v2679_v13, %v2681_v43  ;;  %v2073_v13 = vmul.f32 %v6122_v20, %v6122_v20 }
 0x3ac   : > { %v2095_v4 = vadd.f32 %v2094_v11, %v2064_v44  ;;  %v2070_v11 = vmul.f32 %v6113_v55, %v6113_v55 }
 0x3ae   : > { %v2096_v31 = vadd.f32 %v2095_v4, %v2065_v36  ;;  %v2071_v4 = vmul.f32 %v6116_v8, %v6116_v8 }
 0x3b0   : > { %v2097_v57 = vadd.f32 %v2096_v31, %v2066_v17 }
 0x3b2   : > { %v2098_v42 = vadd.f32 %v2097_v57, %v2067_v47  ;;  %v2074_v57 = vmul.f32 %v6125_v22, %v6125_v22 }
 0x3b4   : > { %v2099_v44 = vadd.f32 %v2098_v42, %v2068_v18  ;;  %v2075_v18 = vmul.f32 %v6128_v59, %v6128_v59 }
 0x3b6   : > { %v2100_v36 = vadd.f32 %v2099_v44, %v2069_v61 }
 0x3b8   : > { %v2101_v17 = vadd.f32 %v2100_v36, %v2070_v11 }
 0x3ba   : > { %v2102_v31 = vadd.f32 %v2101_v17, %v2071_v4 }
 0x3bc   : > { %v2103_v47 = vadd.f32 %v2102_v31, %v2072_v45  ;;  %v6206_v45 = vld [vmem:[%s7781_s2] ss:$0 sm:$0xff] }
 0x3be   : > { %v2104_v43 = vadd.f32 %v2103_v47, %v2073_v13 }
 0x3c0   : > { %v2105_v42 = vadd.f32 %v2104_v43, %v2074_v57 }
 0x3c2   : > { %v2106_v61 = vadd.f32 %v2105_v42, %v2075_v18 }
 0x3c4   : > { %v2107_v44 = vrot.slane %v2106_v61, 4 }
 0x3c6   : > { %v2108_v26 = vadd.f32 %v2107_v44, %v2106_v61 }
 0x3c8   : > { %v2109_v11 = vrot.slane %v2108_v26, 2 }
 0x3ca   : > { %v2110_v36 = vadd.f32 %v2109_v11, %v2108_v26 }
 0x3cc   : > { %v2111_v2 = vrot.slane %v2110_v36, 1 }
 0x3ce   : > { %v2112_v54 = vadd.f32 %v2111_v2, %v2110_v36 }
 0x3d0   : > { %v2113_v4 = vmul.f32 0.00390625, %v2112_v54  ;;  %v6215_v54 = vld [vmem:[%s7782_s3] ss:$0 sm:$0xff] }
 0x3d2   : > { %v2114_v17 = vadd.f32 1e-05, %v2113_v4 }
 0x3d4   : > { %4533 = vrsqrt.f32 %v2114_v17 }
 0x3de   : > { %v4534_v9 = vpop.eup %4533 }
 0x3df   : > { %v2145_v31 = vmul.f32 %v4534_v9, %v6122_v20  ;;  %v2116_v13 = vmul.f32 %v4534_v9, %v6035_v52  ;;  %v2117_v47 = vmul.f32 %v4534_v9, %v6038_v33  ;;  %v2118_v57 = vmul.f32 %v4534_v9, %v6041_v62 }
 0x3e0   : > { %v2119_v26 = vmul.f32 %v4534_v9, %v6044_v50  ;;  %v2120_v2 = vmul.f32 %v4534_v9, %v6047_v30  ;;  %v2121_v43 = vmul.f32 %v4534_v9, %v6050_v0  ;;  %v2122_v18 = vmul.f32 %v4534_v9, %v6053_v40 }
 0x3e1   : > { %v2184_v20 = vmul.f32 %v6206_v45, %v2145_v31  ;;  %v2123_v52 = vmul.f32 %v4534_v9, %v6056_v29  ;;  %v2124_v33 = vmul.f32 %v4534_v9, %v6059_v24  ;;  %v2125_v62 = vmul.f32 %v4534_v9, %v6062_v41 }
 0x3e2   : > { %v2126_v42 = vmul.f32 %v4534_v9, %v6065_v16  ;;  %v2127_v61 = vmul.f32 %v4534_v9, %v6068_v51  ;;  %v2128_v50 = vmul.f32 %v4534_v9, %v6071_v28  ;;  %v2129_v30 = vmul.f32 %v4534_v9, %v6074_v12 }
 0x3e3   : > { %v2223_v0 = vadd.f32 %v6215_v54, %v2184_v20  ;;  %v2130_v40 = vmul.f32 %v4534_v9, %v6077_v32  ;;  %v2131_v44 = vmul.f32 %v4534_v9, %v6080_v3  ;;  %v2132_v29 = vmul.f32 %v4534_v9, %v6083_v25 }
 0x3e4   : > { %v2133_v24 = vmul.f32 %v4534_v9, %v6086_v37  ;;  %v2134_v41 = vmul.f32 %v4534_v9, %v6089_v56  ;;  %v2135_v16 = vmul.f32 %v4534_v9, %v6092_v10  ;;  %v2136_v51 = vmul.f32 %v4534_v9, %v6095_v38 }
 0x3e5   : > { %v2255_v11 = vmax.f32 %v2223_v0, 0.0  ;;  %v2137_v28 = vmul.f32 %v4534_v9, %v6098_v6  ;;  %v2138_v12 = vmul.f32 %v4534_v9, %v6101_v46  ;;  %v2139_v36 = vmul.f32 %v4534_v9, %v6104_v58 }
 0x3e6   : > { %v2140_v32 = vmul.f32 %v4534_v9, %v6107_v35  ;;  %v2141_v3 = vmul.f32 %v4534_v9, %v6110_v5  ;;  %v2142_v25 = vmul.f32 %v4534_v9, %v6113_v55  ;;  %v2143_v37 = vmul.f32 %v4534_v9, %v6116_v8 }
 0x3e7   : > { %2333 = vst.msk [vmem:[#allocation3 + $0x171] sm:$0xff] %vm367_vm1, %v2255_v11  ;;  %v2144_v56 = vmul.f32 %v4534_v9, %v6119_v63  ;;  %v2146_v10 = vmul.f32 %v4534_v9, %v6125_v22  ;;  %v2147_v38 = vmul.f32 %v4534_v9, %v6128_v59  ;;  %v2155_v6 = vmul.f32 %v6206_v45, %v2116_v13  ;;  %v2553_v11 = vpop.permute.xlu1 %2552 }
 0x3e8   : > { %v2156_v46 = vmul.f32 %v6206_v45, %v2117_v47  ;;  %v2157_v58 = vmul.f32 %v6206_v45, %v2118_v57  ;;  %v2158_v35 = vmul.f32 %v6206_v45, %v2119_v26  ;;  %v2159_v5 = vmul.f32 %v6206_v45, %v2120_v2  ;;  %2647 = vst.msk [vmem:[#allocation2 + $0x8] sm:$0xff] %vm625_vm4, %v2553_v11 }
 0x3e9   : > { %v2160_v55 = vmul.f32 %v6206_v45, %v2121_v43  ;;  %v2161_v8 = vmul.f32 %v6206_v45, %v2122_v18  ;;  %v2162_v63 = vmul.f32 %v6206_v45, %v2123_v52  ;;  %v2163_v22 = vmul.f32 %v6206_v45, %v2124_v33 }
 0x3ea   : > { %v2164_v9 = vmul.f32 %v6206_v45, %v2125_v62  ;;  %v2165_v59 = vmul.f32 %v6206_v45, %v2126_v42  ;;  %v2166_v4 = vmul.f32 %v6206_v45, %v2127_v61  ;;  %v2167_v17 = vmul.f32 %v6206_v45, %v2128_v50 }
 0x3eb   : > { %v2168_v31 = vmul.f32 %v6206_v45, %v2129_v30  ;;  %v2169_v13 = vmul.f32 %v6206_v45, %v2130_v40  ;;  %v2170_v47 = vmul.f32 %v6206_v45, %v2131_v44  ;;  %v2171_v57 = vmul.f32 %v6206_v45, %v2132_v29 }
 0x3ec   : > { %v2172_v26 = vmul.f32 %v6206_v45, %v2133_v24  ;;  %v2173_v2 = vmul.f32 %v6206_v45, %v2134_v41  ;;  %v2174_v43 = vmul.f32 %v6206_v45, %v2135_v16  ;;  %v2175_v18 = vmul.f32 %v6206_v45, %v2136_v51 }
 0x3ed   : > { %v2176_v20 = vmul.f32 %v6206_v45, %v2137_v28  ;;  %v2177_v52 = vmul.f32 %v6206_v45, %v2138_v12  ;;  %v2178_v33 = vmul.f32 %v6206_v45, %v2139_v36  ;;  %v2179_v62 = vmul.f32 %v6206_v45, %v2140_v32  ;;  %v2551_v28 = vpop.permute.xlu0 %2550 }
 0x3ee   : > { %v2180_v42 = vmul.f32 %v6206_v45, %v2141_v3  ;;  %v2181_v61 = vmul.f32 %v6206_v45, %v2142_v25  ;;  %v2182_v50 = vmul.f32 %v6206_v45, %v2143_v37  ;;  %v2183_v30 = vmul.f32 %v6206_v45, %v2144_v56  ;;  %2646 = vst.msk [vmem:[#allocation2] sm:$0xff] %vm625_vm4, %v2551_v28 }
 0x3ef   : > { %v2185_v0 = vmul.f32 %v6206_v45, %v2146_v10  ;;  %v2186_v40 = vmul.f32 %v6206_v45, %v2147_v38  ;;  %v2194_v44 = vadd.f32 %v6215_v54, %v2155_v6  ;;  %v2195_v29 = vadd.f32 %v6215_v54, %v2156_v46 }
 0x3f0   : > { %v2196_v24 = vadd.f32 %v6215_v54, %v2157_v58  ;;  %v2197_v41 = vadd.f32 %v6215_v54, %v2158_v35  ;;  %v2198_v16 = vadd.f32 %v6215_v54, %v2159_v5  ;;  %v2199_v51 = vadd.f32 %v6215_v54, %v2160_v55 }
 0x3f1   : > { %v2200_v12 = vadd.f32 %v6215_v54, %v2161_v8  ;;  %v2201_v36 = vadd.f32 %v6215_v54, %v2162_v63  ;;  %v2202_v45 = vadd.f32 %v6215_v54, %v2163_v22  ;;  %v2203_v32 = vadd.f32 %v6215_v54, %v2164_v9 }
 0x3f2   : > { %v2204_v3 = vadd.f32 %v6215_v54, %v2165_v59  ;;  %v2205_v25 = vadd.f32 %v6215_v54, %v2166_v4  ;;  %v2206_v37 = vadd.f32 %v6215_v54, %v2167_v17  ;;  %v2207_v56 = vadd.f32 %v6215_v54, %v2168_v31 }
 0x3f3   : > { %v2208_v10 = vadd.f32 %v6215_v54, %v2169_v13  ;;  %v2209_v38 = vadd.f32 %v6215_v54, %v2170_v47  ;;  %v2210_v6 = vadd.f32 %v6215_v54, %v2171_v57  ;;  %v2211_v46 = vadd.f32 %v6215_v54, %v2172_v26 }
 0x3f4   : > { %v2212_v58 = vadd.f32 %v6215_v54, %v2173_v2  ;;  %v6301_v35 = vadd.f32 %v6215_v54, %v2174_v43  ;;  %v6304_v5 = vadd.f32 %v6215_v54, %v2175_v18  ;;  %v6307_v55 = vadd.f32 %v6215_v54, %v2176_v20 }
 0x3f5   : > { %v6310_v8 = vadd.f32 %v6215_v54, %v2177_v52  ;;  %v6313_v63 = vadd.f32 %v6215_v54, %v2178_v33  ;;  %v6316_v22 = vadd.f32 %v6215_v54, %v2179_v62  ;;  %v6319_v9 = vadd.f32 %v6215_v54, %v2180_v42 }
 0x3f6   : > { %v6322_v59 = vadd.f32 %v6215_v54, %v2181_v61  ;;  %v6325_v4 = vadd.f32 %v6215_v54, %v2182_v50  ;;  %v6328_v17 = vadd.f32 %v6215_v54, %v2183_v30  ;;  %v6331_v31 = vadd.f32 %v6215_v54, %v2185_v0 }
 0x3f7   : > { %v6334_v13 = vadd.f32 %v6215_v54, %v2186_v40  ;;  %v2226_v47 = vmax.f32 %v2194_v44, 0.0  ;;  %v2227_v57 = vmax.f32 %v2195_v29, 0.0  ;;  %v2228_v26 = vmax.f32 %v2196_v24, 0.0 }
 0x3f8   : > { %v2229_v2 = vmax.f32 %v2197_v41, 0.0  ;;  %v2230_v43 = vmax.f32 %v2198_v16, 0.0  ;;  %v2231_v18 = vmax.f32 %v2199_v51, 0.0  ;;  %v2232_v20 = vmax.f32 %v2200_v12, 0.0 }
 0x3f9   : > { %2304 = vst.msk [vmem:[#allocation3 + $0x19] sm:$0xff] %vm367_vm1, %v2226_v47  ;;  %2305 = vst.msk [vmem:[#allocation3 + $0x21] sm:$0xff] %vm367_vm1, %v2227_v57  ;;  %v2233_v52 = vmax.f32 %v2201_v36, 0.0  ;;  %v2234_v33 = vmax.f32 %v2202_v45, 0.0  ;;  %v2235_v62 = vmax.f32 %v2203_v32, 0.0  ;;  %v2236_v42 = vmax.f32 %v2204_v3, 0.0 }
 0x3fa   : > { %2306 = vst.msk [vmem:[#allocation3 + $0x31] sm:$0xff] %vm367_vm1, %v2228_v26  ;;  %v2237_v61 = vmax.f32 %v2205_v25, 0.0  ;;  %v2238_v54 = vmax.f32 %v2206_v37, 0.0  ;;  %v2239_v50 = vmax.f32 %v2207_v56, 0.0  ;;  %v2240_v30 = vmax.f32 %v2208_v10, 0.0  ;;  %2307 = vst.msk [vmem:[#allocation3 + $0x39] sm:$0xff] %vm367_vm1, %v2229_v2 }
 0x3fb   : > { %2308 = vst.msk [vmem:[#allocation3 + $0x49] sm:$0xff] %vm367_vm1, %v2230_v43  ;;  %2309 = vst.msk [vmem:[#allocation3 + $0x51] sm:$0xff] %vm367_vm1, %v2231_v18  ;;  %v2241_v0 = vmax.f32 %v2209_v38, 0.0  ;;  %v2242_v40 = vmax.f32 %v2210_v6, 0.0  ;;  %v2243_v44 = vmax.f32 %v2211_v46, 0.0  ;;  %v2244_v29 = vmax.f32 %v2212_v58, 0.0 }
 0x3fc   : > { %2310 = vst.msk [vmem:[#allocation3 + $0x61] sm:$0xff] %vm367_vm1, %v2232_v20  ;;  %2311 = vst.msk [vmem:[#allocation3 + $0x69] sm:$0xff] %vm367_vm1, %v2233_v52  ;;  %v2245_v24 = vmax.f32 %v6301_v35, 0.0  ;;  %v2246_v41 = vmax.f32 %v6304_v5, 0.0  ;;  %v2247_v16 = vmax.f32 %v6307_v55, 0.0  ;;  %v2248_v51 = vmax.f32 %v6310_v8, 0.0 }
 0x3fd   : > { %2312 = vst.msk [vmem:[#allocation3 + $0x79] sm:$0xff] %vm367_vm1, %v2234_v33  ;;  %2313 = vst.msk [vmem:[#allocation3 + $0x81] sm:$0xff] %vm367_vm1, %v2235_v62  ;;  %v2249_v11 = vmax.f32 %v6313_v63, 0.0  ;;  %v2250_v28 = vmax.f32 %v6316_v22, 0.0  ;;  %v2251_v12 = vmax.f32 %v6319_v9, 0.0  ;;  %v2252_v36 = vmax.f32 %v6322_v59, 0.0 }
 0x3fe   : > { %2314 = vst.msk [vmem:[#allocation3 + $0x91] sm:$0xff] %vm367_vm1, %v2236_v42  ;;  %2315 = vst.msk [vmem:[#allocation3 + $0x99] sm:$0xff] %vm367_vm1, %v2237_v61  ;;  %v2253_v45 = vmax.f32 %v6325_v4, 0.0  ;;  %v2254_v32 = vmax.f32 %v6328_v17, 0.0  ;;  %v2256_v3 = vmax.f32 %v6331_v31, 0.0  ;;  %v2257_v25 = vmax.f32 %v6334_v13, 0.0 }
 0x3ff   : > { %2316 = vst.msk [vmem:[#allocation3 + $0xa9] sm:$0xff] %vm367_vm1, %v2238_v54  ;;  %2317 = vst.msk [vmem:[#allocation3 + $0xb1] sm:$0xff] %vm367_vm1, %v2239_v50 }
 0x400   : > { %2318 = vst.msk [vmem:[#allocation3 + $0xc1] sm:$0xff] %vm367_vm1, %v2240_v30  ;;  %2319 = vst.msk [vmem:[#allocation3 + $0xc9] sm:$0xff] %vm367_vm1, %v2241_v0  ;;  %v6375_v37 = vld [vmem:[#allocation3 + $0x20] sm:$0xff]  ;;  %v6377_v56 = vld [vmem:[#allocation3 + $0x28] sm:$0x3] }
 0x401   : > { %2320 = vst.msk [vmem:[#allocation3 + $0xd9] sm:$0xff] %vm367_vm1, %v2242_v40  ;;  %2321 = vst.msk [vmem:[#allocation3 + $0xe1] sm:$0xff] %vm367_vm1, %v2243_v44  ;;  %v6379_v10 = vld [vmem:[#allocation3 + $0x18] sm:$0xff]  ;;  %v2476_v38 = vrot.slane %v6375_v37, 1  ;;  %v2478_v6 = vrot.slane %v6377_v56, 1  ;;  %v6399_v55 = vld [vmem:[#allocation3 + $0x30] sm:$0xff] }
 0x402   : > { %2322 = vst.msk [vmem:[#allocation3 + $0xf1] sm:$0xff] %vm367_vm1, %v2244_v29  ;;  %2323 = vst.msk [vmem:[#allocation3 + $0xf9] sm:$0xff] %vm367_vm1, %v2245_v24  ;;  %v2475_v46 = vrot.slane %v6379_v10, 1  ;;  %v6392_v58 = vld [vmem:[#allocation3 + $0x38] sm:$0xff]  ;;  %v6394_v35 = vld [vmem:[#allocation3 + $0x40] sm:$0x3] }
 0x403   : > { %2324 = vst.msk [vmem:[#allocation3 + $0x109] sm:$0xff] %vm367_vm1, %v2246_v41  ;;  %2325 = vst.msk [vmem:[#allocation3 + $0x111] sm:$0xff] %vm367_vm1, %v2247_v16  ;;  %v2481_v5 = vrot.slane %v6392_v58, 1  ;;  %v6401_v8 = vld [vmem:[#allocation3 + $0x50] sm:$0xff]  ;;  %v6404_v63 = vsel %vm448_vm2, %v2476_v38, %v2478_v6  ;;  %v2483_v9 = vrot.slane %v6394_v35, 1  ;;  %v2480_v59 = vrot.slane %v6399_v55, 1 }
 0x404   : > { %2326 = vst.msk [vmem:[#allocation3 + $0x121] sm:$0xff] %vm367_vm1, %v2248_v51  ;;  %2327 = vst.msk [vmem:[#allocation3 + $0x129] sm:$0xff] %vm367_vm1, %v2249_v11  ;;  %v6407_v22 = vsel %vm448_vm2, %v2475_v46, %v2476_v38  ;;  %v6413_v4 = vld [vmem:[#allocation3 + $0x58] sm:$0x3]  ;;  %v6417_v17 = vld [vmem:[#allocation3 + $0x48] sm:$0xff]  ;;  %2556 = vrot.lane.b32.xlu1 %v6404_v63, %s4551_s8  ;;  %v2486_v2 = vrot.slane %v6401_v8, 1 }
 0x405   : > { %2328 = vst.msk [vmem:[#allocation3 + $0x139] sm:$0xff] %vm367_vm1, %v2250_v28  ;;  %2329 = vst.msk [vmem:[#allocation3 + $0x141] sm:$0xff] %vm367_vm1, %v2251_v12  ;;  %v6419_v31 = vld [vmem:[#allocation3 + $0x68] sm:$0xff]  ;;  %2554 = vrot.lane.b32.xlu0 %v6407_v22, %s4551_s8  ;;  %v6429_v13 = vld [vmem:[#allocation3 + $0x60] sm:$0xff]  ;;  %v6451_v20 = vsel %vm448_vm2, %v2481_v5, %v2483_v9  ;;  %v6454_v52 = vsel %vm448_vm2, %v2480_v59, %v2481_v5  ;;  %v2488_v33 = vrot.slane %v6413_v4, 1  ;;  %v2485_v62 = vrot.slane %v6417_v17, 1 }
 0x406   : > { %2330 = vst.msk [vmem:[#allocation3 + $0x151] sm:$0xff] %vm367_vm1, %v2252_v36  ;;  %2331 = vst.msk [vmem:[#allocation3 + $0x159] sm:$0xff] %vm367_vm1, %v2253_v45  ;;  %v6431_v47 = vld [vmem:[#allocation3 + $0x80] sm:$0xff]  ;;  %v6433_v57 = vld [vmem:[#allocation3 + $0x78] sm:$0xff]  ;;  %v2491_v40 = vrot.slane %v6419_v31, 1  ;;  %v2490_v16 = vrot.slane %v6429_v13, 1 }
 0x407   : > { %2332 = vst.msk [vmem:[#allocation3 + $0x169] sm:$0xff] %vm367_vm1, %v2254_v32  ;;  %2334 = vst.msk [vmem:[#allocation3 + $0x181] sm:$0xff] %vm367_vm1, %v2256_v3  ;;  %v6441_v26 = vld [vmem:[#allocation3 + $0x98] sm:$0xff]  ;;  %v6446_v43 = vld [vmem:[#allocation3 + $0x90] sm:$0xff]  ;;  %v6492_v29 = vsel %vm448_vm2, %v2486_v2, %v2488_v33  ;;  %v6495_v24 = vsel %vm448_vm2, %v2485_v62, %v2486_v2  ;;  %v2495_v9 = vrot.slane %v6433_v57, 1 }
 0x408   : > { %2335 = vst.msk [vmem:[#allocation3 + $0x189] sm:$0xff] %vm367_vm1, %v2257_v25  ;;  %2393 = vst.msk [vmem:[#allocation2 + $0x18] sm:$0xff] %vm367_vm1, %v6375_v37  ;;  %v6448_v18 = vld [vmem:[#allocation3 + $0xb0] sm:$0xff]  ;;  %v6462_v42 = vld [vmem:[#allocation3 + $0xa8] sm:$0xff]  ;;  %2560 = vrot.lane.b32.xlu1 %v6451_v20, %s4551_s8  ;;  %v2496_v25 = vrot.slane %v6431_v47, 1  ;;  %v6542_v46 = vsel %vm448_vm2, %v2490_v16, %v2491_v40  ;;  %v2500_v49 = vrot.slane %v6446_v43, 1 }
 0x409   : > { %2392 = vst.msk [vmem:[#allocation2 + $0x10] sm:$0xff] %vm367_vm1, %v6379_v10  ;;  %2395 = vst.msk [vmem:[#allocation2 + $0x28] sm:$0xff] %vm367_vm1, %v6392_v58  ;;  %v6464_v61 = vld [vmem:[#allocation3 + $0xc8] sm:$0xff]  ;;  %2558 = vrot.lane.b32.xlu0 %v6454_v52, %s4551_s8  ;;  %v6470_v54 = vld [vmem:[#allocation3 + $0x70] sm:$0x3]  ;;  %v2506_v23 = vrot.slane %v6448_v18, 1 }
 0x40a   : > { %2394 = vst.msk [vmem:[#allocation2 + $0x20] sm:$0xff] %vm367_vm1, %v6399_v55  ;;  %2397 = vst.msk [vmem:[#allocation2 + $0x38] sm:$0xff] %vm367_vm1, %v6401_v8  ;;  %v6476_v50 = vld [vmem:[#allocation3 + $0xc0] sm:$0xff]  ;;  %v6484_v0 = vld [vmem:[#allocation3 + $0xd8] sm:$0xff]  ;;  %v2493_v41 = vrot.slane %v6470_v54, 1  ;;  %v6571_v16 = vsel %vm448_vm2, %v2495_v9, %v2496_v25  ;;  %v2505_v60 = vrot.slane %v6462_v42, 1 }
 0x40b   : > { %2396 = vst.msk [vmem:[#allocation2 + $0x30] sm:$0xff] %vm367_vm1, %v6417_v17  ;;  %2399 = vst.msk [vmem:[#allocation2 + $0x48] sm:$0xff] %vm367_vm1, %v6419_v31  ;;  %v6478_v30 = vld [vmem:[#allocation3 + $0xe0] sm:$0xff]  ;;  %v6489_v44 = vld [vmem:[#allocation3 + $0xf8] sm:$0xff]  ;;  %v2511_v48 = vrot.slane %v6464_v61, 1  ;;  %v2510_v53 = vrot.slane %v6476_v50, 1 }
 0x40c   : > { %2398 = vst.msk [vmem:[#allocation2 + $0x40] sm:$0xff] %vm367_vm1, %v6429_v13  ;;  %2401 = vst.msk [vmem:[#allocation2 + $0x58] sm:$0xff] %vm367_vm1, %v6431_v47  ;;  %v6501_v51 = vld [vmem:[#allocation3 + $0xf0] sm:$0xff]  ;;  %v6503_v11 = vld [vmem:[#allocation3 + $0x108] sm:$0xff]  ;;  %2564 = vrot.lane.b32.xlu1 %v6492_v29, %s4551_s8  ;;  %v6539_v6 = vsel %vm448_vm2, %v2491_v40, %v2493_v41  ;;  %v2501_v40 = vrot.slane %v6441_v26, 1  ;;  %v2516_v39 = vrot.slane %v6478_v30, 1 }
 0x40d   : > { %2400 = vst.msk [vmem:[#allocation2 + $0x50] sm:$0xff] %vm367_vm1, %v6433_v57  ;;  %2403 = vst.msk [vmem:[#allocation2 + $0x68] sm:$0xff] %vm367_vm1, %v6441_v26  ;;  %v6505_v28 = vld [vmem:[#allocation3 + $0x110] sm:$0xff]  ;;  %2562 = vrot.lane.b32.xlu0 %v6495_v24, %s4551_s8  ;;  %v6511_v12 = vld [vmem:[#allocation3 + $0x88] sm:$0x3]  ;;  %v2515_v21 = vrot.slane %v6484_v0, 1 }
 0x40e   : > { %2402 = vst.msk [vmem:[#allocation2 + $0x60] sm:$0xff] %vm367_vm1, %v6446_v43  ;;  %2405 = vst.msk [vmem:[#allocation2 + $0x78] sm:$0xff] %vm367_vm1, %v6448_v18  ;;  %v6519_v36 = vld [vmem:[#allocation3 + $0x128] sm:$0xff]  ;;  %v6521_v45 = vld [vmem:[#allocation3 + $0x120] sm:$0xff]  ;;  %v2498_v5 = vrot.slane %v6511_v12, 1 }
 0x40f   : > { %2404 = vst.msk [vmem:[#allocation2 + $0x70] sm:$0xff] %vm367_vm1, %v6462_v42  ;;  %2407 = vst.msk [vmem:[#allocation2 + $0x88] sm:$0xff] %vm367_vm1, %v6464_v61  ;;  %v6527_v32 = vld [vmem:[#allocation3 + $0x140] sm:$0xff]  ;;  %v6529_v3 = vld [vmem:[#allocation3 + $0x138] sm:$0xff] }
 0x410   : > { %2406 = vst.msk [vmem:[#allocation2 + $0x80] sm:$0xff] %vm367_vm1, %v6476_v50  ;;  %2409 = vst.msk [vmem:[#allocation2 + $0x98] sm:$0xff] %vm367_vm1, %v6478_v30  ;;  %v6536_v38 = vld [vmem:[#allocation3 + $0x158] sm:$0xff]  ;;  %v6548_v59 = vld [vmem:[#allocation3 + $0x150] sm:$0xff]  ;;  %2568 = vrot.lane.b32.xlu1 %v6539_v6, %s4551_s8  ;;  %v6568_v41 = vsel %vm448_vm2, %v2496_v25, %v2498_v5  ;;  %v6586_v25 = vsel %vm448_vm2, %v2500_v49, %v2501_v40  ;;  %v6601_v49 = vsel %vm448_vm2, %v2505_v60, %v2506_v23 }
 0x411   : > { %2408 = vst.msk [vmem:[#allocation2 + $0x90] sm:$0xff] %vm367_vm1, %v6484_v0  ;;  %2411 = vst.msk [vmem:[#allocation2 + $0xa8] sm:$0xff] %vm367_vm1, %v6489_v44  ;;  %2566 = vrot.lane.b32.xlu0 %v6542_v46, %s4551_s8  ;;  %v6554_v2 = vld [vmem:[#allocation3 + $0xa0] sm:$0x3]  ;;  %v6558_v33 = vld [vmem:[#allocation3 + $0x170] sm:$0xff]  ;;  %v6616_v60 = vsel %vm448_vm2, %v2510_v53, %v2511_v48 }
 0x412   : > { %2410 = vst.msk [vmem:[#allocation2 + $0xa0] sm:$0xff] %vm367_vm1, %v6501_v51  ;;  %2412 = vst.msk [vmem:[#allocation2 + $0xb0] sm:$0xff] %vm367_vm1, %v6503_v11  ;;  %v6560_v62 = vld [vmem:[#allocation3 + $0x168] sm:$0xff]  ;;  %v2503_v27 = vrot.slane %v6554_v2, 1  ;;  %v6579_v15 = vld [vmem:[#allocation3 + $0xb8] sm:$0x3] }
 0x413   : > { %2413 = vst.msk [vmem:[#allocation2 + $0xb8] sm:$0xff] %vm367_vm1, %v6505_v28  ;;  %2415 = vst.msk [vmem:[#allocation2 + $0xc8] sm:$0xff] %vm367_vm1, %v6519_v36  ;;  %v2508_v9 = vrot.slane %v6579_v15, 1  ;;  %v6594_v7 = vld [vmem:[#allocation3 + $0xd0] sm:$0x3] }
 0x414   : > { %2414 = vst.msk [vmem:[#allocation2 + $0xc0] sm:$0xff] %vm367_vm1, %v6521_v45  ;;  %7930 = vst [vmem:[#allocation9_spill] sm:$0xff] %v6529_v3  ;;  %2572 = vrot.lane.b32.xlu1 %v6568_v41, %s4551_s8  ;;  %v6583_v5 = vsel %vm448_vm2, %v2501_v40, %v2503_v27  ;;  %v2513_v40 = vrot.slane %v6594_v7, 1  ;;  %v6609_v34 = vld [vmem:[#allocation3 + $0xe8] sm:$0x3] }
 0x415   : > { %2417 = vst.msk [vmem:[#allocation2 + $0xd8] sm:$0xff] %vm367_vm1, %v6527_v32  ;;  %2416 = vst.msk [vmem:[#allocation2 + $0xd0] sm:$0xff] %vm367_vm1, %v6529_v3  ;;  %2570 = vrot.lane.b32.xlu0 %v6571_v16, %s4551_s8  ;;  %v6598_v27 = vsel %vm448_vm2, %v2506_v23, %v2508_v9  ;;  %v2518_v23 = vrot.slane %v6609_v34, 1  ;;  %v6624_v14 = vld [vmem:[#allocation3 + $0x100] sm:$0x3]  ;;  %v2686_v3 = vrot.slane %v6377_v56, 2 }
 0x416   : > { %7931 = vst [vmem:[#allocation30_spill] sm:$0xff] %v6536_v38  ;;  %2419 = vst.msk [vmem:[#allocation2 + $0xe8] sm:$0xff] %vm367_vm1, %v6536_v38  ;;  %v6613_v9 = vsel %vm448_vm2, %v2511_v48, %v2513_v40  ;;  %v6631_v48 = vsel %vm448_vm2, %v2515_v21, %v2516_v39  ;;  %v2523_v53 = vrot.slane %v6624_v14, 1  ;;  %v2526_v21 = vrot.slane %v6505_v28, 1  ;;  %v4526_v56 = vld [vmem:[%s7783_s4 + $0x8] sm:$0xff]  }
 0x417   : > { %7932 = vst [vmem:[#allocation10_spill] sm:$0xff] %v6548_v59  ;;  %2418 = vst.msk [vmem:[#allocation2 + $0xe0] sm:$0xff] %vm367_vm1, %v6548_v59  ;;  %v6628_v40 = vsel %vm448_vm2, %v2516_v39, %v2518_v23  ;;  %v2525_v23 = vrot.slane %v6503_v11, 1 }
 0x418   : > { %7933 = vst [vmem:[#allocation11_spill] sm:$0xff] %v6558_v33  ;;  %7934 = vst [vmem:[#allocation33_spill] sm:$0xff] %v6560_v62  ;;  %2576 = vrot.lane.b32.xlu1 %v6583_v5, %s4551_s8 }
 0x419   : > { %2421 = vst.msk [vmem:[#allocation2 + $0xf8] sm:$0xff] %vm367_vm1, %v6558_v33  ;;  %2420 = vst.msk [vmem:[#allocation2 + $0xf0] sm:$0xff] %vm367_vm1, %v6560_v62  ;;  %2574 = vrot.lane.b32.xlu0 %v6586_v25, %s4551_s8  ;;  %v2521_v62 = vrot.slane %v6489_v44, 1  ;;  %v2520_v33 = vrot.slane %v6501_v51, 1  ;;  %v6654_v39 = vsel %vm448_vm2, %v2525_v23, %v2526_v21 }
 0x41b   : > { %v6640_v59 = vsel %vm448_vm2, %v2521_v62, %v2523_v53  ;;  %v6643_v38 = vsel %vm448_vm2, %v2520_v33, %v2521_v62  ;;  %v2683_v53 = vrot.slane %v6379_v10, 2  ;;  %v2684_v33 = vrot.slane %v6375_v37, 2 }
 0x41c   : > { %2580 = vrot.lane.b32.xlu1 %v6598_v27, %s4551_s8 }
 0x41d   : > { %2578 = vrot.lane.b32.xlu0 %v6601_v49, %s4551_s8  ;;  %v2685_v62 = vsel %vm658_vm3, %v2683_v53, %v2684_v33  ;;  %v2687_v23 = vsel %vm658_vm3, %v2684_v33, %v2686_v3  ;;  %v4529_v53 = vld [vmem:[%s7783_s4 + $0x20] sm:$0xff]   ;;  %v2694_v33 = vrot.slane %v6401_v8, 2 }
 0x420   : > { %2584 = vrot.lane.b32.xlu1 %v6613_v9, %s4551_s8 }
 0x421   : > { %2582 = vrot.lane.b32.xlu0 %v6616_v60, %s4551_s8 }
 0x424   : > { %2588 = vrot.lane.b32.xlu1 %v6628_v40, %s4551_s8 }
 0x425   : > { %2586 = vrot.lane.b32.xlu0 %v6631_v48, %s4551_s8 }
 0x428   : > { %2592 = vrot.lane.b32.xlu1 %v6640_v59, %s4551_s8 }
 0x429   : > { %2590 = vrot.lane.b32.xlu0 %v6643_v38, %s4551_s8 }
 0x42c   : > { %2758 = vrot.lane.b32.xlu1 %v6175_v19, %s4552_s9  ;;  %v4525_v19 = vld [vmem:[%s7783_s4] sm:$0xff]  }
 0x42d   : > { %2594 = vrot.lane.b32.xlu0 %v6654_v39, %s4551_s8  ;;  %4451 = vmatprep.subr.bf16.mxu1 %v4525_v19 }
 0x42e   : > { %4452 = vmatpush3.bf16.msra.mxu1 %v4525_v19 }
 0x42f   : > { %4453 = vmatprep.subr.bf16.mxu1 %v4526_v56 }
 0x430   : > { %2762 = vrot.lane.b32.xlu1 %v2685_v62, %s4552_s9 }
 0x431   : > { %2760 = vrot.lane.b32.xlu0 %v6187_v1, %s4552_s9  ;;  %v2688_v1 = vrot.slane %v6399_v55, 2 }
 0x432   : > { %4454 = vmatpush3.bf16.msra.mxu1 %v4526_v56 }
 0x434   : > { %2888 = vrot.lane.b32.xlu1 %v6379_v10, %s4553_s10 }
 0x435   : > { %2764 = vrot.lane.b32.xlu0 %v2687_v23, %s4552_s9 }
 0x438   : > { %2892 = vrot.lane.b32.xlu1 %v6399_v55, %s4553_s10 }
 0x439   : > { %2890 = vrot.lane.b32.xlu0 %v6375_v37, %s4553_s10  ;;  %v2689_v37 = vrot.slane %v6392_v58, 2 }
 0x43b   : > { %v2690_v10 = vsel %vm658_vm3, %v2688_v1, %v2689_v37 }
 0x43c   : > { %3022 = vrot.lane.b32.xlu1 %v6407_v22, %s4554_s11  ;;  %v4527_v22 = vld [vmem:[%s7783_s4 + $0x10] sm:$0xff]  }
 0x43d   : > { %2894 = vrot.lane.b32.xlu0 %v6392_v58, %s4553_s10  ;;  %4455 = vmatprep.subr.bf16.mxu1 %v4527_v22 }
 0x43e   : > { %4456 = vmatpush3.bf16.msra.mxu1 %v4527_v22 }
 0x440   : > { %3026 = vrot.lane.b32.xlu1 %v6454_v52, %s4554_s11 }
 0x441   : > { %3024 = vrot.lane.b32.xlu0 %v6404_v63, %s4554_s11  ;;  %v2691_v63 = vrot.slane %v6394_v35, 2  ;;  %v4528_v35 = vld [vmem:[%s7783_s4 + $0x18] sm:$0xff]  }
 0x442   : > { %4457 = vmatprep.subr.bf16.mxu1 %v4528_v35 }
 0x443   : > { %v2692_v3 = vsel %vm658_vm3, %v2689_v37, %v2691_v63  ;;  %4458 = vmatpush3.bf16.msra.mxu1 %v4528_v35  ;;  %v2699_v37 = vrot.slane %v6419_v31, 2  ;;  %v2701_v63 = vrot.slane %v6470_v54, 2 }
 0x444   : > { %3155 = vrot.lane.b32.xlu1 %v2685_v62, %s4555_s16  ;;  %4459 = vmatprep.subr.bf16.mxu1 %v4529_v53  ;;  %v4532_v62 = vld [vmem:[%s7783_s4 + $0x38] sm:$0xff]  }
 0x445   : > { %3028 = vrot.lane.b32.xlu0 %v6451_v20, %s4554_s11  ;;  %v2702_v35 = vsel %vm658_vm3, %v2699_v37, %v2701_v63 }
 0x447   : > { %4460 = vmatpush3.bf16.msra.mxu1 %v4529_v53 }
 0x448   : > { %3159 = vrot.lane.b32.xlu1 %v2690_v10, %s4555_s16 }
 0x449   : > { %3157 = vrot.lane.b32.xlu0 %v2687_v23, %s4555_s16  ;;  %v2696_v23 = vrot.slane %v6413_v4, 2 }
 0x44b   : > { %v2697_v19 = vsel %vm658_vm3, %v2694_v33, %v2696_v23 }
 0x44c   : > { %3285 = vrot.lane.b32.xlu1 %v6399_v55, %s4556_s21  ;;  %v4530_v55 = vld [vmem:[%s7783_s4 + $0x28] sm:$0xff]  }
 0x44d   : > { %3161 = vrot.lane.b32.xlu0 %v2692_v3, %s4555_s16  ;;  %4461 = vmatprep.subr.bf16.mxu1 %v4530_v55 }
 0x44e   : > { %4462 = vmatpush3.bf16.msra.mxu1 %v4530_v55 }
 0x450   : > { %3289 = vrot.lane.b32.xlu1 %v6417_v17, %s4556_s21 }
 0x451   : > { %3287 = vrot.lane.b32.xlu0 %v6392_v58, %s4556_s21  ;;  %v4531_v58 = vld [vmem:[%s7783_s4 + $0x30] sm:$0xff]  }
 0x452   : > { %4463 = vmatprep.subr.bf16.mxu1 %v4531_v58 }
 0x453   : > { %4464 = vmatpush3.bf16.msra.mxu1 %v4531_v58 }
 0x454   : > { %3419 = vrot.lane.b32.xlu1 %v6454_v52, %s4557_s28  ;;  %v2693_v52 = vrot.slane %v6417_v17, 2  ;;  %4465 = vmatprep.subr.bf16.mxu1 %v4532_v62 }
 0x455   : > { %3291 = vrot.lane.b32.xlu0 %v6401_v8, %s4556_s21 }
 0x457   : > { %4466 = vmatpush3.bf16.msra.mxu1 %v4532_v62  ;;  %v2704_v62 = vrot.slane %v6431_v47, 2 }
 0x458   : > { %3423 = vrot.lane.b32.xlu1 %v6495_v24, %s4557_s28 }
 0x459   : > { %3421 = vrot.lane.b32.xlu0 %v6451_v20, %s4557_s28  ;;  %v2695_v20 = vsel %vm658_vm3, %v2693_v52, %v2694_v33 }
 0x45c   : > { %3552 = vrot.lane.b32.xlu1 %v2690_v10, %s4558_s15 }
 0x45d   : > { %3425 = vrot.lane.b32.xlu0 %v6492_v29, %s4557_s28 }
 0x460   : > { %3556 = vrot.lane.b32.xlu1 %v2695_v20, %s4558_s15 }
 0x461   : > { %3554 = vrot.lane.b32.xlu0 %v2692_v3, %s4558_s15 }
 0x464   : > { %2766 = vrot.lane.b32.xlu1 %v2690_v10, %s4552_s9 }
 0x465   : > { %3558 = vrot.lane.b32.xlu0 %v2697_v19, %s4558_s15 }
 0x468   : > { %2770 = vrot.lane.b32.xlu1 %v2695_v20, %s4552_s9 }
 0x469   : > { %2768 = vrot.lane.b32.xlu0 %v2692_v3, %s4552_s9 }
 0x46c   : > { %2896 = vrot.lane.b32.xlu1 %v6417_v17, %s4553_s10 }
 0x46d   : > { %2772 = vrot.lane.b32.xlu0 %v2697_v19, %s4552_s9 }
 0x470   : > { %2900 = vrot.lane.b32.xlu1 %v6429_v13, %s4553_s10 }
 0x471   : > { %2898 = vrot.lane.b32.xlu0 %v6401_v8, %s4553_s10 }
 0x474   : > { %3030 = vrot.lane.b32.xlu1 %v6495_v24, %s4554_s11  ;;  %v2698_v24 = vrot.slane %v6429_v13, 2 }
 0x475   : > { %2902 = vrot.lane.b32.xlu0 %v6419_v31, %s4553_s10 }
 0x476   : > { %v2557_v4 = vpop.permute.xlu1 %2556 }
 0x477   : > { %v2555_v1 = vpop.permute.xlu0 %2554  ;;  %2649 = vst.msk [vmem:[#allocation2 + $0x18] sm:$0xff] %vm625_vm4, %v2557_v4 }
 0x478   : > { %2648 = vst.msk [vmem:[#allocation2 + $0x10] sm:$0xff] %vm625_vm4, %v2555_v1  ;;  %3034 = vrot.lane.b32.xlu1 %v6542_v46, %s4554_s11 }
 0x479   : > { %3032 = vrot.lane.b32.xlu0 %v6492_v29, %s4554_s11  ;;  %v2700_v29 = vsel %vm658_vm3, %v2698_v24, %v2699_v37 }
 0x47a   : > { %v2561_v17 = vpop.permute.xlu1 %2560 }
 0x47b   : > { %v2559_v8 = vpop.permute.xlu0 %2558  ;;  %2651 = vst.msk [vmem:[#allocation2 + $0x28] sm:$0xff] %vm625_vm4, %v2561_v17 }
 0x47c   : > { %2650 = vst.msk [vmem:[#allocation2 + $0x20] sm:$0xff] %vm625_vm4, %v2559_v8  ;;  %3163 = vrot.lane.b32.xlu1 %v2695_v20, %s4555_s16 }
 0x47d   : > { %3036 = vrot.lane.b32.xlu0 %v6539_v6, %s4554_s11 }
 0x47e   : > { %v2565_v56 = vpop.permute.xlu1 %2564 }
 0x47f   : > { %v2563_v10 = vpop.permute.xlu0 %2562  ;;  %2653 = vst.msk [vmem:[#allocation2 + $0x38] sm:$0xff] %vm625_vm4, %v2565_v56 }
 0x480   : > { %2652 = vst.msk [vmem:[#allocation2 + $0x30] sm:$0xff] %vm625_vm4, %v2563_v10  ;;  %3167 = vrot.lane.b32.xlu1 %v2700_v29, %s4555_s16 }
 0x481   : > { %3165 = vrot.lane.b32.xlu0 %v2697_v19, %s4555_s16  ;;  %v2706_v19 = vrot.slane %v6511_v12, 2 }
 0x482   : > { %v2569_v22 = vpop.permute.xlu1 %2568 }
 0x483   : > { %v2567_v3 = vpop.permute.xlu0 %2566  ;;  %2655 = vst.msk [vmem:[#allocation2 + $0x48] sm:$0xff] %vm625_vm4, %v2569_v22  ;;  %v2707_v17 = vsel %vm658_vm3, %v2704_v62, %v2706_v19 }
 0x484   : > { %2654 = vst.msk [vmem:[#allocation2 + $0x40] sm:$0xff] %vm625_vm4, %v2567_v3  ;;  %3293 = vrot.lane.b32.xlu1 %v6429_v13, %s4556_s21 }
 0x485   : > { %3169 = vrot.lane.b32.xlu0 %v2702_v35, %s4555_s16 }
 0x486   : > { %v2573_v53 = vpop.permute.xlu1 %2572 }
 0x487   : > { %v2571_v55 = vpop.permute.xlu0 %2570  ;;  %2657 = vst.msk [vmem:[#allocation2 + $0x58] sm:$0xff] %vm625_vm4, %v2573_v53 }
 0x488   : > { %2656 = vst.msk [vmem:[#allocation2 + $0x50] sm:$0xff] %vm625_vm4, %v2571_v55  ;;  %3297 = vrot.lane.b32.xlu1 %v6433_v57, %s4556_s21 }
 0x489   : > { %3295 = vrot.lane.b32.xlu0 %v6419_v31, %s4556_s21 }
 0x48a   : > { %v2577_v54 = vpop.permute.xlu1 %2576 }
 0x48b   : > { %v2575_v58 = vpop.permute.xlu0 %2574  ;;  %2659 = vst.msk [vmem:[#allocation2 + $0x68] sm:$0xff] %vm625_vm4, %v2577_v54  ;;  %v2711_v54 = vrot.slane %v6554_v2, 2 }
 0x48c   : > { %2658 = vst.msk [vmem:[#allocation2 + $0x60] sm:$0xff] %vm625_vm4, %v2575_v58  ;;  %3427 = vrot.lane.b32.xlu1 %v6542_v46, %s4557_s28  ;;  %v2703_v46 = vrot.slane %v6433_v57, 2 }
 0x48d   : > { %3299 = vrot.lane.b32.xlu0 %v6431_v47, %s4556_s21 }
 0x48e   : > { %v2581_v13 = vpop.permute.xlu1 %2580 }
 0x48f   : > { %v2579_v52 = vpop.permute.xlu0 %2578  ;;  %2661 = vst.msk [vmem:[#allocation2 + $0x78] sm:$0xff] %vm625_vm4, %v2581_v13 }
 0x490   : > { %2660 = vst.msk [vmem:[#allocation2 + $0x70] sm:$0xff] %vm625_vm4, %v2579_v52  ;;  %3431 = vrot.lane.b32.xlu1 %v6571_v16, %s4557_s28 }
 0x491   : > { %3429 = vrot.lane.b32.xlu0 %v6539_v6, %s4557_s28  ;;  %v2705_v6 = vsel %vm658_vm3, %v2703_v46, %v2704_v62 }
 0x492   : > { %v2585_v31 = vpop.permute.xlu1 %2584 }
 0x493   : > { %v2583_v33 = vpop.permute.xlu0 %2582  ;;  %2663 = vst.msk [vmem:[#allocation2 + $0x88] sm:$0xff] %vm625_vm4, %v2585_v31 }
 0x494   : > { %2662 = vst.msk [vmem:[#allocation2 + $0x80] sm:$0xff] %vm625_vm4, %v2583_v33  ;;  %3560 = vrot.lane.b32.xlu1 %v2700_v29, %s4558_s15 }
 0x495   : > { %3433 = vrot.lane.b32.xlu0 %v6568_v41, %s4557_s28 }
 0x496   : > { %v2589_v20 = vpop.permute.xlu1 %2588 }
 0x497   : > { %v2587_v23 = vpop.permute.xlu0 %2586  ;;  %2665 = vst.msk [vmem:[#allocation2 + $0x98] sm:$0xff] %vm625_vm4, %v2589_v20 }
 0x498   : > { %2664 = vst.msk [vmem:[#allocation2 + $0x90] sm:$0xff] %vm625_vm4, %v2587_v23  ;;  %3564 = vrot.lane.b32.xlu1 %v2705_v6, %s4558_s15  ;;  %v2714_v23 = vrot.slane %v6448_v18, 2 }
 0x499   : > { %3562 = vrot.lane.b32.xlu0 %v2702_v35, %s4558_s15 }
 0x49a   : > { %v2593_v4 = vpop.permute.xlu1 %2592 }
 0x49b   : > { %v2591_v1 = vpop.permute.xlu0 %2590  ;;  %2667 = vst.msk [vmem:[#allocation2 + $0xa8] sm:$0xff] %vm625_vm4, %v2593_v4  ;;  %v2716_v4 = vrot.slane %v6579_v15, 2 }
 0x49c   : > { %2666 = vst.msk [vmem:[#allocation2 + $0xa0] sm:$0xff] %vm625_vm4, %v2591_v1  ;;  %2774 = vrot.lane.b32.xlu1 %v2700_v29, %s4552_s9 }
 0x49d   : > { %3566 = vrot.lane.b32.xlu0 %v2707_v17, %s4558_s15 }
 0x49e   : > { %v2759_v8 = vpop.permute.xlu1 %2758 }
 0x49f   : > { %v2595_v24 = vpop.permute.xlu0 %2594  ;;  %2854 = vst.msk [vmem:[#allocation2] sm:$0xff] %vm835_vm5, %v2759_v8  ;;  %v2717_v8 = vsel %vm658_vm3, %v2714_v23, %v2716_v4 }
 0x4a0   : > { %2668 = vst.msk [vmem:[#allocation2 + $0xb0] sm:$0xff] %vm625_vm4, %v2595_v24  ;;  %2778 = vrot.lane.b32.xlu1 %v2705_v6, %s4552_s9 }
 0x4a1   : > { %2776 = vrot.lane.b32.xlu0 %v2702_v35, %s4552_s9  ;;  %v2709_v35 = vrot.slane %v6441_v26, 2 }
 0x4a2   : > { %v2763_v12 = vpop.permute.xlu1 %2762 }
 0x4a3   : > { %v2761_v37 = vpop.permute.xlu0 %2760  ;;  %2856 = vst.msk [vmem:[#allocation2 + $0x10] sm:$0xff] %vm835_vm5, %v2763_v12  ;;  %v2712_v52 = vsel %vm658_vm3, %v2709_v35, %v2711_v54 }
 0x4a4   : > { %2855 = vst.msk [vmem:[#allocation2 + $0x8] sm:$0xff] %vm835_vm5, %v2761_v37  ;;  %2904 = vrot.lane.b32.xlu1 %v6433_v57, %s4553_s10 }
 0x4a5   : > { %2780 = vrot.lane.b32.xlu0 %v2707_v17, %s4552_s9 }
 0x4a6   : > { %v2889_v56 = vpop.permute.xlu1 %2888 }
 0x4a7   : > { %v2765_v10 = vpop.permute.xlu0 %2764  ;;  %2984 = vst.msk [vmem:[#allocation2] sm:$0xff] %vm966_vm6, %v2889_v56 }
 0x4a8   : > { %2857 = vst.msk [vmem:[#allocation2 + $0x18] sm:$0xff] %vm835_vm5, %v2765_v10  ;;  %2908 = vrot.lane.b32.xlu1 %v6446_v43, %s4553_s10 }
 0x4a9   : > { %2906 = vrot.lane.b32.xlu0 %v6431_v47, %s4553_s10 }
 0x4aa   : > { %v2893_v29 = vpop.permute.xlu1 %2892 }
 0x4ab   : > { %v2891_v63 = vpop.permute.xlu0 %2890  ;;  %2986 = vst.msk [vmem:[#allocation2 + $0x10] sm:$0xff] %vm966_vm6, %v2893_v29 }
 0x4ac   : > { %2985 = vst.msk [vmem:[#allocation2 + $0x8] sm:$0xff] %vm966_vm6, %v2891_v63  ;;  %3038 = vrot.lane.b32.xlu1 %v6571_v16, %s4554_s11  ;;  %v2708_v16 = vrot.slane %v6446_v43, 2 }
 0x4ad   : > { %2910 = vrot.lane.b32.xlu0 %v6441_v26, %s4553_s10 }
 0x4ae   : > { %v3023_v57 = vpop.permute.xlu1 %3022 }
 0x4af   : > { %v2895_v22 = vpop.permute.xlu0 %2894  ;;  %3118 = vst.msk [vmem:[#allocation2] sm:$0xff] %vm1133_vm7, %v3023_v57 }
 0x4b0   : > { %2987 = vst.msk [vmem:[#allocation2 + $0x18] sm:$0xff] %vm966_vm6, %v2895_v22  ;;  %3042 = vrot.lane.b32.xlu1 %v6586_v25, %s4554_s11 }
 0x4b1   : > { %3040 = vrot.lane.b32.xlu0 %v6568_v41, %s4554_s11  ;;  %v2710_v41 = vsel %vm658_vm3, %v2708_v16, %v2709_v35 }
 0x4b2   : > { %v3027_v47 = vpop.permute.xlu1 %3026 }
 0x4b3   : > { %v3025_v3 = vpop.permute.xlu0 %3024  ;;  %3120 = vst.msk [vmem:[#allocation2 + $0x10] sm:$0xff] %vm1133_vm7, %v3027_v47 }
 0x4b4   : > { %3119 = vst.msk [vmem:[#allocation2 + $0x8] sm:$0xff] %vm1133_vm7, %v3025_v3  ;;  %3171 = vrot.lane.b32.xlu1 %v2705_v6, %s4555_s16 }
 0x4b5   : > { %3044 = vrot.lane.b32.xlu0 %v6583_v5, %s4554_s11 }
 0x4b6   : > { %v3156_v53 = vpop.permute.xlu1 %3155 }
 0x4b7   : > { %v3029_v55 = vpop.permute.xlu0 %3028  ;;  %3251 = vst.msk [vmem:[#allocation2] sm:$0xff] %vm1267_vm8, %v3156_v53 }
 0x4b8   : > { %3121 = vst.msk [vmem:[#allocation2 + $0x18] sm:$0xff] %vm1133_vm7, %v3029_v55  ;;  %3175 = vrot.lane.b32.xlu1 %v2710_v41, %s4555_s16 }
 0x4b9   : > { %3173 = vrot.lane.b32.xlu0 %v2707_v17, %s4555_s16 }
 0x4ba   : > { %v3160_v58 = vpop.permute.xlu1 %3159 }
 0x4bb   : > { %v3158_v13 = vpop.permute.xlu0 %3157  ;;  %3253 = vst.msk [vmem:[#allocation2 + $0x10] sm:$0xff] %vm1267_vm8, %v3160_v58 }
 0x4bc   : > { %3252 = vst.msk [vmem:[#allocation2 + $0x8] sm:$0xff] %vm1267_vm8, %v3158_v13  ;;  %3301 = vrot.lane.b32.xlu1 %v6446_v43, %s4556_s21  ;;  %v2721_v13 = vrot.slane %v6594_v7, 2 }
 0x4bd   : > { %3177 = vrot.lane.b32.xlu0 %v2712_v52, %s4555_s16 }
 0x4be   : > { %v3286_v31 = vpop.permute.xlu1 %3285 }
 0x4bf   : > { %v3162_v33 = vpop.permute.xlu0 %3161  ;;  %3381 = vst.msk [vmem:[#allocation2] sm:$0xff] %vm1398_vm9, %v3286_v31 }
 0x4c0   : > { %3254 = vst.msk [vmem:[#allocation2 + $0x18] sm:$0xff] %vm1267_vm8, %v3162_v33  ;;  %3305 = vrot.lane.b32.xlu1 %v6462_v42, %s4556_s21 }
 0x4c1   : > { %3303 = vrot.lane.b32.xlu0 %v6441_v26, %s4556_s21 }
 0x4c2   : > { %v3290_v2 = vpop.permute.xlu1 %3289 }
 0x4c3   : > { %v3288_v46 = vpop.permute.xlu0 %3287  ;;  %3383 = vst.msk [vmem:[#allocation2 + $0x10] sm:$0xff] %vm1398_vm9, %v3290_v2 }
 0x4c4   : > { %3382 = vst.msk [vmem:[#allocation2 + $0x8] sm:$0xff] %vm1398_vm9, %v3288_v46  ;;  %3435 = vrot.lane.b32.xlu1 %v6586_v25, %s4557_s28  ;;  %v2713_v25 = vrot.slane %v6462_v42, 2 }
 0x4c5   : > { %3307 = vrot.lane.b32.xlu0 %v6448_v18, %s4556_s21 }
 0x4c6   : > { %v3420_v43 = vpop.permute.xlu1 %3419 }
 0x4c7   : > { %v3292_v62 = vpop.permute.xlu0 %3291  ;;  %3515 = vst.msk [vmem:[#allocation2] sm:$0xff] %vm1533_vm10, %v3420_v43 }
 0x4c8   : > { %3384 = vst.msk [vmem:[#allocation2 + $0x18] sm:$0xff] %vm1398_vm9, %v3292_v62  ;;  %3439 = vrot.lane.b32.xlu1 %v6601_v49, %s4557_s28 }
 0x4c9   : > { %3437 = vrot.lane.b32.xlu0 %v6583_v5, %s4557_s28  ;;  %v2715_v5 = vsel %vm658_vm3, %v2713_v25, %v2714_v23 }
 0x4ca   : > { %v3424_v26 = vpop.permute.xlu1 %3423 }
 0x4cb   : > { %v3422_v20 = vpop.permute.xlu0 %3421  ;;  %3517 = vst.msk [vmem:[#allocation2 + $0x10] sm:$0xff] %vm1533_vm10, %v3424_v26 }
 0x4cc   : > { %3516 = vst.msk [vmem:[#allocation2 + $0x8] sm:$0xff] %vm1533_vm10, %v3422_v20  ;;  %3568 = vrot.lane.b32.xlu1 %v2710_v41, %s4558_s15  ;;  %v2724_v20 = vrot.slane %v6478_v30, 2 }
 0x4cd   : > { %3441 = vrot.lane.b32.xlu0 %v6598_v27, %s4557_s28 }
 0x4ce   : > { %v3553_v6 = vpop.permute.xlu1 %3552 }
 0x4cf   : > { %v3426_v19 = vpop.permute.xlu0 %3425  ;;  %3648 = vst.msk [vmem:[#allocation2] sm:$0xff] %vm1667_vm11, %v3553_v6  ;;  %v2726_v6 = vrot.slane %v6609_v34, 2 }
 0x4d0   : > { %3518 = vst.msk [vmem:[#allocation2 + $0x18] sm:$0xff] %vm1533_vm10, %v3426_v19  ;;  %3572 = vrot.lane.b32.xlu1 %v2715_v5, %s4558_s15 }
 0x4d1   : > { %3570 = vrot.lane.b32.xlu0 %v2712_v52, %s4558_s15  ;;  %v2727_v4 = vsel %vm658_vm3, %v2724_v20, %v2726_v6 }
 0x4d2   : > { %v3557_v1 = vpop.permute.xlu1 %3556 }
 0x4d3   : > { %v3555_v17 = vpop.permute.xlu0 %3554  ;;  %3650 = vst.msk [vmem:[#allocation2 + $0x10] sm:$0xff] %vm1667_vm11, %v3557_v1 }
 0x4d4   : > { %3649 = vst.msk [vmem:[#allocation2 + $0x8] sm:$0xff] %vm1667_vm11, %v3555_v17  ;;  %2782 = vrot.lane.b32.xlu1 %v2710_v41, %s4552_s9  ;;  %v2719_v41 = vrot.slane %v6464_v61, 2 }
 0x4d5   : > { %3574 = vrot.lane.b32.xlu0 %v2717_v8, %s4558_s15 }
 0x4d6   : > { %v2767_v24 = vpop.permute.xlu1 %2766  ;;  %v3680_v56 = vld [vmem:[#allocation2] sm:$0xff]  ;;  %v2722_v33 = vsel %vm658_vm3, %v2719_v41, %v2721_v13 }
 0x4d7   : > { %v3559_v12 = vpop.permute.xlu0 %3558  ;;  %2858 = vst.msk [vmem:[#allocation2 + $0x20] sm:$0xff] %vm835_vm5, %v2767_v24 }
 0x4d8   : > { %3651 = vst.msk [vmem:[#allocation2 + $0x18] sm:$0xff] %vm1667_vm11, %v3559_v12  ;;  %2786 = vrot.lane.b32.xlu1 %v2715_v5, %s4552_s9 }
 0x4d9   : > { %2784 = vrot.lane.b32.xlu0 %v2712_v52, %s4552_s9 }
 0x4da   : > { %v2771_v15 = vpop.permute.xlu1 %2770  ;;  %v3682_v22 = vld [vmem:[#allocation2 + $0x10] sm:$0xff] }
 0x4db   : > { %v2769_v37 = vpop.permute.xlu0 %2768  ;;  %v3681_v10 = vld [vmem:[#allocation2 + $0x8] sm:$0xff]  ;;  %2860 = vst.msk [vmem:[#allocation2 + $0x30] sm:$0xff] %vm835_vm5, %v2771_v15 }
 0x4dc   : > { %2859 = vst.msk [vmem:[#allocation2 + $0x28] sm:$0xff] %vm835_vm5, %v2769_v37  ;;  %v3712_v29 = vpack.c.bf16 %v3681_v10, %v3680_v56  ;;  %2912 = vrot.lane.b32.xlu1 %v6462_v42, %s4553_s10 }
 0x4dd   : > { %2788 = vrot.lane.b32.xlu0 %v2717_v8, %s4552_s9 }
 0x4de   : > { %4467 = vmatprep.mubr.bf16.mxu1 %v3712_v29  ;;  %v2897_v63 = vpop.permute.xlu1 %2896 }
 0x4df   : > { %v2773_v57 = vpop.permute.xlu0 %2772  ;;  %v3683_v47 = vld [vmem:[#allocation2 + $0x18] sm:$0xff]  ;;  %2988 = vst.msk [vmem:[#allocation2 + $0x20] sm:$0xff] %vm966_vm6, %v2897_v63 }
 0x4e0   : > { %2861 = vst.msk [vmem:[#allocation2 + $0x38] sm:$0xff] %vm835_vm5, %v2773_v57  ;;  %v3713_v3 = vpack.c.bf16 %v3683_v47, %v3682_v22  ;;  %2916 = vrot.lane.b32.xlu1 %v6476_v50, %s4553_s10 }
 0x4e1   : > { %2914 = vrot.lane.b32.xlu0 %v6448_v18, %s4553_s10 }
 0x4e2   : > { %4468 = vmatmul.mubr.bf16.vlgmr.msra.gmra.mrb[0].mxu1 %v3713_v3  ;;  %v2901_v42 = vpop.permute.xlu1 %2900 }
 0x4e3   : > { %v2899_v16 = vpop.permute.xlu0 %2898  ;;  %2990 = vst.msk [vmem:[#allocation2 + $0x30] sm:$0xff] %vm966_vm6, %v2901_v42  ;;  %v2729_v42 = vrot.slane %v6489_v44, 2 }
 0x4e4   : > { %2989 = vst.msk [vmem:[#allocation2 + $0x28] sm:$0xff] %vm966_vm6, %v2899_v16  ;;  %3046 = vrot.lane.b32.xlu1 %v6601_v49, %s4554_s11  ;;  %v2718_v49 = vrot.slane %v6476_v50, 2 }
 0x4e5   : > { %2918 = vrot.lane.b32.xlu0 %v6464_v61, %s4553_s10 }
 0x4e6   : > { %v3031_v35 = vpop.permute.xlu1 %3030 }
 0x4e7   : > { %v2903_v53 = vpop.permute.xlu0 %2902  ;;  %3122 = vst.msk [vmem:[#allocation2 + $0x20] sm:$0xff] %vm1133_vm7, %v3031_v35 }
 0x4e8   : > { %2991 = vst.msk [vmem:[#allocation2 + $0x38] sm:$0xff] %vm966_vm6, %v2903_v53  ;;  %3050 = vrot.lane.b32.xlu1 %v6616_v60, %s4554_s11  ;;  %v2731_v53 = vrot.slane %v6624_v14, 2 }
 0x4e9   : > { %3048 = vrot.lane.b32.xlu0 %v6598_v27, %s4554_s11  ;;  %v2720_v27 = vsel %vm658_vm3, %v2718_v49, %v2719_v41 }
 0x4ea   : > { %v3035_v18 = vpop.permute.xlu1 %3034  ;;  %v2732_v49 = vsel %vm658_vm3, %v2729_v42, %v2731_v53  ;;  %v7935_v53 = vld [vmem:[#allocation9_spill] sm:$0xff] }
 0x4eb   : > { %v3033_v55 = vpop.permute.xlu0 %3032  ;;  %3124 = vst.msk [vmem:[#allocation2 + $0x30] sm:$0xff] %vm1133_vm7, %v3035_v18 }
 0x4ec   : > { %3123 = vst.msk [vmem:[#allocation2 + $0x28] sm:$0xff] %vm1133_vm7, %v3033_v55  ;;  %3179 = vrot.lane.b32.xlu1 %v2715_v5, %s4555_s16 }
 0x4ed   : > { %3052 = vrot.lane.b32.xlu0 %v6613_v9, %s4554_s11 }
 0x4ee   : > { %v3164_v54 = vpop.permute.xlu1 %3163 }
 0x4ef   : > { %v3037_v58 = vpop.permute.xlu0 %3036  ;;  %3255 = vst.msk [vmem:[#allocation2 + $0x20] sm:$0xff] %vm1267_vm8, %v3164_v54 }
 0x4f0   : > { %3125 = vst.msk [vmem:[#allocation2 + $0x38] sm:$0xff] %vm1133_vm7, %v3037_v58  ;;  %3183 = vrot.lane.b32.xlu1 %v2720_v27, %s4555_s16 }
 0x4f1   : > { %3181 = vrot.lane.b32.xlu0 %v2717_v8, %s4555_s16 }
 0x4f2   : > { %v3168_v52 = vpop.permute.xlu1 %3167 }
 0x4f3   : > { %v3166_v31 = vpop.permute.xlu0 %3165  ;;  %3257 = vst.msk [vmem:[#allocation2 + $0x30] sm:$0xff] %vm1267_vm8, %v3168_v52 }
 0x4f4   : > { %3256 = vst.msk [vmem:[#allocation2 + $0x28] sm:$0xff] %vm1267_vm8, %v3166_v31  ;;  %3309 = vrot.lane.b32.xlu1 %v6476_v50, %s4556_s21 }
 0x4f5   : > { %3185 = vrot.lane.b32.xlu0 %v2722_v33, %s4555_s16 }
 0x4f6   : > { %v3294_v2 = vpop.permute.xlu1 %3293 }
 0x4f7   : > { %v3170_v46 = vpop.permute.xlu0 %3169  ;;  %3385 = vst.msk [vmem:[#allocation2 + $0x20] sm:$0xff] %vm1398_vm9, %v3294_v2  ;;  %v2734_v2 = vrot.slane %v6505_v28, 2 }
 0x4f8   : > { %3258 = vst.msk [vmem:[#allocation2 + $0x38] sm:$0xff] %vm1267_vm8, %v3170_v46  ;;  %3313 = vrot.lane.b32.xlu1 %v6484_v0, %s4556_s21 }
 0x4f9   : > { %3311 = vrot.lane.b32.xlu0 %v6464_v61, %s4556_s21 }
 0x4fa   : > { %v3298_v7 = vpop.permute.xlu1 %3297 }
 0x4fb   : > { %v3296_v43 = vpop.permute.xlu0 %3295  ;;  %3387 = vst.msk [vmem:[#allocation2 + $0x30] sm:$0xff] %vm1398_vm9, %v3298_v7 }
 0x4fc   : > { %3386 = vst.msk [vmem:[#allocation2 + $0x28] sm:$0xff] %vm1398_vm9, %v3296_v43  ;;  %3443 = vrot.lane.b32.xlu1 %v6616_v60, %s4557_s28  ;;  %v2723_v60 = vrot.slane %v6484_v0, 2 }
 0x4fd   : > { %3315 = vrot.lane.b32.xlu0 %v6478_v30, %s4556_s21 }
 0x4fe   : > { %v3428_v50 = vpop.permute.xlu1 %3427 }
 0x4ff   : > { %v3300_v62 = vpop.permute.xlu0 %3299  ;;  %3519 = vst.msk [vmem:[#allocation2 + $0x20] sm:$0xff] %vm1533_vm10, %v3428_v50 }
 0x500   : > { %3388 = vst.msk [vmem:[#allocation2 + $0x38] sm:$0xff] %vm1398_vm9, %v3300_v62  ;;  %3447 = vrot.lane.b32.xlu1 %v6631_v48, %s4557_s28 }
 0x501   : > { %3445 = vrot.lane.b32.xlu0 %v6613_v9, %s4557_s28  ;;  %v2725_v9 = vsel %vm658_vm3, %v2723_v60, %v2724_v20 }
 0x502   : > { %v3432_v61 = vpop.permute.xlu1 %3431 }
 0x503   : > { %v3430_v26 = vpop.permute.xlu0 %3429  ;;  %3521 = vst.msk [vmem:[#allocation2 + $0x30] sm:$0xff] %vm1533_vm10, %v3432_v61 }
 0x504   : > { %3520 = vst.msk [vmem:[#allocation2 + $0x28] sm:$0xff] %vm1533_vm10, %v3430_v26  ;;  %3576 = vrot.lane.b32.xlu1 %v2720_v27, %s4558_s15 }
 0x505   : > { %3449 = vrot.lane.b32.xlu0 %v6628_v40, %s4557_s28 }
 0x506   : > { %v3561_v25 = vpop.permute.xlu1 %3560 }
 0x507   : > { %v3434_v23 = vpop.permute.xlu0 %3433  ;;  %3652 = vst.msk [vmem:[#allocation2 + $0x20] sm:$0xff] %vm1667_vm11, %v3561_v25 }
 0x508   : > { %3522 = vst.msk [vmem:[#allocation2 + $0x38] sm:$0xff] %vm1533_vm10, %v3434_v23  ;;  %3580 = vrot.lane.b32.xlu1 %v2725_v9, %s4558_s15 }
 0x509   : > { %3578 = vrot.lane.b32.xlu0 %v2722_v33, %s4558_s15 }
 0x50a   : > { %v3565_v19 = vpop.permute.xlu1 %3564 }
 0x50b   : > { %v3563_v5 = vpop.permute.xlu0 %3562  ;;  %3654 = vst.msk [vmem:[#allocation2 + $0x30] sm:$0xff] %vm1667_vm11, %v3565_v19 }
 0x50c   : > { %3653 = vst.msk [vmem:[#allocation2 + $0x28] sm:$0xff] %vm1667_vm11, %v3563_v5  ;;  %2790 = vrot.lane.b32.xlu1 %v2720_v27, %s4552_s9 }
 0x50d   : > { %3582 = vrot.lane.b32.xlu0 %v2727_v4, %s4558_s15 }
 0x50e   : > { %v2775_v1 = vpop.permute.xlu1 %2774  ;;  %v3684_v24 = vld [vmem:[#allocation2 + $0x20] sm:$0xff] }
 0x50f   : > { %v3567_v17 = vpop.permute.xlu0 %3566  ;;  %2862 = vst.msk [vmem:[#allocation2 + $0x40] sm:$0xff] %vm835_vm5, %v2775_v1 }
 0x510   : > { %3655 = vst.msk [vmem:[#allocation2 + $0x38] sm:$0xff] %vm1667_vm11, %v3567_v17  ;;  %2794 = vrot.lane.b32.xlu1 %v2725_v9, %s4552_s9 }
 0x511   : > { %2792 = vrot.lane.b32.xlu0 %v2722_v33, %s4552_s9  ;;  %v2733_v33 = vrot.slane %v6503_v11, 2 }
 0x512   : > { %v2779_v34 = vpop.permute.xlu1 %2778  ;;  %v3686_v10 = vld [vmem:[#allocation2 + $0x30] sm:$0xff] }
 0x513   : > { %v2777_v8 = vpop.permute.xlu0 %2776  ;;  %v3685_v12 = vld [vmem:[#allocation2 + $0x28] sm:$0xff]  ;;  %2864 = vst.msk [vmem:[#allocation2 + $0x50] sm:$0xff] %vm835_vm5, %v2779_v34  ;;  %v7058_v7 = vsel %vm658_vm3, %v2733_v33, %v2734_v2  ;;  %v2743_v33 = vrot.slane %v7935_v53, 2 }
 0x514   : > { %2863 = vst.msk [vmem:[#allocation2 + $0x48] sm:$0xff] %vm835_vm5, %v2777_v8  ;;  %v3714_v15 = vpack.c.bf16 %v3685_v12, %v3684_v24  ;;  %2920 = vrot.lane.b32.xlu1 %v6484_v0, %s4553_s10  ;;  %v2374_v8 = vld [vmem:[#allocation3 + $0x130] sm:$0x3] }
 0x515   : > { %2796 = vrot.lane.b32.xlu0 %v2727_v4, %s4552_s9 }
 0x516   : > { %4471 = vmatprep.mubr.bf16.mxu1 %v3714_v15  ;;  %v2905_v37 = vpop.permute.xlu1 %2904  ;;  %v2530_v15 = vrot.slane %v6521_v45, 1 }
 0x517   : > { %v2781_v56 = vpop.permute.xlu0 %2780  ;;  %v3687_v29 = vld [vmem:[#allocation2 + $0x38] sm:$0xff]  ;;  %2992 = vst.msk [vmem:[#allocation2 + $0x40] sm:$0xff] %vm966_vm6, %v2905_v37 }
 0x518   : > { %2865 = vst.msk [vmem:[#allocation2 + $0x58] sm:$0xff] %vm835_vm5, %v2781_v56  ;;  %v3715_v63 = vpack.c.bf16 %v3687_v29, %v3686_v10  ;;  %2924 = vrot.lane.b32.xlu1 %v6501_v51, %s4553_s10 }
 0x519   : > { %2922 = vrot.lane.b32.xlu0 %v6478_v30, %s4553_s10 }
 0x51a   : > { %4472 = vmatmul.mubr.bf16.gmra.mrb[4].mxu1 %v3715_v63  ;;  %v2909_v0 = vpop.permute.xlu1 %2908 }
 0x51b   : > { %v2907_v57 = vpop.permute.xlu0 %2906  ;;  %2994 = vst.msk [vmem:[#allocation2 + $0x50] sm:$0xff] %vm966_vm6, %v2909_v0  ;;  %v2739_v0 = vrot.slane %v6519_v36, 2 }
 0x51c   : > { %2993 = vst.msk [vmem:[#allocation2 + $0x48] sm:$0xff] %vm966_vm6, %v2907_v57  ;;  %3054 = vrot.lane.b32.xlu1 %v6631_v48, %s4554_s11  ;;  %v2728_v48 = vrot.slane %v6501_v51, 2  ;;  %v2741_v57 = vrot.slane %v2374_v8, 2 }
 0x51d   : > { %2926 = vrot.lane.b32.xlu0 %v6489_v44, %s4553_s10 }
 0x51e   : > { %v3039_v22 = vpop.permute.xlu1 %3038 }
 0x51f   : > { %v2911_v47 = vpop.permute.xlu0 %2910  ;;  %3126 = vst.msk [vmem:[#allocation2 + $0x40] sm:$0xff] %vm1133_vm7, %v3039_v22  ;;  %v2738_v22 = vrot.slane %v6521_v45, 2 }
 0x520   : > { %2995 = vst.msk [vmem:[#allocation2 + $0x58] sm:$0xff] %vm966_vm6, %v2911_v47  ;;  %3058 = vrot.lane.b32.xlu1 %v6643_v38, %s4554_s11 }
 0x521   : > { %3056 = vrot.lane.b32.xlu0 %v6628_v40, %s4554_s11  ;;  %v2730_v40 = vsel %vm658_vm3, %v2728_v48, %v2729_v42  ;;  %v7121_v48 = vsel %vm658_vm3, %v2738_v22, %v2739_v0 }
 0x522   : > { %v3043_v30 = vpop.permute.xlu1 %3042 }
 0x523   : > { %v3041_v3 = vpop.permute.xlu0 %3040  ;;  %3128 = vst.msk [vmem:[#allocation2 + $0x50] sm:$0xff] %vm1133_vm7, %v3043_v30 }
 0x524   : > { %3127 = vst.msk [vmem:[#allocation2 + $0x48] sm:$0xff] %vm1133_vm7, %v3041_v3  ;;  %3187 = vrot.lane.b32.xlu1 %v2725_v9, %s4555_s16  ;;  %v7118_v3 = vsel %vm658_vm3, %v2739_v0, %v2741_v57 }
 0x525   : > { %3060 = vrot.lane.b32.xlu0 %v6640_v59, %s4554_s11 }
 0x526   : > { %v3172_v16 = vpop.permute.xlu1 %3171 }
 0x527   : > { %v3045_v35 = vpop.permute.xlu0 %3044  ;;  %3259 = vst.msk [vmem:[#allocation2 + $0x40] sm:$0xff] %vm1267_vm8, %v3172_v16 }
 0x528   : > { %3129 = vst.msk [vmem:[#allocation2 + $0x58] sm:$0xff] %vm1133_vm7, %v3045_v35  ;;  %3191 = vrot.lane.b32.xlu1 %v2730_v40, %s4555_s16 }
 0x529   : > { %3189 = vrot.lane.b32.xlu0 %v2727_v4, %s4555_s16 }
 0x52a   : > { %v3176_v18 = vpop.permute.xlu1 %3175 }
 0x52b   : > { %v3174_v55 = vpop.permute.xlu0 %3173  ;;  %3261 = vst.msk [vmem:[#allocation2 + $0x50] sm:$0xff] %vm1267_vm8, %v3176_v18  ;;  %v2377_v18 = vld [vmem:[#allocation3 + $0x148] sm:$0x3] }
 0x52c   : > { %3260 = vst.msk [vmem:[#allocation2 + $0x48] sm:$0xff] %vm1267_vm8, %v3174_v55  ;;  %3317 = vrot.lane.b32.xlu1 %v6501_v51, %s4556_s21  ;;  %v2371_v51 = vld [vmem:[#allocation3 + $0x118] sm:$0x3] }
 0x52d   : > { %3193 = vrot.lane.b32.xlu0 %v2732_v49, %s4555_s16  ;;  %v2736_v43 = vrot.slane %v2371_v51, 2 }
 0x52e   : > { %v3302_v41 = vpop.permute.xlu1 %3301 }
 0x52f   : > { %v3178_v54 = vpop.permute.xlu0 %3177  ;;  %3389 = vst.msk [vmem:[#allocation2 + $0x40] sm:$0xff] %vm1398_vm9, %v3302_v41  ;;  %v2737_v62 = vsel %vm658_vm3, %v2734_v2, %v2736_v43  ;;  %v2535_v41 = vrot.slane %v7935_v53, 1 }
 0x530   : > { %3262 = vst.msk [vmem:[#allocation2 + $0x58] sm:$0xff] %vm1267_vm8, %v3178_v54  ;;  %3321 = vrot.lane.b32.xlu1 %v6503_v11, %s4556_s21 }
 0x531   : > { %3319 = vrot.lane.b32.xlu0 %v6489_v44, %s4556_s21  ;;  %v2528_v44 = vrot.slane %v2371_v51, 1 }
 0x532   : > { %v3306_v14 = vpop.permute.xlu1 %3305 }
 0x533   : > { %v3304_v58 = vpop.permute.xlu0 %3303  ;;  %3391 = vst.msk [vmem:[#allocation2 + $0x50] sm:$0xff] %vm1398_vm9, %v3306_v14 }
 0x534   : > { %3390 = vst.msk [vmem:[#allocation2 + $0x48] sm:$0xff] %vm1398_vm9, %v3304_v58  ;;  %3451 = vrot.lane.b32.xlu1 %v6643_v38, %s4557_s28  ;;  %v2529_v38 = vsel %vm448_vm2, %v2526_v21, %v2528_v44 }
 0x535   : > { %3323 = vrot.lane.b32.xlu0 %v6505_v28, %s4556_s21 }
 0x536   : > { %v3436_v27 = vpop.permute.xlu1 %3435 }
 0x537   : > { %v3308_v13 = vpop.permute.xlu0 %3307  ;;  %3523 = vst.msk [vmem:[#allocation2 + $0x40] sm:$0xff] %vm1533_vm10, %v3436_v27 }
 0x538   : > { %3392 = vst.msk [vmem:[#allocation2 + $0x58] sm:$0xff] %vm1398_vm9, %v3308_v13  ;;  %3455 = vrot.lane.b32.xlu1 %v6654_v39, %s4557_s28 }
 0x539   : > { %3453 = vrot.lane.b32.xlu0 %v6640_v59, %s4557_s28 }
 0x53a   : > { %v3440_v52 = vpop.permute.xlu1 %3439 }
 0x53b   : > { %v3438_v31 = vpop.permute.xlu0 %3437  ;;  %3525 = vst.msk [vmem:[#allocation2 + $0x50] sm:$0xff] %vm1533_vm10, %v3440_v52 }
 0x53c   : > { %3524 = vst.msk [vmem:[#allocation2 + $0x48] sm:$0xff] %vm1533_vm10, %v3438_v31  ;;  %3584 = vrot.lane.b32.xlu1 %v2730_v40, %s4558_s15  ;;  %v2744_v31 = vrot.slane %v6527_v32, 2 }
 0x53d   : > { %3457 = vrot.lane.b32.xlu0 %v2529_v38, %s4557_s28 }
 0x53e   : > { %v3569_v46 = vpop.permute.xlu1 %3568 }
 0x53f   : > { %v3442_v59 = vpop.permute.xlu0 %3441  ;;  %3656 = vst.msk [vmem:[#allocation2 + $0x40] sm:$0xff] %vm1667_vm11, %v3569_v46 }
 0x540   : > { %3526 = vst.msk [vmem:[#allocation2 + $0x58] sm:$0xff] %vm1533_vm10, %v3442_v59  ;;  %3588 = vrot.lane.b32.xlu1 %v7058_v7, %s4558_s15 }
 0x541   : > { %3586 = vrot.lane.b32.xlu0 %v2732_v49, %s4558_s15 }
 0x542   : > { %v3573_v21 = vpop.permute.xlu1 %3572 }
 0x543   : > { %v3571_v50 = vpop.permute.xlu0 %3570  ;;  %3658 = vst.msk [vmem:[#allocation2 + $0x50] sm:$0xff] %vm1667_vm11, %v3573_v21 }
 0x544   : > { %3657 = vst.msk [vmem:[#allocation2 + $0x48] sm:$0xff] %vm1667_vm11, %v3571_v50  ;;  %2596 = vrot.lane.b32.xlu1 %v2529_v38, %s4551_s8 }
 0x545   : > { %3590 = vrot.lane.b32.xlu0 %v2737_v62, %s4558_s15 }
 0x546   : > { %v2783_v61 = vpop.permute.xlu1 %2782  ;;  %v3688_v25 = vld [vmem:[#allocation2 + $0x40] sm:$0xff] }
 0x547   : > { %v3575_v26 = vpop.permute.xlu0 %3574  ;;  %2866 = vst.msk [vmem:[#allocation2 + $0x60] sm:$0xff] %vm835_vm5, %v2783_v61 }
 0x548   : > { %3659 = vst.msk [vmem:[#allocation2 + $0x58] sm:$0xff] %vm1667_vm11, %v3575_v26  ;;  %2800 = vrot.lane.b32.xlu1 %v2732_v49, %s4552_s9 }
 0x549   : > { %2798 = vrot.lane.b32.xlu0 %v2730_v40, %s4552_s9 }
 0x54a   : > { %v2787_v60 = vpop.permute.xlu1 %2786  ;;  %v3690_v5 = vld [vmem:[#allocation2 + $0x50] sm:$0xff] }
 0x54b   : > { %v2785_v20 = vpop.permute.xlu0 %2784  ;;  %v3689_v23 = vld [vmem:[#allocation2 + $0x48] sm:$0xff]  ;;  %2868 = vst.msk [vmem:[#allocation2 + $0x70] sm:$0xff] %vm835_vm5, %v2787_v60 }
 0x54c   : > { %2867 = vst.msk [vmem:[#allocation2 + $0x68] sm:$0xff] %vm835_vm5, %v2785_v20  ;;  %v3716_v9 = vpack.c.bf16 %v3689_v23, %v3688_v25  ;;  %2804 = vrot.lane.b32.xlu1 %v2737_v62, %s4552_s9 }
 0x54d   : > { %2802 = vrot.lane.b32.xlu0 %v7058_v7, %s4552_s9 }
 0x54e   : > { %4475 = vmatprep.mubr.bf16.mxu1 %v3716_v9  ;;  %v2913_v6 = vpop.permute.xlu1 %2912 }
 0x54f   : > { %v2789_v19 = vpop.permute.xlu0 %2788  ;;  %v3691_v4 = vld [vmem:[#allocation2 + $0x58] sm:$0xff]  ;;  %2996 = vst.msk [vmem:[#allocation2 + $0x60] sm:$0xff] %vm966_vm6, %v2913_v6 }
 0x550   : > { %2869 = vst.msk [vmem:[#allocation2 + $0x78] sm:$0xff] %vm835_vm5, %v2789_v19  ;;  %v3717_v1 = vpack.c.bf16 %v3691_v4, %v3690_v5  ;;  %2930 = vrot.lane.b32.xlu1 %v6505_v28, %s4553_s10  ;;  %v2533_v28 = vrot.slane %v2374_v8, 1  ;;  %v2380_v8 = vld [vmem:[#allocation3 + $0x160] sm:$0x3] }
 0x551   : > { %2928 = vrot.lane.b32.xlu0 %v6503_v11, %s4553_s10  ;;  %v2531_v11 = vrot.slane %v6519_v36, 1  ;;  %v2751_v0 = vrot.slane %v2380_v8, 2 }
 0x552   : > { %4476 = vmatmul.mubr.bf16.gmra.mrb[8].mxu1 %v3717_v1  ;;  %v2917_v17 = vpop.permute.xlu1 %2916 }
 0x553   : > { %v2915_v34 = vpop.permute.xlu0 %2914  ;;  %2998 = vst.msk [vmem:[#allocation2 + $0x70] sm:$0xff] %vm966_vm6, %v2917_v17  ;;  %v7099_v10 = vsel %vm448_vm2, %v2531_v11, %v2533_v28  ;;  %v7102_v29 = vsel %vm448_vm2, %v2530_v15, %v2531_v11  ;;  %v7936_v17 = vld [vmem:[#allocation30_spill] sm:$0xff]  ;;  %v2543_v11 = vrot.slane %v2380_v8, 1 }
 0x554   : > { %2997 = vst.msk [vmem:[#allocation2 + $0x68] sm:$0xff] %vm966_vm6, %v2915_v34  ;;  %2934 = vrot.lane.b32.xlu1 %v6519_v36, %s4553_s10  ;;  %v7937_v34 = vld [vmem:[#allocation10_spill] sm:$0xff] }
 0x555   : > { %2932 = vrot.lane.b32.xlu0 %v6521_v45, %s4553_s10  ;;  %v2540_v28 = vrot.slane %v7937_v34, 1  ;;  %v2748_v57 = vrot.slane %v7937_v34, 2 }
 0x556   : > { %v3047_v24 = vpop.permute.xlu1 %3046 }
 0x557   : > { %v2919_v12 = vpop.permute.xlu0 %2918  ;;  %3130 = vst.msk [vmem:[#allocation2 + $0x60] sm:$0xff] %vm1133_vm7, %v3047_v24 }
 0x558   : > { %2999 = vst.msk [vmem:[#allocation2 + $0x78] sm:$0xff] %vm966_vm6, %v2919_v12  ;;  %3064 = vrot.lane.b32.xlu1 %v2529_v38, %s4554_s11  ;;  %v2746_v38 = vrot.slane %v2377_v18, 2 }
 0x559   : > { %3062 = vrot.lane.b32.xlu0 %v6654_v39, %s4554_s11 }
 0x55a   : > { %v3051_v37 = vpop.permute.xlu1 %3050  ;;  %v7176_v59 = vsel %vm658_vm3, %v2744_v31, %v2746_v38 }
 0x55b   : > { %v3049_v56 = vpop.permute.xlu0 %3048  ;;  %3132 = vst.msk [vmem:[#allocation2 + $0x70] sm:$0xff] %vm1133_vm7, %v3051_v37 }
 0x55c   : > { %3131 = vst.msk [vmem:[#allocation2 + $0x68] sm:$0xff] %vm1133_vm7, %v3049_v56  ;;  %3068 = vrot.lane.b32.xlu1 %v7099_v10, %s4554_s11 }
 0x55d   : > { %3066 = vrot.lane.b32.xlu0 %v7102_v29, %s4554_s11 }
 0x55e   : > { %v3180_v63 = vpop.permute.xlu1 %3179 }
 0x55f   : > { %v3053_v39 = vpop.permute.xlu0 %3052  ;;  %3263 = vst.msk [vmem:[#allocation2 + $0x60] sm:$0xff] %vm1267_vm8, %v3180_v63 }
 0x560   : > { %3133 = vst.msk [vmem:[#allocation2 + $0x78] sm:$0xff] %vm1133_vm7, %v3053_v39  ;;  %3197 = vrot.lane.b32.xlu1 %v2737_v62, %s4555_s16  ;;  %v2749_v39 = vrot.slane %v7936_v17, 2 }
 0x561   : > { %3195 = vrot.lane.b32.xlu0 %v7058_v7, %s4555_s16  ;;  %v7179_v7 = vsel %vm658_vm3, %v2743_v33, %v2744_v31 }
 0x562   : > { %v3184_v47 = vpop.permute.xlu1 %3183 }
 0x563   : > { %v3182_v30 = vpop.permute.xlu0 %3181  ;;  %3265 = vst.msk [vmem:[#allocation2 + $0x70] sm:$0xff] %vm1267_vm8, %v3184_v47 }
 0x564   : > { %3264 = vst.msk [vmem:[#allocation2 + $0x68] sm:$0xff] %vm1267_vm8, %v3182_v30  ;;  %3201 = vrot.lane.b32.xlu1 %v7118_v3, %s4555_s16  ;;  %v7246_v30 = vsel %vm658_vm3, %v2749_v39, %v2751_v0 }
 0x565   : > { %3199 = vrot.lane.b32.xlu0 %v7121_v48, %s4555_s16 }
 0x566   : > { %v3310_v42 = vpop.permute.xlu1 %3309 }
 0x567   : > { %v3186_v16 = vpop.permute.xlu0 %3185  ;;  %3393 = vst.msk [vmem:[#allocation2 + $0x60] sm:$0xff] %vm1398_vm9, %v3310_v42 }
 0x568   : > { %3266 = vst.msk [vmem:[#allocation2 + $0x78] sm:$0xff] %vm1267_vm8, %v3186_v16  ;;  %3327 = vrot.lane.b32.xlu1 %v6519_v36, %s4556_s21  ;;  %v2536_v36 = vrot.slane %v6527_v32, 1 }
 0x569   : > { %3325 = vrot.lane.b32.xlu0 %v6521_v45, %s4556_s21  ;;  %v2538_v45 = vrot.slane %v2377_v18, 1  ;;  %v2383_v18 = vld [vmem:[#allocation3 + $0x178] sm:$0x3] }
 0x56a   : > { %v3314_v35 = vpop.permute.xlu1 %3313  ;;  %v7153_v51 = vsel %vm448_vm2, %v2535_v41, %v2536_v36 }
 0x56b   : > { %v3312_v40 = vpop.permute.xlu0 %3311  ;;  %3395 = vst.msk [vmem:[#allocation2 + $0x70] sm:$0xff] %vm1398_vm9, %v3314_v35  ;;  %v7150_v58 = vsel %vm448_vm2, %v2536_v36, %v2538_v45  ;;  %v2548_v45 = vrot.slane %v2383_v18, 1 }
 0x56c   : > { %3394 = vst.msk [vmem:[#allocation2 + $0x68] sm:$0xff] %vm1398_vm9, %v3312_v40  ;;  %3331 = vrot.lane.b32.xlu1 %v6527_v32, %s4556_s21  ;;  %v7938_v40 = vld [vmem:[#allocation11_spill] sm:$0xff] }
 0x56d   : > { %3329 = vrot.lane.b32.xlu0 %v7935_v53, %s4556_s21  ;;  %v2546_v36 = vrot.slane %v7938_v40, 1 }
 0x56e   : > { %v3444_v55 = vpop.permute.xlu1 %3443 }
 0x56f   : > { %v3316_v49 = vpop.permute.xlu0 %3315  ;;  %3527 = vst.msk [vmem:[#allocation2 + $0x60] sm:$0xff] %vm1533_vm10, %v3444_v55 }
 0x570   : > { %3396 = vst.msk [vmem:[#allocation2 + $0x78] sm:$0xff] %vm1398_vm9, %v3316_v49  ;;  %3461 = vrot.lane.b32.xlu1 %v7099_v10, %s4557_s28 }
 0x571   : > { %3459 = vrot.lane.b32.xlu0 %v7102_v29, %s4557_s28 }
 0x572   : > { %v3448_v54 = vpop.permute.xlu1 %3447 }
 0x573   : > { %v3446_v14 = vpop.permute.xlu0 %3445  ;;  %3529 = vst.msk [vmem:[#allocation2 + $0x70] sm:$0xff] %vm1533_vm10, %v3448_v54 }
 0x574   : > { %3528 = vst.msk [vmem:[#allocation2 + $0x68] sm:$0xff] %vm1533_vm10, %v3446_v14  ;;  %3465 = vrot.lane.b32.xlu1 %v7150_v58, %s4557_s28 }
 0x575   : > { %3463 = vrot.lane.b32.xlu0 %v7153_v51, %s4557_s28 }
 0x576   : > { %v3577_v27 = vpop.permute.xlu1 %3576 }
 0x577   : > { %v3450_v13 = vpop.permute.xlu0 %3449  ;;  %3660 = vst.msk [vmem:[#allocation2 + $0x60] sm:$0xff] %vm1667_vm11, %v3577_v27 }
 0x578   : > { %3530 = vst.msk [vmem:[#allocation2 + $0x78] sm:$0xff] %vm1533_vm10, %v3450_v13  ;;  %3594 = vrot.lane.b32.xlu1 %v7118_v3, %s4558_s15 }
 0x579   : > { %3592 = vrot.lane.b32.xlu0 %v7121_v48, %s4558_s15 }
 0x57a   : > { %v3581_v44 = vpop.permute.xlu1 %3580 }
 0x57b   : > { %v3579_v52 = vpop.permute.xlu0 %3578  ;;  %3662 = vst.msk [vmem:[#allocation2 + $0x70] sm:$0xff] %vm1667_vm11, %v3581_v44 }
 0x57c   : > { %3661 = vst.msk [vmem:[#allocation2 + $0x68] sm:$0xff] %vm1667_vm11, %v3579_v52  ;;  %2600 = vrot.lane.b32.xlu1 %v7099_v10, %s4551_s8 }
 0x57d   : > { %2598 = vrot.lane.b32.xlu0 %v7102_v29, %s4551_s8 }
 0x57e   : > { %v2791_v2 = vpop.permute.xlu1 %2790  ;;  %v3692_v50 = vld [vmem:[#allocation2 + $0x60] sm:$0xff] }
 0x57f   : > { %v3583_v46 = vpop.permute.xlu0 %3582  ;;  %2870 = vst.msk [vmem:[#allocation2 + $0x80] sm:$0xff] %vm835_vm5, %v2791_v2 }
 0x580   : > { %3663 = vst.msk [vmem:[#allocation2 + $0x78] sm:$0xff] %vm1667_vm11, %v3583_v46  ;;  %3598 = vrot.lane.b32.xlu1 %v7176_v59, %s4558_s15 }
 0x581   : > { %3596 = vrot.lane.b32.xlu0 %v7179_v7, %s4558_s15 }
 0x582   : > { %v2795_v43 = vpop.permute.xlu1 %2794  ;;  %v3694_v20 = vld [vmem:[#allocation2 + $0x70] sm:$0xff] }
 0x583   : > { %v2793_v21 = vpop.permute.xlu0 %2792  ;;  %v3693_v62 = vld [vmem:[#allocation2 + $0x68] sm:$0xff]  ;;  %2872 = vst.msk [vmem:[#allocation2 + $0x90] sm:$0xff] %vm835_vm5, %v2795_v43  ;;  %v2756_v43 = vrot.slane %v2383_v18, 2 }
 0x584   : > { %2871 = vst.msk [vmem:[#allocation2 + $0x88] sm:$0xff] %vm835_vm5, %v2793_v21  ;;  %v3718_v61 = vpack.c.bf16 %v3693_v62, %v3692_v50  ;;  %2604 = vrot.lane.b32.xlu1 %v7150_v58, %s4551_s8  ;;  %v2754_v62 = vrot.slane %v7938_v40, 2 }
 0x585   : > { %2602 = vrot.lane.b32.xlu0 %v7153_v51, %s4551_s8 }
 0x586   : > { %4479 = vmatprep.mubr.bf16.mxu1 %v3718_v61  ;;  %v2921_v26 = vpop.permute.xlu1 %2920 }
 0x587   : > { %v2797_v60 = vpop.permute.xlu0 %2796  ;;  %v3695_v25 = vld [vmem:[#allocation2 + $0x78] sm:$0xff]  ;;  %3000 = vst.msk [vmem:[#allocation2 + $0x80] sm:$0xff] %vm966_vm6, %v2921_v26 }
 0x588   : > { %2873 = vst.msk [vmem:[#allocation2 + $0x98] sm:$0xff] %vm835_vm5, %v2797_v60  ;;  %v3719_v23 = vpack.c.bf16 %v3695_v25, %v3694_v20  ;;  %2808 = vrot.lane.b32.xlu1 %v7118_v3, %s4552_s9  ;;  %v7249_v3 = vsel %vm658_vm3, %v2748_v57, %v2749_v39 }
 0x589   : > { %2806 = vrot.lane.b32.xlu0 %v7121_v48, %s4552_s9 }
 0x58a   : > { %4480 = vmatmul.mubr.bf16.gmra.mrb[12].mxu1 %v3719_v23  ;;  %v2925_v9 = vpop.permute.xlu1 %2924 }
 0x58b   : > { %v2923_v6 = vpop.permute.xlu0 %2922  ;;  %3002 = vst.msk [vmem:[#allocation2 + $0x90] sm:$0xff] %vm966_vm6, %v2925_v9  ;;  %v2757_v9 = vsel %vm658_vm3, %v2754_v62, %v2756_v43 }
 0x58c   : > { %3001 = vst.msk [vmem:[#allocation2 + $0x88] sm:$0xff] %vm966_vm6, %v2923_v6  ;;  %2812 = vrot.lane.b32.xlu1 %v7176_v59, %s4552_s9 }
 0x58d   : > { %2810 = vrot.lane.b32.xlu0 %v7179_v7, %s4552_s9 }
 0x58e   : > { %v3055_v19 = vpop.permute.xlu1 %3054 }
 0x58f   : > { %v2927_v5 = vpop.permute.xlu0 %2926  ;;  %3134 = vst.msk [vmem:[#allocation2 + $0x80] sm:$0xff] %vm1133_vm7, %v3055_v19 }
 0x590   : > { %3003 = vst.msk [vmem:[#allocation2 + $0x98] sm:$0xff] %vm966_vm6, %v2927_v5  ;;  %2938 = vrot.lane.b32.xlu1 %v6527_v32, %s4553_s10  ;;  %v2541_v32 = vrot.slane %v7936_v17, 1 }
 0x591   : > { %2936 = vrot.lane.b32.xlu0 %v7935_v53, %s4553_s10  ;;  %v7939_v53 = vld [vmem:[#allocation33_spill] sm:$0xff] }
 0x592   : > { %v3059_v4 = vpop.permute.xlu1 %3058  ;;  %v7226_v56 = vsel %vm448_vm2, %v2541_v32, %v2543_v11  ;;  %v7229_v10 = vsel %vm448_vm2, %v2540_v28, %v2541_v32  ;;  %v2545_v41 = vrot.slane %v7939_v53, 1  ;;  %v2753_v61 = vrot.slane %v7939_v53, 2  ;;  %v2385_v28 = vld [vmem:[#allocation3 + $0x188] sm:$0xff] }
 0x593   : > { %v3057_v1 = vpop.permute.xlu0 %3056  ;;  %3136 = vst.msk [vmem:[#allocation2 + $0x90] sm:$0xff] %vm1133_vm7, %v3059_v4 }
 0x594   : > { %3135 = vst.msk [vmem:[#allocation2 + $0x88] sm:$0xff] %vm1133_vm7, %v3057_v1  ;;  %2942 = vrot.lane.b32.xlu1 %v7936_v17, %s4553_s10  ;;  %v2755_v6 = vsel %vm658_vm3, %v2753_v61, %v2754_v62 }
 0x595   : > { %2940 = vrot.lane.b32.xlu0 %v7937_v34, %s4553_s10 }
 0x596   : > { %v3188_v24 = vpop.permute.xlu1 %3187 }
 0x597   : > { %v3061_v12 = vpop.permute.xlu0 %3060  ;;  %3267 = vst.msk [vmem:[#allocation2 + $0x80] sm:$0xff] %vm1267_vm8, %v3188_v24 }
 0x598   : > { %3137 = vst.msk [vmem:[#allocation2 + $0x98] sm:$0xff] %vm1133_vm7, %v3061_v12  ;;  %3072 = vrot.lane.b32.xlu1 %v7150_v58, %s4554_s11  ;;  %v7278_v58 = vsel %vm448_vm2, %v2546_v36, %v2548_v45  ;;  %v2387_v45 = vld [vmem:[#allocation3 + $0x198] sm:$0xff] }
 0x599   : > { %3070 = vrot.lane.b32.xlu0 %v7153_v51, %s4554_s11  ;;  %v7281_v51 = vsel %vm448_vm2, %v2545_v41, %v2546_v36  ;;  %v2388_v36 = vld [vmem:[#allocation3 + $0x1a0] sm:$0xff] }
 0x59a   : > { %v3192_v15 = vpop.permute.xlu1 %3191 }
 0x59b   : > { %v3190_v37 = vpop.permute.xlu0 %3189  ;;  %3269 = vst.msk [vmem:[#allocation2 + $0x90] sm:$0xff] %vm1267_vm8, %v3192_v15  ;;  %v2384_v15 = vld [vmem:[#allocation3 + $0x180] sm:$0xff] }
 0x59c   : > { %3268 = vst.msk [vmem:[#allocation2 + $0x88] sm:$0xff] %vm1267_vm8, %v3190_v37  ;;  %3076 = vrot.lane.b32.xlu1 %v7226_v56, %s4554_s11  ;;  %v2386_v37 = vld [vmem:[#allocation3 + $0x190] sm:$0x3] }
 0x59d   : > { %3074 = vrot.lane.b32.xlu0 %v7229_v10, %s4554_s11  ;;  %v3020_v39 = vrot.slane %v2386_v37, 1 }
 0x59e   : > { %v3318_v29 = vpop.permute.xlu1 %3317 }
 0x59f   : > { %v3194_v63 = vpop.permute.xlu0 %3193  ;;  %3397 = vst.msk [vmem:[#allocation2 + $0x80] sm:$0xff] %vm1398_vm9, %v3318_v29  ;;  %v3018_v29 = vrot.slane %v2385_v28, 1 }
 0x5a0   : > { %3270 = vst.msk [vmem:[#allocation2 + $0x98] sm:$0xff] %vm1267_vm8, %v3194_v63  ;;  %3205 = vrot.lane.b32.xlu1 %v7176_v59, %s4555_s16  ;;  %v3017_v63 = vrot.slane %v2384_v15, 1 }
 0x5a1   : > { %3203 = vrot.lane.b32.xlu0 %v7179_v7, %s4555_s16 }
 0x5a2   : > { %v3322_v22 = vpop.permute.xlu1 %3321 }
 0x5a3   : > { %v3320_v47 = vpop.permute.xlu0 %3319  ;;  %3399 = vst.msk [vmem:[#allocation2 + $0x90] sm:$0xff] %vm1398_vm9, %v3322_v22  ;;  %v3021_v22 = vsel %vm448_vm2, %v3018_v29, %v3020_v39 }
 0x5a4   : > { %3398 = vst.msk [vmem:[#allocation2 + $0x88] sm:$0xff] %vm1398_vm9, %v3320_v47  ;;  %3209 = vrot.lane.b32.xlu1 %v7246_v30, %s4555_s16  ;;  %v3019_v47 = vsel %vm448_vm2, %v3017_v63, %v3018_v29 }
 0x5a5   : > { %3207 = vrot.lane.b32.xlu0 %v7249_v3, %s4555_s16 }
 0x5a6   : > { %v3452_v48 = vpop.permute.xlu1 %3451 }
 0x5a7   : > { %v3324_v42 = vpop.permute.xlu0 %3323  ;;  %3531 = vst.msk [vmem:[#allocation2 + $0x80] sm:$0xff] %vm1533_vm10, %v3452_v48  ;;  %v3151_v48 = vrot.slane %v2385_v28, 2 }
 0x5a8   : > { %3400 = vst.msk [vmem:[#allocation2 + $0x98] sm:$0xff] %vm1398_vm9, %v3324_v42  ;;  %3335 = vrot.lane.b32.xlu1 %v7936_v17, %s4556_s21  ;;  %v3150_v42 = vrot.slane %v2384_v15, 2 }
 0x5a9   : > { %3333 = vrot.lane.b32.xlu0 %v7937_v34, %s4556_s21 }
 0x5aa   : > { %v3456_v16 = vpop.permute.xlu1 %3455  ;;  %v3152_v18 = vsel %vm658_vm3, %v3150_v42, %v3151_v48 }
 0x5ab   : > { %v3454_v35 = vpop.permute.xlu0 %3453  ;;  %3533 = vst.msk [vmem:[#allocation2 + $0x90] sm:$0xff] %vm1533_vm10, %v3456_v16  ;;  %v3153_v16 = vrot.slane %v2386_v37, 2 }
 0x5ac   : > { %3532 = vst.msk [vmem:[#allocation2 + $0x88] sm:$0xff] %vm1533_vm10, %v3454_v35  ;;  %3339 = vrot.lane.b32.xlu1 %v7938_v40, %s4556_s21 }
 0x5ad   : > { %3337 = vrot.lane.b32.xlu0 %v7939_v53, %s4556_s21 }
 0x5ae   : > { %v3585_v55 = vpop.permute.xlu1 %3584 }
 0x5af   : > { %v3458_v49 = vpop.permute.xlu0 %3457  ;;  %3664 = vst.msk [vmem:[#allocation2 + $0x80] sm:$0xff] %vm1667_vm11, %v3585_v55 }
 0x5b0   : > { %3534 = vst.msk [vmem:[#allocation2 + $0x98] sm:$0xff] %vm1533_vm10, %v3458_v49  ;;  %3469 = vrot.lane.b32.xlu1 %v7226_v56, %s4557_s28 }
 0x5b1   : > { %3467 = vrot.lane.b32.xlu0 %v7229_v10, %s4557_s28 }
 0x5b2   : > { %v3589_v54 = vpop.permute.xlu1 %3588 }
 0x5b3   : > { %v3587_v14 = vpop.permute.xlu0 %3586  ;;  %3666 = vst.msk [vmem:[#allocation2 + $0x90] sm:$0xff] %vm1667_vm11, %v3589_v54 }
 0x5b4   : > { %3665 = vst.msk [vmem:[#allocation2 + $0x88] sm:$0xff] %vm1667_vm11, %v3587_v14  ;;  %3473 = vrot.lane.b32.xlu1 %v7278_v58, %s4557_s28  ;;  %v2389_v14 = vld [vmem:[#allocation3 + $0x1a8] sm:$0x3] }
 0x5b5   : > { %3471 = vrot.lane.b32.xlu0 %v7281_v51, %s4557_s28  ;;  %v7287_v27 = vpop.f32.mrb[0].mxu1 }
 0x5b6   : > { %v7289_v13 = vpop.f32.mrb[1].mxu1  ;;  %v2597_v44 = vpop.permute.xlu1 %2596  ;;  %v3696_v59 = vld [vmem:[#allocation2 + $0x80] sm:$0xff] }
 0x5b7   : > { %v3591_v52 = vpop.permute.xlu0 %3590  ;;  %2669 = vst.msk [vmem:[#allocation2 + $0xb8] sm:$0xff] %vm625_vm4, %v2597_v44  ;;  %v7293_v31 = vpop.f32.mrb[2].mxu1  ;;  %v3414_v44 = vrot.slane %v2387_v45, 1 }
 0x5b8   : > { %3667 = vst.msk [vmem:[#allocation2 + $0x98] sm:$0xff] %vm1667_vm11, %v3591_v52  ;;  %v7295_v38 = vpop.f32.mrb[3].mxu1  ;;  %3602 = vrot.lane.b32.xlu1 %v7246_v30, %s4558_s15 }
 0x5b9   : > { %3600 = vrot.lane.b32.xlu0 %v7249_v3, %s4558_s15  ;;  %v3953_v33 = vadd.f32 %v7295_v38, %v7289_v13 }
 0x5ba   : > { %v2801_v2 = vpop.permute.xlu1 %2800  ;;  %v3698_v25 = vld [vmem:[#allocation2 + $0x90] sm:$0xff] }
 0x5bb   : > { %v2799_v46 = vpop.permute.xlu0 %2798  ;;  %v3697_v7 = vld [vmem:[#allocation2 + $0x88] sm:$0xff]  ;;  %v3954_v21 = vadd.f32 %v7287_v27, %v3953_v33  ;;  %2875 = vst.msk [vmem:[#allocation2 + $0xa8] sm:$0xff] %vm835_vm5, %v2801_v2  ;;  %v3417_v33 = vrot.slane %v2389_v14, 1 }
 0x5bc   : > { %2874 = vst.msk [vmem:[#allocation2 + $0xa0] sm:$0xff] %vm835_vm5, %v2799_v46  ;;  %v3720_v50 = vpack.c.bf16 %v3697_v7, %v3696_v59  ;;  %2608 = vrot.lane.b32.xlu1 %v7226_v56, %s4551_s8 }
 0x5bd   : > { %2606 = vrot.lane.b32.xlu0 %v7229_v10, %s4551_s8  ;;  %v7313_v26 = vadd.f32 %v7293_v31, %v3954_v21 }
 0x5be   : > { %4483 = vmatprep.mubr.bf16.mxu1 %v3720_v50  ;;  %v2805_v60 = vpop.permute.xlu1 %2804 }
 0x5bf   : > { %v2803_v20 = vpop.permute.xlu0 %2802  ;;  %v3699_v23 = vld [vmem:[#allocation2 + $0x98] sm:$0xff]  ;;  %2877 = vst.msk [vmem:[#allocation2 + $0xb8] sm:$0xff] %vm835_vm5, %v2805_v60 }
 0x5c0   : > { %2876 = vst.msk [vmem:[#allocation2 + $0xb0] sm:$0xff] %vm835_vm5, %v2803_v20  ;;  %v3721_v19 = vpack.c.bf16 %v3699_v23, %v3698_v25  ;;  %3606 = vrot.lane.b32.xlu1 %v2757_v9, %s4558_s15 }
 0x5c1   : > { %3604 = vrot.lane.b32.xlu0 %v2755_v6, %s4558_s15 }
 0x5c2   : > { %4484 = vmatmul.mubr.bf16.gmra.mrb[16].mxu1 %v3721_v19  ;;  %v2931_v5 = vpop.permute.xlu1 %2930  ;;  %v3550_v19 = vrot.slane %v2389_v14, 2 }
 0x5c3   : > { %v2929_v4 = vpop.permute.xlu0 %2928  ;;  %3005 = vst.msk [vmem:[#allocation2 + $0xa8] sm:$0xff] %vm966_vm6, %v2931_v5 }
 0x5c4   : > { %3004 = vst.msk [vmem:[#allocation2 + $0xa0] sm:$0xff] %vm966_vm6, %v2929_v4  ;;  %2612 = vrot.lane.b32.xlu1 %v7278_v58, %s4551_s8 }
 0x5c5   : > { %2610 = vrot.lane.b32.xlu0 %v7281_v51, %s4551_s8 }
 0x5c6   : > { %v2935_v1 = vpop.permute.xlu1 %2934 }
 0x5c7   : > { %v2933_v17 = vpop.permute.xlu0 %2932  ;;  %3007 = vst.msk [vmem:[#allocation2 + $0xb8] sm:$0xff] %vm966_vm6, %v2935_v1 }
 0x5c8   : > { %3006 = vst.msk [vmem:[#allocation2 + $0xb0] sm:$0xff] %vm966_vm6, %v2933_v17  ;;  %2816 = vrot.lane.b32.xlu1 %v7246_v30, %s4552_s9 }
 0x5c9   : > { %2814 = vrot.lane.b32.xlu0 %v7249_v3, %s4552_s9 }
 0x5ca   : > { %v3065_v34 = vpop.permute.xlu1 %3064 }
 0x5cb   : > { %v3063_v8 = vpop.permute.xlu0 %3062  ;;  %3139 = vst.msk [vmem:[#allocation2 + $0xa8] sm:$0xff] %vm1133_vm7, %v3065_v34 }
 0x5cc   : > { %3138 = vst.msk [vmem:[#allocation2 + $0xa0] sm:$0xff] %vm1133_vm7, %v3063_v8  ;;  %2820 = vrot.lane.b32.xlu1 %v2757_v9, %s4552_s9 }
 0x5cd   : > { %2818 = vrot.lane.b32.xlu0 %v2755_v6, %s4552_s9 }
 0x5ce   : > { %v3069_v24 = vpop.permute.xlu1 %3068 }
 0x5cf   : > { %v3067_v12 = vpop.permute.xlu0 %3066  ;;  %3141 = vst.msk [vmem:[#allocation2 + $0xb8] sm:$0xff] %vm1133_vm7, %v3069_v24 }
 0x5d0   : > { %3140 = vst.msk [vmem:[#allocation2 + $0xb0] sm:$0xff] %vm1133_vm7, %v3067_v12  ;;  %2946 = vrot.lane.b32.xlu1 %v7938_v40, %s4553_s10 }
 0x5d1   : > { %2944 = vrot.lane.b32.xlu0 %v7939_v53, %s4553_s10  ;;  %v3154_v53 = vsel %vm658_vm3, %v3151_v48, %v3153_v16 }
 0x5d2   : > { %v3198_v32 = vpop.permute.xlu1 %3197 }
 0x5d3   : > { %v3196_v11 = vpop.permute.xlu0 %3195  ;;  %3272 = vst.msk [vmem:[#allocation2 + $0xa8] sm:$0xff] %vm1267_vm8, %v3198_v32 }
 0x5d4   : > { %3271 = vst.msk [vmem:[#allocation2 + $0xa0] sm:$0xff] %vm1267_vm8, %v3196_v11  ;;  %2950 = vrot.lane.b32.xlu1 %v2385_v28, %s4553_s10 }
 0x5d5   : > { %2948 = vrot.lane.b32.xlu0 %v2384_v15, %s4553_s10 }
 0x5d6   : > { %v3202_v56 = vpop.permute.xlu1 %3201 }
 0x5d7   : > { %v3200_v10 = vpop.permute.xlu0 %3199  ;;  %3274 = vst.msk [vmem:[#allocation2 + $0xb8] sm:$0xff] %vm1267_vm8, %v3202_v56 }
 0x5d8   : > { %3273 = vst.msk [vmem:[#allocation2 + $0xb0] sm:$0xff] %vm1267_vm8, %v3200_v10  ;;  %3080 = vrot.lane.b32.xlu1 %v7278_v58, %s4554_s11 }
 0x5d9   : > { %3078 = vrot.lane.b32.xlu0 %v7281_v51, %s4554_s11  ;;  %v3415_v51 = vrot.slane %v2388_v36, 1 }
 0x5da   : > { %v3328_v0 = vpop.permute.xlu1 %3327 }
 0x5db   : > { %v3326_v57 = vpop.permute.xlu0 %3325  ;;  %3402 = vst.msk [vmem:[#allocation2 + $0xa8] sm:$0xff] %vm1398_vm9, %v3328_v0  ;;  %v3418_v50 = vsel %vm448_vm2, %v3415_v51, %v3417_v33  ;;  %v3416_v62 = vsel %vm448_vm2, %v3414_v44, %v3415_v51 }
 0x5dc   : > { %3401 = vst.msk [vmem:[#allocation2 + $0xa0] sm:$0xff] %vm1398_vm9, %v3326_v57  ;;  %3084 = vrot.lane.b32.xlu1 %v3021_v22, %s4554_s11 }
 0x5dd   : > { %3082 = vrot.lane.b32.xlu0 %v3019_v47, %s4554_s11 }
 0x5de   : > { %v3332_v30 = vpop.permute.xlu1 %3331 }
 0x5df   : > { %v3330_v3 = vpop.permute.xlu0 %3329  ;;  %3404 = vst.msk [vmem:[#allocation2 + $0xb8] sm:$0xff] %vm1398_vm9, %v3332_v30 }
 0x5e0   : > { %3403 = vst.msk [vmem:[#allocation2 + $0xb0] sm:$0xff] %vm1398_vm9, %v3330_v3  ;;  %3213 = vrot.lane.b32.xlu1 %v2757_v9, %s4555_s16  ;;  %v3548_v9 = vrot.slane %v2388_v36, 2 }
 0x5e1   : > { %3211 = vrot.lane.b32.xlu0 %v2755_v6, %s4555_s16  ;;  %v3547_v6 = vrot.slane %v2387_v45, 2 }
 0x5e2   : > { %v3462_v35 = vpop.permute.xlu1 %3461  ;;  %v3551_v17 = vsel %vm658_vm3, %v3548_v9, %v3550_v19 }
 0x5e3   : > { %v3460_v40 = vpop.permute.xlu0 %3459  ;;  %3536 = vst.msk [vmem:[#allocation2 + $0xa8] sm:$0xff] %vm1533_vm10, %v3462_v35  ;;  %v3549_v34 = vsel %vm658_vm3, %v3547_v6, %v3548_v9 }
 0x5e4   : > { %3535 = vst.msk [vmem:[#allocation2 + $0xa0] sm:$0xff] %vm1533_vm10, %v3460_v40  ;;  %3217 = vrot.lane.b32.xlu1 %v3154_v53, %s4555_s16 }
 0x5e5   : > { %3215 = vrot.lane.b32.xlu0 %v3152_v18, %s4555_s16  ;;  %s4354_s16 = sshll.u32 %s7973_s25, 8 }
 0x5e6   : > { %v3466_v55 = vpop.permute.xlu1 %3465 }
 0x5e7   : > { %v3464_v49 = vpop.permute.xlu0 %3463  ;;  %3538 = vst.msk [vmem:[#allocation2 + $0xb8] sm:$0xff] %vm1533_vm10, %v3466_v55 }
 0x5e8   : > { %3537 = vst.msk [vmem:[#allocation2 + $0xb0] sm:$0xff] %vm1533_vm10, %v3464_v49  ;;  %3343 = vrot.lane.b32.xlu1 %v2385_v28, %s4556_s21 }
 0x5e9   : > { %3341 = vrot.lane.b32.xlu0 %v2384_v15, %s4556_s21 }
 0x5ea   : > { %v3595_v41 = vpop.permute.xlu1 %3594 }
 0x5eb   : > { %v3593_v54 = vpop.permute.xlu0 %3592  ;;  %3669 = vst.msk [vmem:[#allocation2 + $0xa8] sm:$0xff] %vm1667_vm11, %v3595_v41 }
 0x5ec   : > { %3668 = vst.msk [vmem:[#allocation2 + $0xa0] sm:$0xff] %vm1667_vm11, %v3593_v54  ;;  %3347 = vrot.lane.b32.xlu1 %v2388_v36, %s4556_s21 }
 0x5ed   : > { %3345 = vrot.lane.b32.xlu0 %v2387_v45, %s4556_s21  ;;  %v7377_v58 = vpop.f32.mrb[4].mxu1 }
 0x5ee   : > { %v7379_v52 = vpop.f32.mrb[5].mxu1  ;;  %v2601_v46 = vpop.permute.xlu1 %2600 }
 0x5ef   : > { %v3956_v2 = vadd.f32 %v7313_v26, %v7379_v52  ;;  %v2599_v59 = vpop.permute.xlu0 %2598  ;;  %2671 = vst.msk [vmem:[#allocation2 + $0xc8] sm:$0xff] %vm625_vm4, %v2601_v46  ;;  %v7385_v7 = vpop.f32.mrb[6].mxu1 }
 0x5f0   : > { %2670 = vst.msk [vmem:[#allocation2 + $0xc0] sm:$0xff] %vm625_vm4, %v2599_v59  ;;  %v7387_v43 = vpop.f32.mrb[7].mxu1  ;;  %3477 = vrot.lane.b32.xlu1 %v3021_v22, %s4557_s28 }
 0x5f1   : > { %3475 = vrot.lane.b32.xlu0 %v3019_v47, %s4557_s28  ;;  %v3957_v21 = vadd.f32 %v3956_v2, %v7387_v43 }
 0x5f2   : > { %v3599_v61 = vpop.permute.xlu1 %3598  ;;  %v3701_v20 = vld [vmem:[#allocation2 + $0xa8] sm:$0xff] }
 0x5f3   : > { %v3597_v26 = vpop.permute.xlu0 %3596  ;;  %v3700_v60 = vld [vmem:[#allocation2 + $0xa0] sm:$0xff]  ;;  %v3958_v25 = vadd.f32 %v7377_v58, %v3957_v21  ;;  %3671 = vst.msk [vmem:[#allocation2 + $0xb8] sm:$0xff] %vm1667_vm11, %v3599_v61 }
 0x5f4   : > { %3670 = vst.msk [vmem:[#allocation2 + $0xb0] sm:$0xff] %vm1667_vm11, %v3597_v26  ;;  %v3722_v23 = vpack.c.bf16 %v3701_v20, %v3700_v60  ;;  %3481 = vrot.lane.b32.xlu1 %v3418_v50, %s4557_s28 }
 0x5f5   : > { %3479 = vrot.lane.b32.xlu0 %v3416_v62, %s4557_s28  ;;  %v3959_v5 = vadd.f32 %v7385_v7, %v3958_v25 }
 0x5f6   : > { %4487 = vmatprep.mubr.bf16.mxu1 %v3722_v23  ;;  %v2605_v4 = vpop.permute.xlu1 %2604 }
 0x5f7   : > { %v2603_v1 = vpop.permute.xlu0 %2602  ;;  %2673 = vst.msk [vmem:[#allocation2 + $0xd8] sm:$0xff] %vm625_vm4, %v2605_v4 }
 0x5f8   : > { %2672 = vst.msk [vmem:[#allocation2 + $0xd0] sm:$0xff] %vm625_vm4, %v2603_v1  ;;  %3610 = vrot.lane.b32.xlu1 %v3154_v53, %s4558_s15 }
 0x5f9   : > { %3608 = vrot.lane.b32.xlu0 %v3152_v18, %s4558_s15 }
 0x5fa   : > { %v2809_v8 = vpop.permute.xlu1 %2808  ;;  %v3703_v32 = vld [vmem:[#allocation2 + $0xb8] sm:$0xff] }
 0x5fb   : > { %v2807_v24 = vpop.permute.xlu0 %2806  ;;  %v3702_v12 = vld [vmem:[#allocation2 + $0xb0] sm:$0xff]  ;;  %2879 = vst.msk [vmem:[#allocation2 + $0xc8] sm:$0xff] %vm835_vm5, %v2809_v8 }
 0x5fc   : > { %2878 = vst.msk [vmem:[#allocation2 + $0xc0] sm:$0xff] %vm835_vm5, %v2807_v24  ;;  %v3723_v11 = vpack.c.bf16 %v3703_v32, %v3702_v12  ;;  %3614 = vrot.lane.b32.xlu1 %v3551_v17, %s4558_s15 }
 0x5fd   : > { %3612 = vrot.lane.b32.xlu0 %v3549_v34, %s4558_s15  ;;  %s7678_s15 = scalar_lea.vmem %s7786_s7, %s4354_s16 }
 0x5fe   : > { %4488 = vmatmul.mubr.bf16.gmra.mrb[20].mxu1 %v3723_v11  ;;  %v2813_v28 = vpop.permute.xlu1 %2812 }
 0x5ff   : > { %v2811_v15 = vpop.permute.xlu0 %2810  ;;  %2881 = vst.msk [vmem:[#allocation2 + $0xd8] sm:$0xff] %vm835_vm5, %v2813_v28 }
 0x600   : > { %2880 = vst.msk [vmem:[#allocation2 + $0xd0] sm:$0xff] %vm835_vm5, %v2811_v15 }
 0x602   : > { %v2939_v37 = vpop.permute.xlu1 %2938 }
 0x603   : > { %v2937_v56 = vpop.permute.xlu0 %2936  ;;  %3009 = vst.msk [vmem:[#allocation2 + $0xc8] sm:$0xff] %vm966_vm6, %v2939_v37 }
 0x604   : > { %3008 = vst.msk [vmem:[#allocation2 + $0xc0] sm:$0xff] %vm966_vm6, %v2937_v56 }
 0x606   : > { %v2943_v10 = vpop.permute.xlu1 %2942 }
 0x607   : > { %v2941_v29 = vpop.permute.xlu0 %2940  ;;  %3011 = vst.msk [vmem:[#allocation2 + $0xd8] sm:$0xff] %vm966_vm6, %v2943_v10 }
 0x608   : > { %3010 = vst.msk [vmem:[#allocation2 + $0xd0] sm:$0xff] %vm966_vm6, %v2941_v29 }
 0x60a   : > { %v3073_v63 = vpop.permute.xlu1 %3072 }
 0x60b   : > { %v3071_v39 = vpop.permute.xlu0 %3070  ;;  %3143 = vst.msk [vmem:[#allocation2 + $0xc8] sm:$0xff] %vm1133_vm7, %v3073_v63 }
 0x60c   : > { %3142 = vst.msk [vmem:[#allocation2 + $0xc0] sm:$0xff] %vm1133_vm7, %v3071_v39 }
 0x60e   : > { %v3077_v0 = vpop.permute.xlu1 %3076 }
 0x60f   : > { %v3075_v57 = vpop.permute.xlu0 %3074  ;;  %3145 = vst.msk [vmem:[#allocation2 + $0xd8] sm:$0xff] %vm1133_vm7, %v3077_v0 }
 0x610   : > { %3144 = vst.msk [vmem:[#allocation2 + $0xd0] sm:$0xff] %vm1133_vm7, %v3075_v57 }
 0x612   : > { %v3206_v22 = vpop.permute.xlu1 %3205 }
 0x613   : > { %v3204_v47 = vpop.permute.xlu0 %3203  ;;  %3276 = vst.msk [vmem:[#allocation2 + $0xc8] sm:$0xff] %vm1267_vm8, %v3206_v22 }
 0x614   : > { %3275 = vst.msk [vmem:[#allocation2 + $0xc0] sm:$0xff] %vm1267_vm8, %v3204_v47 }
 0x616   : > { %v3210_v30 = vpop.permute.xlu1 %3209 }
 0x617   : > { %v3208_v3 = vpop.permute.xlu0 %3207  ;;  %3278 = vst.msk [vmem:[#allocation2 + $0xd8] sm:$0xff] %vm1267_vm8, %v3210_v30 }
 0x618   : > { %3277 = vst.msk [vmem:[#allocation2 + $0xd0] sm:$0xff] %vm1267_vm8, %v3208_v3 }
 0x61a   : > { %v3336_v48 = vpop.permute.xlu1 %3335 }
 0x61b   : > { %v3334_v42 = vpop.permute.xlu0 %3333  ;;  %3406 = vst.msk [vmem:[#allocation2 + $0xc8] sm:$0xff] %vm1398_vm9, %v3336_v48 }
 0x61c   : > { %3405 = vst.msk [vmem:[#allocation2 + $0xc0] sm:$0xff] %vm1398_vm9, %v3334_v42 }
 0x61e   : > { %v3340_v16 = vpop.permute.xlu1 %3339 }
 0x61f   : > { %v3338_v35 = vpop.permute.xlu0 %3337  ;;  %3408 = vst.msk [vmem:[#allocation2 + $0xd8] sm:$0xff] %vm1398_vm9, %v3340_v16 }
 0x620   : > { %3407 = vst.msk [vmem:[#allocation2 + $0xd0] sm:$0xff] %vm1398_vm9, %v3338_v35 }
 0x622   : > { %v3470_v40 = vpop.permute.xlu1 %3469 }
 0x623   : > { %v3468_v53 = vpop.permute.xlu0 %3467  ;;  %3540 = vst.msk [vmem:[#allocation2 + $0xc8] sm:$0xff] %vm1533_vm10, %v3470_v40 }
 0x624   : > { %3539 = vst.msk [vmem:[#allocation2 + $0xc0] sm:$0xff] %vm1533_vm10, %v3468_v53 }
 0x625   : > { %v7430_v18 = vpop.f32.mrb[8].mxu1 }
 0x626   : > { %v7432_v55 = vpop.f32.mrb[9].mxu1  ;;  %v3474_v36 = vpop.permute.xlu1 %3473 }
 0x627   : > { %v3960_v49 = vadd.f32 %v3959_v5, %v7432_v55  ;;  %v3472_v45 = vpop.permute.xlu0 %3471  ;;  %3542 = vst.msk [vmem:[#allocation2 + $0xd8] sm:$0xff] %vm1533_vm10, %v3474_v36  ;;  %v7437_v41 = vpop.f32.mrb[10].mxu1 }
 0x628   : > { %3541 = vst.msk [vmem:[#allocation2 + $0xd0] sm:$0xff] %vm1533_vm10, %v3472_v45  ;;  %v7439_v54 = vpop.f32.mrb[11].mxu1 }
 0x629   : > { %v3961_v14 = vadd.f32 %v3960_v49, %v7439_v54 }
 0x62a   : > { %v3603_v51 = vpop.permute.xlu1 %3602 }
 0x62b   : > { %v3601_v44 = vpop.permute.xlu0 %3600  ;;  %v3962_v33 = vadd.f32 %v7430_v18, %v3961_v14  ;;  %3673 = vst.msk [vmem:[#allocation2 + $0xc8] sm:$0xff] %vm1667_vm11, %v3603_v51 }
 0x62c   : > { %3672 = vst.msk [vmem:[#allocation2 + $0xc0] sm:$0xff] %vm1667_vm11, %v3601_v44 }
 0x62d   : > { %v3963_v2 = vadd.f32 %v7437_v41, %v3962_v33 }
 0x62e   : > { %v2609_v46 = vpop.permute.xlu1 %2608 }
 0x62f   : > { %v2607_v59 = vpop.permute.xlu0 %2606  ;;  %2675 = vst.msk [vmem:[#allocation2 + $0xe8] sm:$0xff] %vm625_vm4, %v2609_v46 }
 0x630   : > { %2674 = vst.msk [vmem:[#allocation2 + $0xe0] sm:$0xff] %vm625_vm4, %v2607_v59 }
 0x632   : > { %v3607_v21 = vpop.permute.xlu1 %3606  ;;  %v3705_v61 = vld [vmem:[#allocation2 + $0xc8] sm:$0xff] }
 0x633   : > { %v3605_v50 = vpop.permute.xlu0 %3604  ;;  %v3704_v62 = vld [vmem:[#allocation2 + $0xc0] sm:$0xff]  ;;  %3675 = vst.msk [vmem:[#allocation2 + $0xd8] sm:$0xff] %vm1667_vm11, %v3607_v21 }
 0x634   : > { %3674 = vst.msk [vmem:[#allocation2 + $0xd0] sm:$0xff] %vm1667_vm11, %v3605_v50  ;;  %v3724_v26 = vpack.c.bf16 %v3705_v61, %v3704_v62 }
 0x636   : > { %4491 = vmatprep.mubr.bf16.mxu1 %v3724_v26  ;;  %v2613_v60 = vpop.permute.xlu1 %2612 }
 0x637   : > { %v2611_v20 = vpop.permute.xlu0 %2610  ;;  %2677 = vst.msk [vmem:[#allocation2 + $0xf8] sm:$0xff] %vm625_vm4, %v2613_v60 }
 0x638   : > { %2676 = vst.msk [vmem:[#allocation2 + $0xf0] sm:$0xff] %vm625_vm4, %v2611_v20 }
 0x63a   : > { %v2817_v25 = vpop.permute.xlu1 %2816  ;;  %v3707_v6 = vld [vmem:[#allocation2 + $0xd8] sm:$0xff] }
 0x63b   : > { %v2815_v23 = vpop.permute.xlu0 %2814  ;;  %v3706_v9 = vld [vmem:[#allocation2 + $0xd0] sm:$0xff]  ;;  %2883 = vst.msk [vmem:[#allocation2 + $0xe8] sm:$0xff] %vm835_vm5, %v2817_v25 }
 0x63c   : > { %2882 = vst.msk [vmem:[#allocation2 + $0xe0] sm:$0xff] %vm835_vm5, %v2815_v23  ;;  %v3725_v19 = vpack.c.bf16 %v3707_v6, %v3706_v9 }
 0x63e   : > { %4492 = vmatmul.mubr.bf16.gmra.mrb[24].mxu1 %v3725_v19  ;;  %v2821_v5 = vpop.permute.xlu1 %2820 }
 0x63f   : > { %v2819_v4 = vpop.permute.xlu0 %2818  ;;  %2885 = vst.msk [vmem:[#allocation2 + $0xf8] sm:$0xff] %vm835_vm5, %v2821_v5 }
 0x640   : > { %2884 = vst.msk [vmem:[#allocation2 + $0xf0] sm:$0xff] %vm835_vm5, %v2819_v4 }
 0x642   : > { %v2947_v1 = vpop.permute.xlu1 %2946 }
 0x643   : > { %v2945_v17 = vpop.permute.xlu0 %2944  ;;  %3013 = vst.msk [vmem:[#allocation2 + $0xe8] sm:$0xff] %vm966_vm6, %v2947_v1 }
 0x644   : > { %3012 = vst.msk [vmem:[#allocation2 + $0xe0] sm:$0xff] %vm966_vm6, %v2945_v17 }
 0x646   : > { %v2951_v34 = vpop.permute.xlu1 %2950 }
 0x647   : > { %v2949_v8 = vpop.permute.xlu0 %2948  ;;  %3015 = vst.msk [vmem:[#allocation2 + $0xf8] sm:$0xff] %vm966_vm6, %v2951_v34 }
 0x648   : > { %3014 = vst.msk [vmem:[#allocation2 + $0xf0] sm:$0xff] %vm966_vm6, %v2949_v8 }
 0x64a   : > { %v3081_v24 = vpop.permute.xlu1 %3080 }
 0x64b   : > { %v3079_v12 = vpop.permute.xlu0 %3078  ;;  %3147 = vst.msk [vmem:[#allocation2 + $0xe8] sm:$0xff] %vm1133_vm7, %v3081_v24 }
 0x64c   : > { %3146 = vst.msk [vmem:[#allocation2 + $0xe0] sm:$0xff] %vm1133_vm7, %v3079_v12 }
 0x64e   : > { %v3085_v32 = vpop.permute.xlu1 %3084 }
 0x64f   : > { %v3083_v11 = vpop.permute.xlu0 %3082  ;;  %3149 = vst.msk [vmem:[#allocation2 + $0xf8] sm:$0xff] %vm1133_vm7, %v3085_v32 }
 0x650   : > { %3148 = vst.msk [vmem:[#allocation2 + $0xf0] sm:$0xff] %vm1133_vm7, %v3083_v11 }
 0x652   : > { %v3214_v28 = vpop.permute.xlu1 %3213 }
 0x653   : > { %v3212_v15 = vpop.permute.xlu0 %3211  ;;  %3280 = vst.msk [vmem:[#allocation2 + $0xe8] sm:$0xff] %vm1267_vm8, %v3214_v28 }
 0x654   : > { %3279 = vst.msk [vmem:[#allocation2 + $0xe0] sm:$0xff] %vm1267_vm8, %v3212_v15 }
 0x656   : > { %v3218_v37 = vpop.permute.xlu1 %3217 }
 0x657   : > { %v3216_v56 = vpop.permute.xlu0 %3215  ;;  %3282 = vst.msk [vmem:[#allocation2 + $0xf8] sm:$0xff] %vm1267_vm8, %v3218_v37 }
 0x658   : > { %3281 = vst.msk [vmem:[#allocation2 + $0xf0] sm:$0xff] %vm1267_vm8, %v3216_v56 }
 0x65a   : > { %v3344_v10 = vpop.permute.xlu1 %3343 }
 0x65b   : > { %v3342_v29 = vpop.permute.xlu0 %3341  ;;  %3410 = vst.msk [vmem:[#allocation2 + $0xe8] sm:$0xff] %vm1398_vm9, %v3344_v10 }
 0x65c   : > { %3409 = vst.msk [vmem:[#allocation2 + $0xe0] sm:$0xff] %vm1398_vm9, %v3342_v29 }
 0x65d   : > { %v7470_v63 = vpop.f32.mrb[12].mxu1 }
 0x65e   : > { %v7472_v39 = vpop.f32.mrb[13].mxu1  ;;  %v3348_v57 = vpop.permute.xlu1 %3347 }
 0x65f   : > { %v3964_v0 = vadd.f32 %v3963_v2, %v7472_v39  ;;  %v3346_v22 = vpop.permute.xlu0 %3345  ;;  %3412 = vst.msk [vmem:[#allocation2 + $0xf8] sm:$0xff] %vm1398_vm9, %v3348_v57  ;;  %v7477_v47 = vpop.f32.mrb[14].mxu1 }
 0x660   : > { %3411 = vst.msk [vmem:[#allocation2 + $0xf0] sm:$0xff] %vm1398_vm9, %v3346_v22  ;;  %v7479_v30 = vpop.f32.mrb[15].mxu1 }
 0x661   : > { %v3965_v3 = vadd.f32 %v3964_v0, %v7479_v30 }
 0x662   : > { %v3478_v48 = vpop.permute.xlu1 %3477 }
 0x663   : > { %v3476_v42 = vpop.permute.xlu0 %3475  ;;  %v3966_v16 = vadd.f32 %v7470_v63, %v3965_v3  ;;  %3544 = vst.msk [vmem:[#allocation2 + $0xe8] sm:$0xff] %vm1533_vm10, %v3478_v48 }
 0x664   : > { %3543 = vst.msk [vmem:[#allocation2 + $0xe0] sm:$0xff] %vm1533_vm10, %v3476_v42 }
 0x665   : > { %v3967_v35 = vadd.f32 %v7477_v47, %v3966_v16 }
 0x666   : > { %v3482_v40 = vpop.permute.xlu1 %3481 }
 0x667   : > { %v3480_v53 = vpop.permute.xlu0 %3479  ;;  %3546 = vst.msk [vmem:[#allocation2 + $0xf8] sm:$0xff] %vm1533_vm10, %v3482_v40 }
 0x668   : > { %3545 = vst.msk [vmem:[#allocation2 + $0xf0] sm:$0xff] %vm1533_vm10, %v3480_v53 }
 0x66a   : > { %v3611_v49 = vpop.permute.xlu1 %3610 }
 0x66b   : > { %v3609_v36 = vpop.permute.xlu0 %3608  ;;  %3677 = vst.msk [vmem:[#allocation2 + $0xe8] sm:$0xff] %vm1667_vm11, %v3611_v49 }
 0x66c   : > { %3676 = vst.msk [vmem:[#allocation2 + $0xe0] sm:$0xff] %vm1667_vm11, %v3609_v36 }
 0x66e   : > { %v3615_v45 = vpop.permute.xlu1 %3614 }
 0x66f   : > { %v3613_v14 = vpop.permute.xlu0 %3612  ;;  %3679 = vst.msk [vmem:[#allocation2 + $0xf8] sm:$0xff] %vm1667_vm11, %v3615_v45 }
 0x670   : > { %3678 = vst.msk [vmem:[#allocation2 + $0xf0] sm:$0xff] %vm1667_vm11, %v3613_v14 }
 0x672   : > { %v3709_v44 = vld [vmem:[#allocation2 + $0xe8] sm:$0xff] }
 0x673   : > { %v3708_v51 = vld [vmem:[#allocation2 + $0xe0] sm:$0xff] }
 0x674   : > { %v3726_v33 = vpack.c.bf16 %v3709_v44, %v3708_v51 }
 0x676   : > { %4495 = vmatprep.mubr.bf16.mxu1 %v3726_v33  ;;  %v3711_v46 = vld [vmem:[#allocation2 + $0xf8] sm:$0xff] }
 0x677   : > { %v3710_v2 = vld [vmem:[#allocation2 + $0xf0] sm:$0xff] }
 0x678   : > { %v3727_v59 = vpack.c.bf16 %v3711_v46, %v3710_v2 }
 0x67a   : > { %4496 = vmatmul.mubr.bf16.gmra.mrb[28].mxu1 %v3727_v59 }
 0x695   : > { %v4485_v21 = vpop.f32.mrb[16].mxu1 }
 0x696   : > { %v3890_v50 = vpop.f32.mrb[17].mxu1 }
 0x697   : > { %v3968_v62 = vadd.f32 %v3967_v35, %v3890_v50  ;;  %v4486_v61 = vpop.f32.mrb[18].mxu1 }
 0x698   : > { %v3893_v26 = vpop.f32.mrb[19].mxu1 }
 0x699   : > { %v3969_v60 = vadd.f32 %v3968_v62, %v3893_v26 }
 0x69b   : > { %v3970_v20 = vadd.f32 %v4485_v21, %v3969_v60 }
 0x69d   : > { %v3971_v25 = vadd.f32 %v4486_v61, %v3970_v20 }
 0x6d1   : > { %v4489_v23 = vpop.f32.mrb[20].mxu1 }
 0x6d2   : > { %v3906_v9 = vpop.f32.mrb[21].mxu1 }
 0x6d3   : > { %v3972_v6 = vadd.f32 %v3971_v25, %v3906_v9  ;;  %v4490_v19 = vpop.f32.mrb[22].mxu1 }
 0x6d4   : > { %v3909_v5 = vpop.f32.mrb[23].mxu1 }
 0x6d5   : > { %v3973_v4 = vadd.f32 %v3972_v6, %v3909_v5 }
 0x6d7   : > { %v3974_v1 = vadd.f32 %v4489_v23, %v3973_v4 }
 0x6d9   : > { %v3975_v17 = vadd.f32 %v4490_v19, %v3974_v1 }
 0x711   : > { %v4493_v34 = vpop.f32.mrb[24].mxu1 }
 0x712   : > { %v3922_v8 = vpop.f32.mrb[25].mxu1 }
 0x713   : > { %v3976_v24 = vadd.f32 %v3975_v17, %v3922_v8  ;;  %v4494_v12 = vpop.f32.mrb[26].mxu1 }
 0x714   : > { %v3925_v32 = vpop.f32.mrb[27].mxu1 }
 0x715   : > { %v3977_v11 = vadd.f32 %v3976_v24, %v3925_v32 }
 0x717   : > { %v3978_v28 = vadd.f32 %v4493_v34, %v3977_v11 }
 0x719   : > { %v3979_v15 = vadd.f32 %v4494_v12, %v3978_v28 }
 0x74d   : > { %v4497_v37 = vpop.f32.mrb[28].mxu1 }
 0x74e   : > { %v3938_v56 = vpop.f32.mrb[29].mxu1 }
 0x74f   : > { %v3980_v10 = vadd.f32 %v3979_v15, %v3938_v56  ;;  %v4498_v29 = vpop.f32.mrb[30].mxu1 }
 0x750   : > { %v3941_v0 = vpop.f32.mrb[31].mxu1 }
 0x751   : > { %v3981_v57 = vadd.f32 %v3980_v10, %v3941_v0 }
 0x753   : > { %v3982_v22 = vadd.f32 %v4497_v37, %v3981_v57 }
 0x755   : > { %v3983_v3 = vadd.f32 %v4498_v29, %v3982_v22 }
 0x757   : > { %v3984_v48 = vrot.slane %v3983_v3, 4 }
 0x759   : > { %v3985_v42 = vadd.f32 %v3984_v48, %v3983_v3 }
 0x75b   : > { %v3986_v16 = vrot.slane %v3985_v42, 2 }
 0x75d   : > { %v3987_v35 = vadd.f32 %v3986_v16, %v3985_v42 }
 0x75f   : > { %v3988_v40 = vrot.slane %v3987_v35, 1 }
 0x761   : > { %v3989_v53 = vadd.f32 %v3988_v40, %v3987_v35 }
 0x763   : > { %v3990_v49 = vmul.f32 0.00390625, %v3989_v53 }
 0x765   : > { %v7493_v36 = vsub.f32 %v7289_v13, %v3990_v49  ;;  %v7496_v45 = vsub.f32 %v7295_v38, %v3990_v49  ;;  %v7499_v14 = vsub.f32 %v7287_v27, %v3990_v49  ;;  %v7502_v51 = vsub.f32 %v7293_v31, %v3990_v49 }
 0x766   : > { %v7505_v44 = vsub.f32 %v7379_v52, %v3990_v49  ;;  %v7508_v33 = vsub.f32 %v7387_v43, %v3990_v49  ;;  %v7511_v2 = vsub.f32 %v7377_v58, %v3990_v49  ;;  %v7514_v13 = vsub.f32 %v7385_v7, %v3990_v49 }
 0x767   : > { %v7517_v38 = vsub.f32 %v7432_v55, %v3990_v49  ;;  %v7520_v27 = vsub.f32 %v7439_v54, %v3990_v49  ;;  %v7523_v31 = vsub.f32 %v7430_v18, %v3990_v49  ;;  %v7526_v52 = vsub.f32 %v7437_v41, %v3990_v49 }
 0x768   : > { %v7529_v43 = vsub.f32 %v7472_v39, %v3990_v49  ;;  %v7532_v58 = vsub.f32 %v7479_v30, %v3990_v49  ;;  %v7535_v7 = vsub.f32 %v7470_v63, %v3990_v49  ;;  %v7538_v55 = vsub.f32 %v7477_v47, %v3990_v49 }
 0x769   : > { %v7540_v54 = vsub.f32 %v3890_v50, %v3990_v49  ;;  %v7542_v46 = vsub.f32 %v3893_v26, %v3990_v49  ;;  %v7544_v18 = vsub.f32 %v4485_v21, %v3990_v49  ;;  %v7546_v41 = vsub.f32 %v4486_v61, %v3990_v49 }
 0x76a   : > { %v7548_v59 = vsub.f32 %v3906_v9, %v3990_v49  ;;  %v7550_v39 = vsub.f32 %v3909_v5, %v3990_v49  ;;  %v7552_v30 = vsub.f32 %v4489_v23, %v3990_v49  ;;  %v7554_v62 = vsub.f32 %v4490_v19, %v3990_v49 }
 0x76b   : > { %v7556_v63 = vsub.f32 %v3922_v8, %v3990_v49  ;;  %v7558_v47 = vsub.f32 %v3925_v32, %v3990_v49  ;;  %v7560_v50 = vsub.f32 %v4493_v34, %v3990_v49  ;;  %v7562_v26 = vsub.f32 %v4494_v12, %v3990_v49 }
 0x76c   : > { %v7564_v21 = vsub.f32 %v3938_v56, %v3990_v49  ;;  %v7566_v61 = vsub.f32 %v3941_v0, %v3990_v49  ;;  %v7568_v60 = vsub.f32 %v4497_v37, %v3990_v49  ;;  %v7570_v20 = vsub.f32 %v4498_v29, %v3990_v49 }
 0x76d   : > { %v4023_v25 = vmul.f32 %v7493_v36, %v7493_v36  ;;  %v4024_v23 = vmul.f32 %v7496_v45, %v7496_v45  ;;  %v4025_v9 = vmul.f32 %v7499_v14, %v7499_v14  ;;  %v4026_v19 = vmul.f32 %v7502_v51, %v7502_v51 }
 0x76e   : > { %v4027_v4 = vmul.f32 %v7505_v44, %v7505_v44  ;;  %v4028_v17 = vmul.f32 %v7508_v33, %v7508_v33  ;;  %v4029_v8 = vmul.f32 %v7511_v2, %v7511_v2  ;;  %v4030_v12 = vmul.f32 %v7514_v13, %v7514_v13 }
 0x76f   : > { %v4055_v6 = vadd.f32 %v4024_v23, %v4023_v25  ;;  %v4031_v11 = vmul.f32 %v7517_v38, %v7517_v38  ;;  %v4032_v15 = vmul.f32 %v7520_v27, %v7520_v27  ;;  %v4033_v56 = vmul.f32 %v7523_v31, %v7523_v31 }
 0x770   : > { %v4034_v29 = vmul.f32 %v7526_v52, %v7526_v52  ;;  %v4035_v57 = vmul.f32 %v7529_v43, %v7529_v43  ;;  %v4036_v3 = vmul.f32 %v7532_v58, %v7532_v58  ;;  %v4037_v42 = vmul.f32 %v7535_v7, %v7535_v7 }
 0x771   : > { %v4056_v5 = vadd.f32 %v4055_v6, %v4025_v9  ;;  %v4038_v35 = vmul.f32 %v7538_v55, %v7538_v55  ;;  %v4039_v53 = vmul.f32 %v7540_v54, %v7540_v54  ;;  %v4040_v25 = vmul.f32 %v7542_v46, %v7542_v46 }
 0x772   : > { %v4041_v9 = vmul.f32 %v7544_v18, %v7544_v18 }
 0x773   : > { %v4057_v1 = vadd.f32 %v4056_v5, %v4026_v19  ;;  %v4042_v19 = vmul.f32 %v7546_v41, %v7546_v41 }
 0x775   : > { %v4058_v34 = vadd.f32 %v4057_v1, %v4027_v4  ;;  %v4043_v4 = vmul.f32 %v7548_v59, %v7548_v59 }
 0x777   : > { %v4059_v24 = vadd.f32 %v4058_v34, %v4028_v17  ;;  %v4044_v17 = vmul.f32 %v7550_v39, %v7550_v39 }
 0x779   : > { %v4060_v32 = vadd.f32 %v4059_v24, %v4029_v8  ;;  %v4045_v8 = vmul.f32 %v7552_v30, %v7552_v30 }
 0x77b   : > { %v4061_v28 = vadd.f32 %v4060_v32, %v4030_v12  ;;  %v4046_v12 = vmul.f32 %v7554_v62, %v7554_v62 }
 0x77d   : > { %v4062_v37 = vadd.f32 %v4061_v28, %v4031_v11  ;;  %v4047_v11 = vmul.f32 %v7556_v63, %v7556_v63 }
 0x77f   : > { %v4063_v10 = vadd.f32 %v4062_v37, %v4032_v15  ;;  %v4048_v15 = vmul.f32 %v7558_v47, %v7558_v47 }
 0x781   : > { %v4064_v0 = vadd.f32 %v4063_v10, %v4033_v56  ;;  %v4049_v56 = vmul.f32 %v7560_v50, %v7560_v50 }
 0x783   : > { %v4065_v22 = vadd.f32 %v4064_v0, %v4034_v29  ;;  %v4050_v29 = vmul.f32 %v7562_v26, %v7562_v26 }
 0x785   : > { %v4066_v48 = vadd.f32 %v4065_v22, %v4035_v57  ;;  %v4051_v57 = vmul.f32 %v7564_v21, %v7564_v21 }
 0x787   : > { %v4067_v16 = vadd.f32 %v4066_v48, %v4036_v3  ;;  %v4052_v3 = vmul.f32 %v7566_v61, %v7566_v61 }
 0x789   : > { %v4068_v40 = vadd.f32 %v4067_v16, %v4037_v42  ;;  %v4053_v42 = vmul.f32 %v7568_v60, %v7568_v60 }
 0x78b   : > { %v4069_v49 = vadd.f32 %v4068_v40, %v4038_v35  ;;  %v4054_v35 = vmul.f32 %v7570_v20, %v7570_v20 }
 0x78d   : > { %v4070_v23 = vadd.f32 %v4069_v49, %v4039_v53 }
 0x78f   : > { %v4071_v6 = vadd.f32 %v4070_v23, %v4040_v25 }
 0x791   : > { %v4072_v5 = vadd.f32 %v4071_v6, %v4041_v9 }
 0x793   : > { %v4073_v1 = vadd.f32 %v4072_v5, %v4042_v19 }
 0x795   : > { %v4074_v34 = vadd.f32 %v4073_v1, %v4043_v4 }
 0x797   : > { %v4075_v24 = vadd.f32 %v4074_v34, %v4044_v17 }
 0x799   : > { %v4076_v32 = vadd.f32 %v4075_v24, %v4045_v8 }
 0x79b   : > { %v4077_v28 = vadd.f32 %v4076_v32, %v4046_v12 }
 0x79d   : > { %v4078_v37 = vadd.f32 %v4077_v28, %v4047_v11 }
 0x79f   : > { %v4079_v10 = vadd.f32 %v4078_v37, %v4048_v15 }
 0x7a1   : > { %v4080_v0 = vadd.f32 %v4079_v10, %v4049_v56 }
 0x7a3   : > { %v4081_v22 = vadd.f32 %v4080_v0, %v4050_v29 }
 0x7a5   : > { %v4082_v48 = vadd.f32 %v4081_v22, %v4051_v57 }
 0x7a7   : > { %v4083_v16 = vadd.f32 %v4082_v48, %v4052_v3 }
 0x7a9   : > { %v4084_v40 = vadd.f32 %v4083_v16, %v4053_v42 }
 0x7ab   : > { %v4085_v53 = vadd.f32 %v4084_v40, %v4054_v35 }
 0x7ad   : > { %v4086_v49 = vrot.slane %v4085_v53, 4 }
 0x7af   : > { %v4087_v25 = vadd.f32 %v4086_v49, %v4085_v53 }
 0x7b1   : > { %v4088_v23 = vrot.slane %v4087_v25, 2 }
 0x7b3   : > { %v4089_v9 = vadd.f32 %v4088_v23, %v4087_v25  ;;  %v4351_v23 = vld [vmem:[%s7785_s6] ss:$0 sm:$0xff] }
 0x7b5   : > { %v4090_v6 = vrot.slane %v4089_v9, 1 }
 0x7b7   : > { %v4091_v19 = vadd.f32 %v4090_v6, %v4089_v9 }
 0x7b9   : > { %v4092_v5 = vmul.f32 0.00390625, %v4091_v19 }
 0x7bb   : > { %v4093_v4 = vadd.f32 1e-05, %v4092_v5 }
 0x7bd   : > { %4535 = vrsqrt.f32 %v4093_v4 }
 0x7c7   : > { %v4536_v1 = vpop.eup %4535 }
 0x7c8   : > { %v4095_v17 = vmul.f32 %v4536_v1, %v7493_v36  ;;  %v4096_v34 = vmul.f32 %v4536_v1, %v7496_v45  ;;  %v4097_v8 = vmul.f32 %v4536_v1, %v7499_v14  ;;  %v4098_v24 = vmul.f32 %v4536_v1, %v7502_v51 }
 0x7c9   : > { %v4099_v12 = vmul.f32 %v4536_v1, %v7505_v44  ;;  %v4100_v32 = vmul.f32 %v4536_v1, %v7508_v33  ;;  %v4101_v11 = vmul.f32 %v4536_v1, %v7511_v2  ;;  %v4102_v28 = vmul.f32 %v4536_v1, %v7514_v13 }
 0x7ca   : > { %v4103_v15 = vmul.f32 %v4536_v1, %v7517_v38  ;;  %v4104_v37 = vmul.f32 %v4536_v1, %v7520_v27  ;;  %v4105_v36 = vmul.f32 %v4536_v1, %v7523_v31  ;;  %v4106_v45 = vmul.f32 %v4536_v1, %v7526_v52 }
 0x7cb   : > { %v4107_v14 = vmul.f32 %v4536_v1, %v7529_v43  ;;  %v4108_v51 = vmul.f32 %v4536_v1, %v7532_v58  ;;  %v4109_v44 = vmul.f32 %v4536_v1, %v7535_v7  ;;  %v4110_v33 = vmul.f32 %v4536_v1, %v7538_v55  ;;  %v4350_v7 = vld [vmem:[%s7784_s5] ss:$0 sm:$0xff] }
 0x7cc   : > { %v4111_v2 = vmul.f32 %v4536_v1, %v7540_v54  ;;  %v4112_v13 = vmul.f32 %v4536_v1, %v7542_v46  ;;  %v4113_v38 = vmul.f32 %v4536_v1, %v7544_v18  ;;  %v4114_v27 = vmul.f32 %v4536_v1, %v7546_v41 }
 0x7cd   : > { %v4115_v31 = vmul.f32 %v4536_v1, %v7548_v59  ;;  %v4116_v52 = vmul.f32 %v4536_v1, %v7550_v39  ;;  %v4117_v43 = vmul.f32 %v4536_v1, %v7552_v30  ;;  %v4118_v58 = vmul.f32 %v4536_v1, %v7554_v62 }
 0x7ce   : > { %v4119_v55 = vmul.f32 %v4536_v1, %v7556_v63  ;;  %v4120_v54 = vmul.f32 %v4536_v1, %v7558_v47  ;;  %v4121_v46 = vmul.f32 %v4536_v1, %v7560_v50  ;;  %v4122_v18 = vmul.f32 %v4536_v1, %v7562_v26 }
 0x7cf   : > { %v4123_v41 = vmul.f32 %v4536_v1, %v7564_v21  ;;  %v4124_v59 = vmul.f32 %v4536_v1, %v7566_v61  ;;  %v4125_v39 = vmul.f32 %v4536_v1, %v7568_v60  ;;  %v4126_v30 = vmul.f32 %v4536_v1, %v7570_v20 }
 0x7d0   : > { %v4134_v62 = vmul.f32 %v4350_v7, %v4095_v17  ;;  %v4135_v56 = vmul.f32 %v4350_v7, %v4096_v34  ;;  %v4136_v10 = vmul.f32 %v4350_v7, %v4097_v8  ;;  %v4137_v29 = vmul.f32 %v4350_v7, %v4098_v24 }
 0x7d1   : > { %v4138_v0 = vmul.f32 %v4350_v7, %v4099_v12  ;;  %v4139_v63 = vmul.f32 %v4350_v7, %v4100_v32  ;;  %v4140_v57 = vmul.f32 %v4350_v7, %v4101_v11  ;;  %v4141_v47 = vmul.f32 %v4350_v7, %v4102_v28 }
 0x7d2   : > { %v4142_v22 = vmul.f32 %v4350_v7, %v4103_v15  ;;  %v4143_v50 = vmul.f32 %v4350_v7, %v4104_v37  ;;  %v4144_v3 = vmul.f32 %v4350_v7, %v4105_v36  ;;  %v4145_v26 = vmul.f32 %v4350_v7, %v4106_v45 }
 0x7d3   : > { %v4146_v48 = vmul.f32 %v4350_v7, %v4107_v14  ;;  %v4147_v21 = vmul.f32 %v4350_v7, %v4108_v51  ;;  %v4148_v42 = vmul.f32 %v4350_v7, %v4109_v44  ;;  %v4149_v61 = vmul.f32 %v4350_v7, %v4110_v33 }
 0x7d4   : > { %v4150_v16 = vmul.f32 %v4350_v7, %v4111_v2  ;;  %v4151_v60 = vmul.f32 %v4350_v7, %v4112_v13  ;;  %v4152_v35 = vmul.f32 %v4350_v7, %v4113_v38  ;;  %v4153_v20 = vmul.f32 %v4350_v7, %v4114_v27 }
 0x7d5   : > { %v4154_v40 = vmul.f32 %v4350_v7, %v4115_v31  ;;  %v4155_v53 = vmul.f32 %v4350_v7, %v4116_v52  ;;  %v4156_v49 = vmul.f32 %v4350_v7, %v4117_v43  ;;  %v4157_v25 = vmul.f32 %v4350_v7, %v4118_v58 }
 0x7d6   : > { %v4158_v9 = vmul.f32 %v4350_v7, %v4119_v55  ;;  %v4159_v6 = vmul.f32 %v4350_v7, %v4120_v54  ;;  %v4160_v19 = vmul.f32 %v4350_v7, %v4121_v46  ;;  %v4161_v5 = vmul.f32 %v4350_v7, %v4122_v18 }
 0x7d7   : > { %v4162_v4 = vmul.f32 %v4350_v7, %v4123_v41  ;;  %v4163_v1 = vmul.f32 %v4350_v7, %v4124_v59  ;;  %v4164_v17 = vmul.f32 %v4350_v7, %v4125_v39  ;;  %v4165_v34 = vmul.f32 %v4350_v7, %v4126_v30 }
 0x7d8   : > { %v4173_v8 = vadd.f32 %v4351_v23, %v4134_v62  ;;  %v4174_v24 = vadd.f32 %v4351_v23, %v4135_v56  ;;  %v4175_v12 = vadd.f32 %v4351_v23, %v4136_v10  ;;  %v4176_v32 = vadd.f32 %v4351_v23, %v4137_v29  ;;  %v7940_v56 = vld [vmem:[#allocation4_spill] sm:$0xff]  ;;  %v7941_v29 = vld [vmem:[#allocation5_spill] sm:$0xff] }
 0x7d9   : > { %v4177_v11 = vadd.f32 %v4351_v23, %v4138_v0  ;;  %v4178_v28 = vadd.f32 %v4351_v23, %v4139_v63  ;;  %v4179_v15 = vadd.f32 %v4351_v23, %v4140_v57  ;;  %v4180_v37 = vadd.f32 %v4351_v23, %v4141_v47  ;;  %v7942_v63 = vld [vmem:[#allocation7_spill] sm:$0xff]  ;;  %v7943_v47 = vld [vmem:[#allocation6_spill] sm:$0xff] }
 0x7da   : > { %v4181_v36 = vadd.f32 %v4351_v23, %v4142_v22  ;;  %v4182_v45 = vadd.f32 %v4351_v23, %v4143_v50  ;;  %v4183_v14 = vadd.f32 %v4351_v23, %v4144_v3  ;;  %v4184_v51 = vadd.f32 %v4351_v23, %v4145_v26  ;;  %v7944_v50 = vld [vmem:[#allocation17_spill] sm:$0xff]  ;;  %v7945_v26 = vld [vmem:[#allocation14_spill] sm:$0xff] }
 0x7db   : > { %v4185_v44 = vadd.f32 %v4351_v23, %v4146_v48  ;;  %v4186_v33 = vadd.f32 %v4351_v23, %v4147_v21  ;;  %v4187_v2 = vadd.f32 %v4351_v23, %v4148_v42  ;;  %v4188_v13 = vadd.f32 %v4351_v23, %v4149_v61  ;;  %v7946_v21 = vld [vmem:[#allocation22_spill] sm:$0xff]  ;;  %v7947_v61 = vld [vmem:[#allocation21_spill] sm:$0xff] }
 0x7dc   : > { %v4189_v38 = vadd.f32 %v4351_v23, %v4150_v16  ;;  %v4190_v27 = vadd.f32 %v4351_v23, %v4151_v60  ;;  %v4191_v31 = vadd.f32 %v4351_v23, %v4152_v35  ;;  %v4192_v52 = vadd.f32 %v4351_v23, %v4153_v20  ;;  %v7948_v60 = vld [vmem:[#allocation24_spill] sm:$0xff]  ;;  %v7949_v20 = vld [vmem:[#allocation23_spill] sm:$0xff] }
 0x7dd   : > { %v4193_v43 = vadd.f32 %v4351_v23, %v4154_v40  ;;  %v4194_v58 = vadd.f32 %v4351_v23, %v4155_v53  ;;  %v4195_v7 = vadd.f32 %v4351_v23, %v4156_v49  ;;  %v4196_v55 = vadd.f32 %v4351_v23, %v4157_v25  ;;  %v7950_v53 = vld [vmem:[#allocation27_spill] sm:$0xff]  ;;  %v7951_v25 = vld [vmem:[#allocation25_spill] sm:$0xff] }
 0x7de   : > { %v4197_v54 = vadd.f32 %v4351_v23, %v4158_v9  ;;  %v4198_v46 = vadd.f32 %v4351_v23, %v4159_v6  ;;  %v4199_v18 = vadd.f32 %v4351_v23, %v4160_v19  ;;  %v4200_v41 = vadd.f32 %v4351_v23, %v4161_v5  ;;  %v7952_v9 = vld [vmem:[#allocation29_spill] sm:$0xff]  ;;  %v7953_v19 = vld [vmem:[#allocation28_spill] sm:$0xff] }
 0x7df   : > { %v4201_v59 = vadd.f32 %v4351_v23, %v4162_v4  ;;  %v4202_v39 = vadd.f32 %v4351_v23, %v4163_v1  ;;  %v4203_v30 = vadd.f32 %v4351_v23, %v4164_v17  ;;  %v4204_v62 = vadd.f32 %v4351_v23, %v4165_v34  ;;  %v7954_v4 = vld [vmem:[#allocation32_spill] sm:$0xff]  ;;  %v7955_v17 = vld [vmem:[#allocation31_spill] sm:$0xff] }
 0x7e0   : > { %v4205_v10 = vadd.f32 %v4173_v8, %v7940_v56  ;;  %v4206_v0 = vadd.f32 %v4174_v24, %v7941_v29  ;;  %v4207_v57 = vadd.f32 %v4175_v12, %v7942_v63  ;;  %v4208_v22 = vadd.f32 %v4176_v32, %v7943_v47  ;;  %v7956_v8 = vld [vmem:[#allocation35_spill] sm:$0xff]  ;;  %v7957_v12 = vld [vmem:[#allocation34_spill] sm:$0xff] }
 0x7e1   : > { %v4209_v3 = vadd.f32 %v4177_v11, %v7944_v50  ;;  %v4210_v48 = vadd.f32 %v4178_v28, %v7945_v26  ;;  %v4211_v42 = vadd.f32 %v4179_v15, %v7946_v21  ;;  %v4212_v16 = vadd.f32 %v4180_v37, %v7947_v61  ;;  %v7958_v11 = vld [vmem:[#allocation37_spill] sm:$0xff]  ;;  %v7959_v15 = vld [vmem:[#allocation36_spill] sm:$0xff]  ;;  %v7969_v56 = vld [vmem:[#allocation46_spill] sm:$0xff] }
 0x7e2   : > { %v4213_v35 = vadd.f32 %v4181_v36, %v7948_v60  ;;  %v4214_v40 = vadd.f32 %v4182_v45, %v7949_v20  ;;  %v4215_v49 = vadd.f32 %v4183_v14, %v7950_v53  ;;  %v4216_v23 = vadd.f32 %v4184_v51, %v7951_v25  ;;  %4237 = vst.msk [vmem:[%s7678_s15] sm:$0xff] %vm367_vm1, %v4205_v10  ;;  %v7960_v36 = vld [vmem:[#allocation39_spill] sm:$0xff]  ;;  %v7961_v14 = vld [vmem:[#allocation38_spill] sm:$0xff]  ;;  %v7970_v10 = vld [vmem:[#allocation8_spill] sm:$0xff] }
 0x7e3   : > { %4238 = vst.msk [vmem:[%s7678_s15 + $0x8] sm:$0xff] %vm367_vm1, %v4206_v0  ;;  %4239 = vst.msk [vmem:[%s7678_s15 + $0x10] sm:$0xff] %vm367_vm1, %v4207_v57  ;;  %v4217_v6 = vadd.f32 %v4185_v44, %v7952_v9  ;;  %v4218_v5 = vadd.f32 %v4186_v33, %v7953_v19  ;;  %v4219_v1 = vadd.f32 %v4187_v2, %v7954_v4  ;;  %v7962_v44 = vld [vmem:[#allocation41_spill] sm:$0xff]  ;;  %v7963_v2 = vld [vmem:[#allocation40_spill] sm:$0xff] }
 0x7e4   : > { %4240 = vst.msk [vmem:[%s7678_s15 + $0x18] sm:$0xff] %vm367_vm1, %v4208_v22  ;;  %v4220_v34 = vadd.f32 %v4188_v13, %v7955_v17  ;;  %4241 = vst.msk [vmem:[%s7678_s15 + $0x20] sm:$0xff] %vm367_vm1, %v4209_v3  ;;  %v4221_v24 = vadd.f32 %v4189_v38, %v7956_v8  ;;  %v4222_v32 = vadd.f32 %v4190_v27, %v7957_v12  ;;  %v7964_v38 = vld [vmem:[#allocation43_spill] sm:$0xff] }
 0x7e5   : > { %4242 = vst.msk [vmem:[%s7678_s15 + $0x28] sm:$0xff] %vm367_vm1, %v4210_v48  ;;  %4243 = vst.msk [vmem:[%s7678_s15 + $0x30] sm:$0xff] %vm367_vm1, %v4211_v42  ;;  %v4223_v28 = vadd.f32 %v4191_v31, %v7958_v11  ;;  %v4224_v37 = vadd.f32 %v4192_v52, %v7959_v15  ;;  %v4225_v45 = vadd.f32 %v4193_v43, %v7960_v36  ;;  %v7965_v31 = vld [vmem:[#allocation42_spill] sm:$0xff]  ;;  %v7966_v43 = vld [vmem:[#allocation45_spill] sm:$0xff] }
 0x7e6   : > { %4244 = vst.msk [vmem:[%s7678_s15 + $0x38] sm:$0xff] %vm367_vm1, %v4212_v16  ;;  %4245 = vst.msk [vmem:[%s7678_s15 + $0x40] sm:$0xff] %vm367_vm1, %v4213_v35  ;;  %v4226_v51 = vadd.f32 %v4194_v58, %v7961_v14  ;;  %v4227_v33 = vadd.f32 %v4195_v7, %v7962_v44  ;;  %v4228_v13 = vadd.f32 %v4196_v55, %v7963_v2  ;;  %v7967_v7 = vld [vmem:[#allocation44_spill] sm:$0xff] }
 0x7e7   : > { %4246 = vst.msk [vmem:[%s7678_s15 + $0x48] sm:$0xff] %vm367_vm1, %v4214_v40  ;;  %4247 = vst.msk [vmem:[%s7678_s15 + $0x50] sm:$0xff] %vm367_vm1, %v4215_v49  ;;  %v4229_v27 = vadd.f32 %v4197_v54, %v7964_v38  ;;  %v4230_v52 = vadd.f32 %v4198_v46, %v7965_v31  ;;  %v4231_v58 = vadd.f32 %v4199_v18, %v7966_v43  ;;  %v7968_v54 = vld [vmem:[#allocation47_spill] sm:$0xff] }
 0x7e8   : > { %4248 = vst.msk [vmem:[%s7678_s15 + $0x58] sm:$0xff] %vm367_vm1, %v4216_v23  ;;  %4249 = vst.msk [vmem:[%s7678_s15 + $0x60] sm:$0xff] %vm367_vm1, %v4217_v6  ;;  %v4232_v55 = vadd.f32 %v4200_v41, %v7967_v7  ;;  %v4233_v46 = vadd.f32 %v4201_v59, %v7968_v54  ;;  %v4234_v18 = vadd.f32 %v4202_v39, %v7969_v56  ;;  %v7971_v41 = vld [vmem:[#allocation26_spill] sm:$0xff] }
 0x7e9   : > { %4250 = vst.msk [vmem:[%s7678_s15 + $0x68] sm:$0xff] %vm367_vm1, %v4218_v5  ;;  %4251 = vst.msk [vmem:[%s7678_s15 + $0x70] sm:$0xff] %vm367_vm1, %v4219_v1  ;;  %v4235_v29 = vadd.f32 %v4203_v30, %v7970_v10  ;;  %v4236_v0 = vadd.f32 %v4204_v62, %v7971_v41 }
 0x7ea   : > { %4252 = vst.msk [vmem:[%s7678_s15 + $0x78] sm:$0xff] %vm367_vm1, %v4220_v34  ;;  %4253 = vst.msk [vmem:[%s7678_s15 + $0x80] sm:$0xff] %vm367_vm1, %v4221_v24 }
 0x7eb   : > { %4254 = vst.msk [vmem:[%s7678_s15 + $0x88] sm:$0xff] %vm367_vm1, %v4222_v32  ;;  %4255 = vst.msk [vmem:[%s7678_s15 + $0x90] sm:$0xff] %vm367_vm1, %v4223_v28 }
 0x7ec   : > { %4256 = vst.msk [vmem:[%s7678_s15 + $0x98] sm:$0xff] %vm367_vm1, %v4224_v37  ;;  %4257 = vst.msk [vmem:[%s7678_s15 + $0xa0] sm:$0xff] %vm367_vm1, %v4225_v45 }
 0x7ed   : > { %4258 = vst.msk [vmem:[%s7678_s15 + $0xa8] sm:$0xff] %vm367_vm1, %v4226_v51  ;;  %4259 = vst.msk [vmem:[%s7678_s15 + $0xb0] sm:$0xff] %vm367_vm1, %v4227_v33 }
 0x7ee   : > { %4260 = vst.msk [vmem:[%s7678_s15 + $0xb8] sm:$0xff] %vm367_vm1, %v4228_v13  ;;  %4261 = vst.msk [vmem:[%s7678_s15 + $0xc0] sm:$0xff] %vm367_vm1, %v4229_v27 }
 0x7ef   : > { %4262 = vst.msk [vmem:[%s7678_s15 + $0xc8] sm:$0xff] %vm367_vm1, %v4230_v52  ;;  %4263 = vst.msk [vmem:[%s7678_s15 + $0xd0] sm:$0xff] %vm367_vm1, %v4231_v58 }
 0x7f0   : > { %4264 = vst.msk [vmem:[%s7678_s15 + $0xd8] sm:$0xff] %vm367_vm1, %v4232_v55  ;;  %4265 = vst.msk [vmem:[%s7678_s15 + $0xe0] sm:$0xff] %vm367_vm1, %v4233_v46 }
 0x7f1   : > { %4266 = vst.msk [vmem:[%s7678_s15 + $0xe8] sm:$0xff] %vm367_vm1, %v4234_v18  ;;  %4267 = vst.msk [vmem:[%s7678_s15 + $0xf0] sm:$0xff] %vm367_vm1, %v4235_v29 }
 0x7f2   : > { %4268 = vst.msk [vmem:[%s7678_s15 + $0xf8] sm:$0xff] %vm367_vm1, %v4236_v0 }
 0x7f3 PF: > { %s17_s24 = sadd.s32 1, %s4548_s24  }
 0x7f4   : > { %p14_p4 = scmp.ge.s32.totalorder %s17_s24, 4  }
 0x7f6   :  { %16 = sbr.rel (!%p14_p4) target bundleno = 1 (0x1), region = 80 }

</bundles_post_ra>
